<compile_context>
chip_gen: v7x
topology: tpu7x:2x2x1
jax: 0.10.0
libtpu: 0.0.40
codegen_flags: <defaults>
</compile_context>

<pallas_src>
import numpy as np

import jax
import jax.numpy as jnp
from jax.experimental import pallas as pl
from jax.experimental.pallas import tpu as pltpu

BN_EPS = 1e-5
LRELU_SLOPE = 0.01          # torch.nn.LeakyReLU default negative_slope

K, STRIDE, PAD = 3, 2, 1    # both conv blocks: kernel 3, stride 2, padding 1
K1 = K * K                  # 9 taps (Cin of conv1 is 1)
C1, C2, N_CLASSES = 2, 4, 10
HW1 = 14                    # conv1 output spatial size (28 -> 14)
HW2 = 7                     # conv2 output spatial size (14 -> 7)
S2 = HW2 * HW2              # 49 spatial positions feeding the Linear layer
OUT_PAD = 128               # logits padded to a full 128-lane store


# ----------------------------- fused Pallas kernel ---------------------------

def mnist_fused_kernel(p1_ref, p1d_ref, msk_ref, w1_ref, g1_ref, b1_ref,
                       w2_ref, g2_ref, b2_ref, w3_ref, b3_ref, out_ref):
    """Entire MnistNet forward for one batch, resident in VMEM.

    p1  : (B*196, 9)      conv1 im2col patches (only for BN1 batch statistics)
    p1d : (9, B*49, 9)    conv1 patches re-gathered in conv2-patch order,
                          tap-major; rows ordered (h2*7+w2, b)
    msk : (9, B*49, 1)    0.0 where a conv2 tap falls into conv2's zero padding
    w1  : (9, 2)          conv1 weight  (kh*3+kw, cout)
    w2  : (9, 2, 4)       conv2 weight  (dh*3+dw, cin, cout)
    w3  : (49, 4, 128)    linear weight permuted to (spatial, channel, out_pad)
    b3  : (1, 128)        linear bias (zero padded)
    g*/b*: (1, C)         BatchNorm gamma / beta
    out : (B, 128)        lane-dense logits (columns >= 10 are exactly zero)
    """
    f32 = jnp.float32
    n_taps = p1d_ref.shape[0]
    r2 = p1d_ref.shape[1]                    # B * 49
    c2 = w2_ref.shape[2]
    batch = out_ref.shape[0]

    # --- BN1 batch statistics (training mode, biased variance over N,H,W) ---
    y1 = jnp.dot(p1_ref[...], w1_ref[...], preferred_element_type=f32)  # (B*196, 2)
    mean1 = jnp.mean(y1, axis=0, keepdims=True)
    d1 = y1 - mean1
    var1 = jnp.mean(d1 * d1, axis=0, keepdims=True)
    scale1 = g1_ref[...] * jax.lax.rsqrt(var1 + BN_EPS)                 # (1, 2)
    shift1 = b1_ref[...] - mean1 * scale1

    # --- conv2 accumulated over its 9 taps (conv1 recomputed per tap) --------
    acc2 = jnp.zeros((r2, c2), f32)
    for t in range(n_taps):
        z = jnp.dot(p1d_ref[t], w1_ref[...], preferred_element_type=f32)  # (B*49, 2)
        z = z * scale1 + shift1                       # folded BatchNorm1
        z = jnp.maximum(z, LRELU_SLOPE * z)           # LeakyReLU
        z = z * msk_ref[t]                            # conv2 zero padding
        acc2 = acc2 + jnp.dot(z, w2_ref[t], preferred_element_type=f32)   # (B*49, 4)

    # --- BN2 (batch stats over all real conv2 outputs) + LeakyReLU -----------
    mean2 = jnp.mean(acc2, axis=0, keepdims=True)
    d2 = acc2 - mean2
    var2 = jnp.mean(d2 * d2, axis=0, keepdims=True)
    scale2 = g2_ref[...] * jax.lax.rsqrt(var2 + BN_EPS)
    shift2 = b2_ref[...] - mean2 * scale2
    y2 = acc2 * scale2 + shift2
    y2 = jnp.maximum(y2, LRELU_SLOPE * y2)            # (B*49, 4), rows (s, b)

    # --- Flatten + Linear(196, 10), weights pre-permuted per spatial slot ----
    out = jnp.zeros((batch, out_ref.shape[1]), f32) + b3_ref[...]
    for s in range(S2):
        blk = y2[s * batch:(s + 1) * batch, :]        # (B, 4) for spatial s
        out = out + jnp.dot(blk, w3_ref[s], preferred_element_type=f32)   # (B, 128)
    out_ref[...] = out


# ------------------------------ host-side glue -------------------------------

def _conv1_patches(x_nhwc):
    """im2col for conv1 (k=3, s=2, p=1): (B, 28, 28, 1) -> (B, 14, 14, 9)."""
    B, H, W, C = x_nhwc.shape
    xp = jnp.pad(x_nhwc, ((0, 0), (PAD, PAD), (PAD, PAD), (0, 0)))
    Ho = (H + 2 * PAD - K) // STRIDE + 1
    Wo = (W + 2 * PAD - K) // STRIDE + 1
    taps = [xp[:, kh:kh + STRIDE * Ho:STRIDE, kw:kw + STRIDE * Wo:STRIDE, :]
            for kh in range(K) for kw in range(K)]
    p = jnp.stack(taps, axis=3)                       # (B, Ho, Wo, 9, C)
    return p.reshape(B, Ho, Wo, K * K * C)


def _conv2_gather(p1full):
    """Re-gather conv1 patches in conv2-patch order + conv2-padding mask.

    Returns p1d (9, 49*B, 9) with rows ordered (h2*7+w2, b), and a static
    mask (9, 49*B, 1) that is 0.0 where the tap reads conv2's zero padding.
    """
    B, Ho, Wo, k1 = p1full.shape                      # (B, 14, 14, 9)
    pp = jnp.pad(p1full, ((0, 0), (PAD, PAD), (PAD, PAD), (0, 0)))
    taps, masks = [], []
    for dh in range(K):
        for dw in range(K):
            t = pp[:, dh:dh + STRIDE * HW2:STRIDE, dw:dw + STRIDE * HW2:STRIDE, :]
            taps.append(jnp.transpose(t, (1, 2, 0, 3)).reshape(S2 * B, k1))
            h1 = STRIDE * np.arange(HW2) + dh - PAD
            w1 = STRIDE * np.arange(HW2) + dw - PAD
            valid = ((h1 >= 0) & (h1 < Ho))[:, None] & ((w1 >= 0) & (w1 < Wo))[None, :]
            m = valid.astype(np.float32)
            masks.append(np.broadcast_to(m[:, :, None], (HW2, HW2, B)).reshape(S2 * B, 1))
    return jnp.stack(taps, axis=0), jnp.asarray(np.stack(masks, axis=0))


def _prep_params(w1, g1, b1, w2, g2, b2, w3, b3):
    """Permute/pad torch-layout parameters for the fused kernel (host, once)."""
    w1m = jnp.transpose(w1, (2, 3, 1, 0)).reshape(K * K * w1.shape[1], C1)   # (9, 2)
    w2t = jnp.transpose(w2, (2, 3, 1, 0)).reshape(K * K, C1, C2)             # (9, 2, 4)
    # torch Flatten order is (c, h, w): feature index f = c*49 + (h*7 + w).
    w3p = jnp.zeros((S2, C2, OUT_PAD), jnp.float32)
    w3p = w3p.at[:, :, :N_CLASSES].set(
        jnp.transpose(w3.reshape(N_CLASSES, C2, S2), (2, 1, 0)))             # (49, 4, 128)
    b3p = jnp.zeros((1, OUT_PAD), jnp.float32).at[0, :N_CLASSES].set(b3)
    return (w1m, g1.reshape(1, -1), b1.reshape(1, -1),
            w2t, g2.reshape(1, -1), b2.reshape(1, -1), w3p, b3p)


def mnist_net_forward(x_nchw, w1, g1, b1, w2, g2, b2, w3, b3):
    B = x_nchw.shape[0]
    x = jnp.transpose(x_nchw, (0, 2, 3, 1)).astype(jnp.float32)   # NCHW -> NHWC

    p1full = _conv1_patches(x)                       # (B, 14, 14, 9)
    p1 = p1full.reshape(B * HW1 * HW1, K1)           # (B*196, 9) for BN1 stats
    p1d, msk = _conv2_gather(p1full)                 # (9, B*49, 9), (9, B*49, 1)
    args = (p1, p1d, msk) + _prep_params(w1, g1, b1, w2, g2, b2, w3, b3)

    flops = 2 * (p1.shape[0] * K1 * C1
                 + K1 * p1d.shape[1] * (K1 * C1 + C1 * C2)
                 + S2 * B * C2 * OUT_PAD)
    bytes_accessed = sum(int(np.prod(a.shape)) * 4 for a in args) + B * OUT_PAD * 4

    out_padded = pl.pallas_call(
        mnist_fused_kernel,
        out_shape=jax.ShapeDtypeStruct((B, OUT_PAD), jnp.float32),
        in_specs=[pl.BlockSpec(memory_space=pltpu.MemorySpace.VMEM)] * len(args),
        out_specs=pl.BlockSpec(memory_space=pltpu.MemorySpace.VMEM),
        compiler_params=pltpu.CompilerParams(vmem_limit_bytes=32 * 1024 * 1024),
        cost_estimate=pl.CostEstimate(flops=flops, transcendentals=0,
                                      bytes_accessed=bytes_accessed),
    )(*args)
    return out_padded[:, :N_CLASSES]                 # (B, 10)


# ------------------------- pure-JAX reference (check) ------------------------

def _reference_forward(x, w1, g1, b1, w2, g2, b2, w3, b3):
    def conv(a, w):
        return jax.lax.conv_general_dilated(
            a, w, window_strides=(STRIDE, STRIDE),
            padding=((PAD, PAD), (PAD, PAD)),
            dimension_numbers=("NCHW", "OIHW", "NCHW"))

    def bn(a, g, b):
        mean = jnp.mean(a, axis=(0, 2, 3), keepdims=True)
        var = jnp.mean((a - mean) ** 2, axis=(0, 2, 3), keepdims=True)
        return ((a - mean) * jax.lax.rsqrt(var + BN_EPS)
                * g.reshape(1, -1, 1, 1) + b.reshape(1, -1, 1, 1))

    lrelu = lambda a: jnp.where(a >= 0, a, LRELU_SLOPE * a)
    a1 = lrelu(bn(conv(x, w1), g1, b1))
    a2 = lrelu(bn(conv(a1, w2), g2, b2))
    return a2.reshape(x.shape[0], -1) @ w3.T + b3


# ----------------------------------- main ------------------------------------

if __name__ == "__main__":
    key = jax.random.PRNGKey(0)
    k_x, k_w1, k_w2, k_w3, k_b3 = jax.random.split(key, 5)

    B = 2
    # MnistNet requires 1-channel 28x28 inputs (Linear(196, 10) forces it).
    x = jax.random.normal(k_x, (B, 1, 28, 28), dtype=jnp.float32)

    w1 = jax.random.normal(k_w1, (2, 1, 3, 3), dtype=jnp.float32) * 0.2   # Conv2d(1, 2)
    w2 = jax.random.normal(k_w2, (4, 2, 3, 3), dtype=jnp.float32) * 0.2   # Conv2d(2, 4)
    w3 = jax.random.normal(k_w3, (10, 196), dtype=jnp.float32) * 0.05     # Linear(196, 10)
    b3 = jax.random.normal(k_b3, (10,), dtype=jnp.float32) * 0.05
    g1 = jnp.ones((2,), jnp.float32); be1 = jnp.zeros((2,), jnp.float32)  # BatchNorm2d(2)
    g2 = jnp.ones((4,), jnp.float32); be2 = jnp.zeros((4,), jnp.float32)  # BatchNorm2d(4)

    fwd = jax.jit(mnist_net_forward)
    out = jax.block_until_ready(fwd(x, w1, g1, be1, w2, g2, be2, w3, b3))
    assert out.shape == (B, 10) and out.dtype == jnp.float32

    ref = jax.block_until_ready(
        _reference_forward(x, w1, g1, be1, w2, g2, be2, w3, b3))
    np.testing.assert_allclose(np.asarray(out), np.asarray(ref), rtol=5e-3, atol=5e-3)

    print("KERNEL_OK")
</pallas_src>

<mosaic_0001>
module attributes {stable_mosaic.version = 11 : i64} {
  func.func @mnist_fused_kernel(%arg0: memref<392x9xf32, #tpu.memory_space<vmem>>, %arg1: memref<9x98x9xf32, #tpu.memory_space<vmem>>, %arg2: memref<9x98x1xf32, #tpu.memory_space<vmem>>, %arg3: memref<9x2xf32, #tpu.memory_space<vmem>>, %arg4: memref<1x2xf32, #tpu.memory_space<vmem>>, %arg5: memref<1x2xf32, #tpu.memory_space<vmem>>, %arg6: memref<9x2x4xf32, #tpu.memory_space<vmem>>, %arg7: memref<1x4xf32, #tpu.memory_space<vmem>>, %arg8: memref<1x4xf32, #tpu.memory_space<vmem>>, %arg9: memref<49x4x128xf32, #tpu.memory_space<vmem>>, %arg10: memref<1x128xf32, #tpu.memory_space<vmem>>, %arg11: memref<2x128xf32, #tpu.memory_space<vmem>>) attributes {dimension_semantics = [], scalar_prefetch = 0 : i64, scratch_operands = 0 : i64, tpu.core_type = #tpu.core_type<tc>} {
    %c0 = arith.constant 0 : index
    %c0_0 = arith.constant 0 : index
    %0 = vector.load %arg0[%c0, %c0_0] : memref<392x9xf32, #tpu.memory_space<vmem>>, vector<392x9xf32>
    %c0_1 = arith.constant 0 : index
    %c0_2 = arith.constant 0 : index
    %1 = vector.load %arg3[%c0_1, %c0_2] : memref<9x2xf32, #tpu.memory_space<vmem>>, vector<9x2xf32>
    %cst = arith.constant dense<0.000000e+00> : vector<392x2xf32>
    %2 = tpu.matmul %0, %1, %cst {dimension_numbers = #tpu.dot_dimension_numbers<[1], [0], [0], [1], [0, 0, 1, 1], [], []>} : vector<392x9xf32>, vector<9x2xf32>, vector<392x2xf32> -> vector<392x2xf32>
    %cst_3 = arith.constant dense<0.000000e+00> : vector<2xf32>
    %3 = vector.multi_reduction <add>, %2, %cst_3 [0] : vector<392x2xf32> to vector<2xf32>
    %4 = vector.shape_cast %3 : vector<2xf32> to vector<1x2xf32>
    %cst_4 = arith.constant 3.920000e+02 : f32
    %5 = vector.broadcast %cst_4 : f32 to vector<1x2xf32>
    %6 = arith.divf %4, %5 : vector<1x2xf32>
    %7 = vector.broadcast %6 : vector<1x2xf32> to vector<392x2xf32>
    %8 = arith.subf %2, %7 : vector<392x2xf32>
    %9 = arith.mulf %8, %8 : vector<392x2xf32>
    %cst_5 = arith.constant dense<0.000000e+00> : vector<2xf32>
    %10 = vector.multi_reduction <add>, %9, %cst_5 [0] : vector<392x2xf32> to vector<2xf32>
    %11 = vector.shape_cast %10 : vector<2xf32> to vector<1x2xf32>
    %cst_6 = arith.constant 3.920000e+02 : f32
    %12 = vector.broadcast %cst_6 : f32 to vector<1x2xf32>
    %13 = arith.divf %11, %12 : vector<1x2xf32>
    %c0_7 = arith.constant 0 : index
    %c0_8 = arith.constant 0 : index
    %14 = vector.load %arg4[%c0_7, %c0_8] : memref<1x2xf32, #tpu.memory_space<vmem>>, vector<1x2xf32>
    %cst_9 = arith.constant 9.99999974E-6 : f32
    %15 = vector.broadcast %cst_9 : f32 to vector<1x2xf32>
    %16 = arith.addf %13, %15 : vector<1x2xf32>
    %17 = math.rsqrt %16 : vector<1x2xf32>
    %18 = arith.mulf %14, %17 : vector<1x2xf32>
    %c0_10 = arith.constant 0 : index
    %c0_11 = arith.constant 0 : index
    %19 = vector.load %arg5[%c0_10, %c0_11] : memref<1x2xf32, #tpu.memory_space<vmem>>, vector<1x2xf32>
    %20 = arith.mulf %6, %18 : vector<1x2xf32>
    %21 = arith.subf %19, %20 : vector<1x2xf32>
    %cst_12 = arith.constant 0.000000e+00 : f32
    %22 = vector.broadcast %cst_12 : f32 to vector<98x4xf32>
    %c0_13 = arith.constant 0 : index
    %c0_14 = arith.constant 0 : index
    %c0_15 = arith.constant 0 : index
    %23 = vector.load %arg1[%c0_13, %c0_14, %c0_15] : memref<9x98x9xf32, #tpu.memory_space<vmem>>, vector<1x98x9xf32>
    %24 = vector.shape_cast %23 : vector<1x98x9xf32> to vector<98x9xf32>
    %c0_16 = arith.constant 0 : index
    %c0_17 = arith.constant 0 : index
    %25 = vector.load %arg3[%c0_16, %c0_17] : memref<9x2xf32, #tpu.memory_space<vmem>>, vector<9x2xf32>
    %cst_18 = arith.constant dense<0.000000e+00> : vector<98x2xf32>
    %26 = tpu.matmul %24, %25, %cst_18 {dimension_numbers = #tpu.dot_dimension_numbers<[1], [0], [0], [1], [0, 0, 1, 1], [], []>} : vector<98x9xf32>, vector<9x2xf32>, vector<98x2xf32> -> vector<98x2xf32>
    %27 = vector.broadcast %18 : vector<1x2xf32> to vector<98x2xf32>
    %28 = arith.mulf %26, %27 : vector<98x2xf32>
    %29 = vector.broadcast %21 : vector<1x2xf32> to vector<98x2xf32>
    %30 = arith.addf %28, %29 : vector<98x2xf32>
    %cst_19 = arith.constant 0.00999999977 : f32
    %31 = vector.broadcast %cst_19 : f32 to vector<98x2xf32>
    %32 = arith.mulf %31, %30 : vector<98x2xf32>
    %33 = arith.maximumf %30, %32 : vector<98x2xf32>
    %c0_20 = arith.constant 0 : index
    %c0_21 = arith.constant 0 : index
    %c0_22 = arith.constant 0 : index
    %34 = vector.load %arg2[%c0_20, %c0_21, %c0_22] : memref<9x98x1xf32, #tpu.memory_space<vmem>>, vector<1x98x1xf32>
    %35 = vector.shape_cast %34 : vector<1x98x1xf32> to vector<98x1xf32>
    %36 = vector.broadcast %35 : vector<98x1xf32> to vector<98x2xf32>
    %37 = arith.mulf %33, %36 : vector<98x2xf32>
    %c0_23 = arith.constant 0 : index
    %c0_24 = arith.constant 0 : index
    %c0_25 = arith.constant 0 : index
    %38 = vector.load %arg6[%c0_23, %c0_24, %c0_25] : memref<9x2x4xf32, #tpu.memory_space<vmem>>, vector<1x2x4xf32>
    %39 = vector.shape_cast %38 : vector<1x2x4xf32> to vector<2x4xf32>
    %cst_26 = arith.constant dense<0.000000e+00> : vector<98x4xf32>
    %40 = tpu.matmul %37, %39, %cst_26 {dimension_numbers = #tpu.dot_dimension_numbers<[1], [0], [0], [1], [0, 0, 1, 1], [], []>} : vector<98x2xf32>, vector<2x4xf32>, vector<98x4xf32> -> vector<98x4xf32>
    %41 = arith.addf %22, %40 : vector<98x4xf32>
    %c1 = arith.constant 1 : index
    %c0_27 = arith.constant 0 : index
    %c0_28 = arith.constant 0 : index
    %42 = vector.load %arg1[%c1, %c0_27, %c0_28] : memref<9x98x9xf32, #tpu.memory_space<vmem>>, vector<1x98x9xf32>
    %43 = vector.shape_cast %42 : vector<1x98x9xf32> to vector<98x9xf32>
    %c0_29 = arith.constant 0 : index
    %c0_30 = arith.constant 0 : index
    %44 = vector.load %arg3[%c0_29, %c0_30] : memref<9x2xf32, #tpu.memory_space<vmem>>, vector<9x2xf32>
    %cst_31 = arith.constant dense<0.000000e+00> : vector<98x2xf32>
    %45 = tpu.matmul %43, %44, %cst_31 {dimension_numbers = #tpu.dot_dimension_numbers<[1], [0], [0], [1], [0, 0, 1, 1], [], []>} : vector<98x9xf32>, vector<9x2xf32>, vector<98x2xf32> -> vector<98x2xf32>
    %46 = vector.broadcast %18 : vector<1x2xf32> to vector<98x2xf32>
    %47 = arith.mulf %45, %46 : vector<98x2xf32>
    %48 = vector.broadcast %21 : vector<1x2xf32> to vector<98x2xf32>
    %49 = arith.addf %47, %48 : vector<98x2xf32>
    %cst_32 = arith.constant 0.00999999977 : f32
    %50 = vector.broadcast %cst_32 : f32 to vector<98x2xf32>
    %51 = arith.mulf %50, %49 : vector<98x2xf32>
    %52 = arith.maximumf %49, %51 : vector<98x2xf32>
    %c1_33 = arith.constant 1 : index
    %c0_34 = arith.constant 0 : index
    %c0_35 = arith.constant 0 : index
    %53 = vector.load %arg2[%c1_33, %c0_34, %c0_35] : memref<9x98x1xf32, #tpu.memory_space<vmem>>, vector<1x98x1xf32>
    %54 = vector.shape_cast %53 : vector<1x98x1xf32> to vector<98x1xf32>
    %55 = vector.broadcast %54 : vector<98x1xf32> to vector<98x2xf32>
    %56 = arith.mulf %52, %55 : vector<98x2xf32>
    %c1_36 = arith.constant 1 : index
    %c0_37 = arith.constant 0 : index
    %c0_38 = arith.constant 0 : index
    %57 = vector.load %arg6[%c1_36, %c0_37, %c0_38] : memref<9x2x4xf32, #tpu.memory_space<vmem>>, vector<1x2x4xf32>
    %58 = vector.shape_cast %57 : vector<1x2x4xf32> to vector<2x4xf32>
    %cst_39 = arith.constant dense<0.000000e+00> : vector<98x4xf32>
    %59 = tpu.matmul %56, %58, %cst_39 {dimension_numbers = #tpu.dot_dimension_numbers<[1], [0], [0], [1], [0, 0, 1, 1], [], []>} : vector<98x2xf32>, vector<2x4xf32>, vector<98x4xf32> -> vector<98x4xf32>
    %60 = arith.addf %41, %59 : vector<98x4xf32>
    %c2 = arith.constant 2 : index
    %c0_40 = arith.constant 0 : index
    %c0_41 = arith.constant 0 : index
    %61 = vector.load %arg1[%c2, %c0_40, %c0_41] : memref<9x98x9xf32, #tpu.memory_space<vmem>>, vector<1x98x9xf32>
    %62 = vector.shape_cast %61 : vector<1x98x9xf32> to vector<98x9xf32>
    %c0_42 = arith.constant 0 : index
    %c0_43 = arith.constant 0 : index
    %63 = vector.load %arg3[%c0_42, %c0_43] : memref<9x2xf32, #tpu.memory_space<vmem>>, vector<9x2xf32>
    %cst_44 = arith.constant dense<0.000000e+00> : vector<98x2xf32>
    %64 = tpu.matmul %62, %63, %cst_44 {dimension_numbers = #tpu.dot_dimension_numbers<[1], [0], [0], [1], [0, 0, 1, 1], [], []>} : vector<98x9xf32>, vector<9x2xf32>, vector<98x2xf32> -> vector<98x2xf32>
    %65 = vector.broadcast %18 : vector<1x2xf32> to vector<98x2xf32>
    %66 = arith.mulf %64, %65 : vector<98x2xf32>
    %67 = vector.broadcast %21 : vector<1x2xf32> to vector<98x2xf32>
    %68 = arith.addf %66, %67 : vector<98x2xf32>
    %cst_45 = arith.constant 0.00999999977 : f32
    %69 = vector.broadcast %cst_45 : f32 to vector<98x2xf32>
    %70 = arith.mulf %69, %68 : vector<98x2xf32>
    %71 = arith.maximumf %68, %70 : vector<98x2xf32>
    %c2_46 = arith.constant 2 : index
    %c0_47 = arith.constant 0 : index
    %c0_48 = arith.constant 0 : index
    %72 = vector.load %arg2[%c2_46, %c0_47, %c0_48] : memref<9x98x1xf32, #tpu.memory_space<vmem>>, vector<1x98x1xf32>
    %73 = vector.shape_cast %72 : vector<1x98x1xf32> to vector<98x1xf32>
    %74 = vector.broadcast %73 : vector<98x1xf32> to vector<98x2xf32>
    %75 = arith.mulf %71, %74 : vector<98x2xf32>
    %c2_49 = arith.constant 2 : index
    %c0_50 = arith.constant 0 : index
    %c0_51 = arith.constant 0 : index
    %76 = vector.load %arg6[%c2_49, %c0_50, %c0_51] : memref<9x2x4xf32, #tpu.memory_space<vmem>>, vector<1x2x4xf32>
    %77 = vector.shape_cast %76 : vector<1x2x4xf32> to vector<2x4xf32>
    %cst_52 = arith.constant dense<0.000000e+00> : vector<98x4xf32>
    %78 = tpu.matmul %75, %77, %cst_52 {dimension_numbers = #tpu.dot_dimension_numbers<[1], [0], [0], [1], [0, 0, 1, 1], [], []>} : vector<98x2xf32>, vector<2x4xf32>, vector<98x4xf32> -> vector<98x4xf32>
    %79 = arith.addf %60, %78 : vector<98x4xf32>
    %c3 = arith.constant 3 : index
    %c0_53 = arith.constant 0 : index
    %c0_54 = arith.constant 0 : index
    %80 = vector.load %arg1[%c3, %c0_53, %c0_54] : memref<9x98x9xf32, #tpu.memory_space<vmem>>, vector<1x98x9xf32>
    %81 = vector.shape_cast %80 : vector<1x98x9xf32> to vector<98x9xf32>
    %c0_55 = arith.constant 0 : index
    %c0_56 = arith.constant 0 : index
    %82 = vector.load %arg3[%c0_55, %c0_56] : memref<9x2xf32, #tpu.memory_space<vmem>>, vector<9x2xf32>
    %cst_57 = arith.constant dense<0.000000e+00> : vector<98x2xf32>
    %83 = tpu.matmul %81, %82, %cst_57 {dimension_numbers = #tpu.dot_dimension_numbers<[1], [0], [0], [1], [0, 0, 1, 1], [], []>} : vector<98x9xf32>, vector<9x2xf32>, vector<98x2xf32> -> vector<98x2xf32>
    %84 = vector.broadcast %18 : vector<1x2xf32> to vector<98x2xf32>
    %85 = arith.mulf %83, %84 : vector<98x2xf32>
    %86 = vector.broadcast %21 : vector<1x2xf32> to vector<98x2xf32>
    %87 = arith.addf %85, %86 : vector<98x2xf32>
    %cst_58 = arith.constant 0.00999999977 : f32
    %88 = vector.broadcast %cst_58 : f32 to vector<98x2xf32>
    %89 = arith.mulf %88, %87 : vector<98x2xf32>
    %90 = arith.maximumf %87, %89 : vector<98x2xf32>
    %c3_59 = arith.constant 3 : index
    %c0_60 = arith.constant 0 : index
    %c0_61 = arith.constant 0 : index
    %91 = vector.load %arg2[%c3_59, %c0_60, %c0_61] : memref<9x98x1xf32, #tpu.memory_space<vmem>>, vector<1x98x1xf32>
    %92 = vector.shape_cast %91 : vector<1x98x1xf32> to vector<98x1xf32>
    %93 = vector.broadcast %92 : vector<98x1xf32> to vector<98x2xf32>
    %94 = arith.mulf %90, %93 : vector<98x2xf32>
    %c3_62 = arith.constant 3 : index
    %c0_63 = arith.constant 0 : index
    %c0_64 = arith.constant 0 : index
    %95 = vector.load %arg6[%c3_62, %c0_63, %c0_64] : memref<9x2x4xf32, #tpu.memory_space<vmem>>, vector<1x2x4xf32>
    %96 = vector.shape_cast %95 : vector<1x2x4xf32> to vector<2x4xf32>
    %cst_65 = arith.constant dense<0.000000e+00> : vector<98x4xf32>
    %97 = tpu.matmul %94, %96, %cst_65 {dimension_numbers = #tpu.dot_dimension_numbers<[1], [0], [0], [1], [0, 0, 1, 1], [], []>} : vector<98x2xf32>, vector<2x4xf32>, vector<98x4xf32> -> vector<98x4xf32>
    %98 = arith.addf %79, %97 : vector<98x4xf32>
    %c4 = arith.constant 4 : index
    %c0_66 = arith.constant 0 : index
    %c0_67 = arith.constant 0 : index
    %99 = vector.load %arg1[%c4, %c0_66, %c0_67] : memref<9x98x9xf32, #tpu.memory_space<vmem>>, vector<1x98x9xf32>
    %100 = vector.shape_cast %99 : vector<1x98x9xf32> to vector<98x9xf32>
    %c0_68 = arith.constant 0 : index
    %c0_69 = arith.constant 0 : index
    %101 = vector.load %arg3[%c0_68, %c0_69] : memref<9x2xf32, #tpu.memory_space<vmem>>, vector<9x2xf32>
    %cst_70 = arith.constant dense<0.000000e+00> : vector<98x2xf32>
    %102 = tpu.matmul %100, %101, %cst_70 {dimension_numbers = #tpu.dot_dimension_numbers<[1], [0], [0], [1], [0, 0, 1, 1], [], []>} : vector<98x9xf32>, vector<9x2xf32>, vector<98x2xf32> -> vector<98x2xf32>
    %103 = vector.broadcast %18 : vector<1x2xf32> to vector<98x2xf32>
    %104 = arith.mulf %102, %103 : vector<98x2xf32>
    %105 = vector.broadcast %21 : vector<1x2xf32> to vector<98x2xf32>
    %106 = arith.addf %104, %105 : vector<98x2xf32>
    %cst_71 = arith.constant 0.00999999977 : f32
    %107 = vector.broadcast %cst_71 : f32 to vector<98x2xf32>
    %108 = arith.mulf %107, %106 : vector<98x2xf32>
    %109 = arith.maximumf %106, %108 : vector<98x2xf32>
    %c4_72 = arith.constant 4 : index
    %c0_73 = arith.constant 0 : index
    %c0_74 = arith.constant 0 : index
    %110 = vector.load %arg2[%c4_72, %c0_73, %c0_74] : memref<9x98x1xf32, #tpu.memory_space<vmem>>, vector<1x98x1xf32>
    %111 = vector.shape_cast %110 : vector<1x98x1xf32> to vector<98x1xf32>
    %112 = vector.broadcast %111 : vector<98x1xf32> to vector<98x2xf32>
    %113 = arith.mulf %109, %112 : vector<98x2xf32>
    %c4_75 = arith.constant 4 : index
    %c0_76 = arith.constant 0 : index
    %c0_77 = arith.constant 0 : index
    %114 = vector.load %arg6[%c4_75, %c0_76, %c0_77] : memref<9x2x4xf32, #tpu.memory_space<vmem>>, vector<1x2x4xf32>
    %115 = vector.shape_cast %114 : vector<1x2x4xf32> to vector<2x4xf32>
    %cst_78 = arith.constant dense<0.000000e+00> : vector<98x4xf32>
    %116 = tpu.matmul %113, %115, %cst_78 {dimension_numbers = #tpu.dot_dimension_numbers<[1], [0], [0], [1], [0, 0, 1, 1], [], []>} : vector<98x2xf32>, vector<2x4xf32>, vector<98x4xf32> -> vector<98x4xf32>
    %117 = arith.addf %98, %116 : vector<98x4xf32>
    %c5 = arith.constant 5 : index
    %c0_79 = arith.constant 0 : index
    %c0_80 = arith.constant 0 : index
    %118 = vector.load %arg1[%c5, %c0_79, %c0_80] : memref<9x98x9xf32, #tpu.memory_space<vmem>>, vector<1x98x9xf32>
    %119 = vector.shape_cast %118 : vector<1x98x9xf32> to vector<98x9xf32>
    %c0_81 = arith.constant 0 : index
    %c0_82 = arith.constant 0 : index
    %120 = vector.load %arg3[%c0_81, %c0_82] : memref<9x2xf32, #tpu.memory_space<vmem>>, vector<9x2xf32>
    %cst_83 = arith.constant dense<0.000000e+00> : vector<98x2xf32>
    %121 = tpu.matmul %119, %120, %cst_83 {dimension_numbers = #tpu.dot_dimension_numbers<[1], [0], [0], [1], [0, 0, 1, 1], [], []>} : vector<98x9xf32>, vector<9x2xf32>, vector<98x2xf32> -> vector<98x2xf32>
    %122 = vector.broadcast %18 : vector<1x2xf32> to vector<98x2xf32>
    %123 = arith.mulf %121, %122 : vector<98x2xf32>
    %124 = vector.broadcast %21 : vector<1x2xf32> to vector<98x2xf32>
    %125 = arith.addf %123, %124 : vector<98x2xf32>
    %cst_84 = arith.constant 0.00999999977 : f32
    %126 = vector.broadcast %cst_84 : f32 to vector<98x2xf32>
    %127 = arith.mulf %126, %125 : vector<98x2xf32>
    %128 = arith.maximumf %125, %127 : vector<98x2xf32>
    %c5_85 = arith.constant 5 : index
    %c0_86 = arith.constant 0 : index
    %c0_87 = arith.constant 0 : index
    %129 = vector.load %arg2[%c5_85, %c0_86, %c0_87] : memref<9x98x1xf32, #tpu.memory_space<vmem>>, vector<1x98x1xf32>
    %130 = vector.shape_cast %129 : vector<1x98x1xf32> to vector<98x1xf32>
    %131 = vector.broadcast %130 : vector<98x1xf32> to vector<98x2xf32>
    %132 = arith.mulf %128, %131 : vector<98x2xf32>
    %c5_88 = arith.constant 5 : index
    %c0_89 = arith.constant 0 : index
    %c0_90 = arith.constant 0 : index
    %133 = vector.load %arg6[%c5_88, %c0_89, %c0_90] : memref<9x2x4xf32, #tpu.memory_space<vmem>>, vector<1x2x4xf32>
    %134 = vector.shape_cast %133 : vector<1x2x4xf32> to vector<2x4xf32>
    %cst_91 = arith.constant dense<0.000000e+00> : vector<98x4xf32>
    %135 = tpu.matmul %132, %134, %cst_91 {dimension_numbers = #tpu.dot_dimension_numbers<[1], [0], [0], [1], [0, 0, 1, 1], [], []>} : vector<98x2xf32>, vector<2x4xf32>, vector<98x4xf32> -> vector<98x4xf32>
    %136 = arith.addf %117, %135 : vector<98x4xf32>
    %c6 = arith.constant 6 : index
    %c0_92 = arith.constant 0 : index
    %c0_93 = arith.constant 0 : index
    %137 = vector.load %arg1[%c6, %c0_92, %c0_93] : memref<9x98x9xf32, #tpu.memory_space<vmem>>, vector<1x98x9xf32>
    %138 = vector.shape_cast %137 : vector<1x98x9xf32> to vector<98x9xf32>
    %c0_94 = arith.constant 0 : index
    %c0_95 = arith.constant 0 : index
    %139 = vector.load %arg3[%c0_94, %c0_95] : memref<9x2xf32, #tpu.memory_space<vmem>>, vector<9x2xf32>
    %cst_96 = arith.constant dense<0.000000e+00> : vector<98x2xf32>
    %140 = tpu.matmul %138, %139, %cst_96 {dimension_numbers = #tpu.dot_dimension_numbers<[1], [0], [0], [1], [0, 0, 1, 1], [], []>} : vector<98x9xf32>, vector<9x2xf32>, vector<98x2xf32> -> vector<98x2xf32>
    %141 = vector.broadcast %18 : vector<1x2xf32> to vector<98x2xf32>
    %142 = arith.mulf %140, %141 : vector<98x2xf32>
    %143 = vector.broadcast %21 : vector<1x2xf32> to vector<98x2xf32>
    %144 = arith.addf %142, %143 : vector<98x2xf32>
    %cst_97 = arith.constant 0.00999999977 : f32
    %145 = vector.broadcast %cst_97 : f32 to vector<98x2xf32>
    %146 = arith.mulf %145, %144 : vector<98x2xf32>
    %147 = arith.maximumf %144, %146 : vector<98x2xf32>
    %c6_98 = arith.constant 6 : index
    %c0_99 = arith.constant 0 : index
    %c0_100 = arith.constant 0 : index
    %148 = vector.load %arg2[%c6_98, %c0_99, %c0_100] : memref<9x98x1xf32, #tpu.memory_space<vmem>>, vector<1x98x1xf32>
    %149 = vector.shape_cast %148 : vector<1x98x1xf32> to vector<98x1xf32>
    %150 = vector.broadcast %149 : vector<98x1xf32> to vector<98x2xf32>
    %151 = arith.mulf %147, %150 : vector<98x2xf32>
    %c6_101 = arith.constant 6 : index
    %c0_102 = arith.constant 0 : index
    %c0_103 = arith.constant 0 : index
    %152 = vector.load %arg6[%c6_101, %c0_102, %c0_103] : memref<9x2x4xf32, #tpu.memory_space<vmem>>, vector<1x2x4xf32>
    %153 = vector.shape_cast %152 : vector<1x2x4xf32> to vector<2x4xf32>
    %cst_104 = arith.constant dense<0.000000e+00> : vector<98x4xf32>
    %154 = tpu.matmul %151, %153, %cst_104 {dimension_numbers = #tpu.dot_dimension_numbers<[1], [0], [0], [1], [0, 0, 1, 1], [], []>} : vector<98x2xf32>, vector<2x4xf32>, vector<98x4xf32> -> vector<98x4xf32>
    %155 = arith.addf %136, %154 : vector<98x4xf32>
    %c7 = arith.constant 7 : index
    %c0_105 = arith.constant 0 : index
    %c0_106 = arith.constant 0 : index
    %156 = vector.load %arg1[%c7, %c0_105, %c0_106] : memref<9x98x9xf32, #tpu.memory_space<vmem>>, vector<1x98x9xf32>
    %157 = vector.shape_cast %156 : vector<1x98x9xf32> to vector<98x9xf32>
    %c0_107 = arith.constant 0 : index
    %c0_108 = arith.constant 0 : index
    %158 = vector.load %arg3[%c0_107, %c0_108] : memref<9x2xf32, #tpu.memory_space<vmem>>, vector<9x2xf32>
    %cst_109 = arith.constant dense<0.000000e+00> : vector<98x2xf32>
    %159 = tpu.matmul %157, %158, %cst_109 {dimension_numbers = #tpu.dot_dimension_numbers<[1], [0], [0], [1], [0, 0, 1, 1], [], []>} : vector<98x9xf32>, vector<9x2xf32>, vector<98x2xf32> -> vector<98x2xf32>
    %160 = vector.broadcast %18 : vector<1x2xf32> to vector<98x2xf32>
    %161 = arith.mulf %159, %160 : vector<98x2xf32>
    %162 = vector.broadcast %21 : vector<1x2xf32> to vector<98x2xf32>
    %163 = arith.addf %161, %162 : vector<98x2xf32>
    %cst_110 = arith.constant 0.00999999977 : f32
    %164 = vector.broadcast %cst_110 : f32 to vector<98x2xf32>
    %165 = arith.mulf %164, %163 : vector<98x2xf32>
    %166 = arith.maximumf %163, %165 : vector<98x2xf32>
    %c7_111 = arith.constant 7 : index
    %c0_112 = arith.constant 0 : index
    %c0_113 = arith.constant 0 : index
    %167 = vector.load %arg2[%c7_111, %c0_112, %c0_113] : memref<9x98x1xf32, #tpu.memory_space<vmem>>, vector<1x98x1xf32>
    %168 = vector.shape_cast %167 : vector<1x98x1xf32> to vector<98x1xf32>
    %169 = vector.broadcast %168 : vector<98x1xf32> to vector<98x2xf32>
    %170 = arith.mulf %166, %169 : vector<98x2xf32>
    %c7_114 = arith.constant 7 : index
    %c0_115 = arith.constant 0 : index
    %c0_116 = arith.constant 0 : index
    %171 = vector.load %arg6[%c7_114, %c0_115, %c0_116] : memref<9x2x4xf32, #tpu.memory_space<vmem>>, vector<1x2x4xf32>
    %172 = vector.shape_cast %171 : vector<1x2x4xf32> to vector<2x4xf32>
    %cst_117 = arith.constant dense<0.000000e+00> : vector<98x4xf32>
    %173 = tpu.matmul %170, %172, %cst_117 {dimension_numbers = #tpu.dot_dimension_numbers<[1], [0], [0], [1], [0, 0, 1, 1], [], []>} : vector<98x2xf32>, vector<2x4xf32>, vector<98x4xf32> -> vector<98x4xf32>
    %174 = arith.addf %155, %173 : vector<98x4xf32>
    %c8 = arith.constant 8 : index
    %c0_118 = arith.constant 0 : index
    %c0_119 = arith.constant 0 : index
    %175 = vector.load %arg1[%c8, %c0_118, %c0_119] : memref<9x98x9xf32, #tpu.memory_space<vmem>>, vector<1x98x9xf32>
    %176 = vector.shape_cast %175 : vector<1x98x9xf32> to vector<98x9xf32>
    %c0_120 = arith.constant 0 : index
    %c0_121 = arith.constant 0 : index
    %177 = vector.load %arg3[%c0_120, %c0_121] : memref<9x2xf32, #tpu.memory_space<vmem>>, vector<9x2xf32>
    %cst_122 = arith.constant dense<0.000000e+00> : vector<98x2xf32>
    %178 = tpu.matmul %176, %177, %cst_122 {dimension_numbers = #tpu.dot_dimension_numbers<[1], [0], [0], [1], [0, 0, 1, 1], [], []>} : vector<98x9xf32>, vector<9x2xf32>, vector<98x2xf32> -> vector<98x2xf32>
    %179 = vector.broadcast %18 : vector<1x2xf32> to vector<98x2xf32>
    %180 = arith.mulf %178, %179 : vector<98x2xf32>
    %181 = vector.broadcast %21 : vector<1x2xf32> to vector<98x2xf32>
    %182 = arith.addf %180, %181 : vector<98x2xf32>
    %cst_123 = arith.constant 0.00999999977 : f32
    %183 = vector.broadcast %cst_123 : f32 to vector<98x2xf32>
    %184 = arith.mulf %183, %182 : vector<98x2xf32>
    %185 = arith.maximumf %182, %184 : vector<98x2xf32>
    %c8_124 = arith.constant 8 : index
    %c0_125 = arith.constant 0 : index
    %c0_126 = arith.constant 0 : index
    %186 = vector.load %arg2[%c8_124, %c0_125, %c0_126] : memref<9x98x1xf32, #tpu.memory_space<vmem>>, vector<1x98x1xf32>
    %187 = vector.shape_cast %186 : vector<1x98x1xf32> to vector<98x1xf32>
    %188 = vector.broadcast %187 : vector<98x1xf32> to vector<98x2xf32>
    %189 = arith.mulf %185, %188 : vector<98x2xf32>
    %c8_127 = arith.constant 8 : index
    %c0_128 = arith.constant 0 : index
    %c0_129 = arith.constant 0 : index
    %190 = vector.load %arg6[%c8_127, %c0_128, %c0_129] : memref<9x2x4xf32, #tpu.memory_space<vmem>>, vector<1x2x4xf32>
    %191 = vector.shape_cast %190 : vector<1x2x4xf32> to vector<2x4xf32>
    %cst_130 = arith.constant dense<0.000000e+00> : vector<98x4xf32>
    %192 = tpu.matmul %189, %191, %cst_130 {dimension_numbers = #tpu.dot_dimension_numbers<[1], [0], [0], [1], [0, 0, 1, 1], [], []>} : vector<98x2xf32>, vector<2x4xf32>, vector<98x4xf32> -> vector<98x4xf32>
    %193 = arith.addf %174, %192 : vector<98x4xf32>
    %cst_131 = arith.constant dense<0.000000e+00> : vector<4xf32>
    %194 = vector.multi_reduction <add>, %193, %cst_131 [0] : vector<98x4xf32> to vector<4xf32>
    %195 = vector.shape_cast %194 : vector<4xf32> to vector<1x4xf32>
    %cst_132 = arith.constant 9.800000e+01 : f32
    %196 = vector.broadcast %cst_132 : f32 to vector<1x4xf32>
    %197 = arith.divf %195, %196 : vector<1x4xf32>
    %198 = vector.broadcast %197 : vector<1x4xf32> to vector<98x4xf32>
    %199 = arith.subf %193, %198 : vector<98x4xf32>
    %200 = arith.mulf %199, %199 : vector<98x4xf32>
    %cst_133 = arith.constant dense<0.000000e+00> : vector<4xf32>
    %201 = vector.multi_reduction <add>, %200, %cst_133 [0] : vector<98x4xf32> to vector<4xf32>
    %202 = vector.shape_cast %201 : vector<4xf32> to vector<1x4xf32>
    %cst_134 = arith.constant 9.800000e+01 : f32
    %203 = vector.broadcast %cst_134 : f32 to vector<1x4xf32>
    %204 = arith.divf %202, %203 : vector<1x4xf32>
    %c0_135 = arith.constant 0 : index
    %c0_136 = arith.constant 0 : index
    %205 = vector.load %arg7[%c0_135, %c0_136] : memref<1x4xf32, #tpu.memory_space<vmem>>, vector<1x4xf32>
    %cst_137 = arith.constant 9.99999974E-6 : f32
    %206 = vector.broadcast %cst_137 : f32 to vector<1x4xf32>
    %207 = arith.addf %204, %206 : vector<1x4xf32>
    %208 = math.rsqrt %207 : vector<1x4xf32>
    %209 = arith.mulf %205, %208 : vector<1x4xf32>
    %c0_138 = arith.constant 0 : index
    %c0_139 = arith.constant 0 : index
    %210 = vector.load %arg8[%c0_138, %c0_139] : memref<1x4xf32, #tpu.memory_space<vmem>>, vector<1x4xf32>
    %211 = arith.mulf %197, %209 : vector<1x4xf32>
    %212 = arith.subf %210, %211 : vector<1x4xf32>
    %213 = vector.broadcast %209 : vector<1x4xf32> to vector<98x4xf32>
    %214 = arith.mulf %193, %213 : vector<98x4xf32>
    %215 = vector.broadcast %212 : vector<1x4xf32> to vector<98x4xf32>
    %216 = arith.addf %214, %215 : vector<98x4xf32>
    %cst_140 = arith.constant 0.00999999977 : f32
    %217 = vector.broadcast %cst_140 : f32 to vector<98x4xf32>
    %218 = arith.mulf %217, %216 : vector<98x4xf32>
    %219 = arith.maximumf %216, %218 : vector<98x4xf32>
    %cst_141 = arith.constant 0.000000e+00 : f32
    %220 = vector.broadcast %cst_141 : f32 to vector<2x128xf32>
    %c0_142 = arith.constant 0 : index
    %c0_143 = arith.constant 0 : index
    %221 = vector.load %arg10[%c0_142, %c0_143] : memref<1x128xf32, #tpu.memory_space<vmem>>, vector<1x128xf32>
    %222 = vector.broadcast %221 : vector<1x128xf32> to vector<2x128xf32>
    %223 = arith.addf %220, %222 : vector<2x128xf32>
    %224 = vector.extract_strided_slice %219 {offsets = [0, 0], sizes = [2, 4], strides = [1, 1]} : vector<98x4xf32> to vector<2x4xf32>
    %c0_144 = arith.constant 0 : index
    %c0_145 = arith.constant 0 : index
    %c0_146 = arith.constant 0 : index
    %225 = vector.load %arg9[%c0_144, %c0_145, %c0_146] : memref<49x4x128xf32, #tpu.memory_space<vmem>>, vector<1x4x128xf32>
    %226 = vector.shape_cast %225 : vector<1x4x128xf32> to vector<4x128xf32>
    %cst_147 = arith.constant dense<0.000000e+00> : vector<2x128xf32>
    %227 = tpu.matmul %224, %226, %cst_147 {dimension_numbers = #tpu.dot_dimension_numbers<[1], [0], [0], [1], [0, 0, 1, 1], [], []>} : vector<2x4xf32>, vector<4x128xf32>, vector<2x128xf32> -> vector<2x128xf32>
    %228 = arith.addf %223, %227 : vector<2x128xf32>
    %229 = vector.extract_strided_slice %219 {offsets = [2, 0], sizes = [2, 4], strides = [1, 1]} : vector<98x4xf32> to vector<2x4xf32>
    %c1_148 = arith.constant 1 : index
    %c0_149 = arith.constant 0 : index
    %c0_150 = arith.constant 0 : index
    %230 = vector.load %arg9[%c1_148, %c0_149, %c0_150] : memref<49x4x128xf32, #tpu.memory_space<vmem>>, vector<1x4x128xf32>
    %231 = vector.shape_cast %230 : vector<1x4x128xf32> to vector<4x128xf32>
    %cst_151 = arith.constant dense<0.000000e+00> : vector<2x128xf32>
    %232 = tpu.matmul %229, %231, %cst_151 {dimension_numbers = #tpu.dot_dimension_numbers<[1], [0], [0], [1], [0, 0, 1, 1], [], []>} : vector<2x4xf32>, vector<4x128xf32>, vector<2x128xf32> -> vector<2x128xf32>
    %233 = arith.addf %228, %232 : vector<2x128xf32>
    %234 = vector.extract_strided_slice %219 {offsets = [4, 0], sizes = [2, 4], strides = [1, 1]} : vector<98x4xf32> to vector<2x4xf32>
    %c2_152 = arith.constant 2 : index
    %c0_153 = arith.constant 0 : index
    %c0_154 = arith.constant 0 : index
    %235 = vector.load %arg9[%c2_152, %c0_153, %c0_154] : memref<49x4x128xf32, #tpu.memory_space<vmem>>, vector<1x4x128xf32>
    %236 = vector.shape_cast %235 : vector<1x4x128xf32> to vector<4x128xf32>
    %cst_155 = arith.constant dense<0.000000e+00> : vector<2x128xf32>
    %237 = tpu.matmul %234, %236, %cst_155 {dimension_numbers = #tpu.dot_dimension_numbers<[1], [0], [0], [1], [0, 0, 1, 1], [], []>} : vector<2x4xf32>, vector<4x128xf32>, vector<2x128xf32> -> vector<2x128xf32>
    %238 = arith.addf %233, %237 : vector<2x128xf32>
    %239 = vector.extract_strided_slice %219 {offsets = [6, 0], sizes = [2, 4], strides = [1, 1]} : vector<98x4xf32> to vector<2x4xf32>
    %c3_156 = arith.constant 3 : index
    %c0_157 = arith.constant 0 : index
    %c0_158 = arith.constant 0 : index
    %240 = vector.load %arg9[%c3_156, %c0_157, %c0_158] : memref<49x4x128xf32, #tpu.memory_space<vmem>>, vector<1x4x128xf32>
    %241 = vector.shape_cast %240 : vector<1x4x128xf32> to vector<4x128xf32>
    %cst_159 = arith.constant dense<0.000000e+00> : vector<2x128xf32>
    %242 = tpu.matmul %239, %241, %cst_159 {dimension_numbers = #tpu.dot_dimension_numbers<[1], [0], [0], [1], [0, 0, 1, 1], [], []>} : vector<2x4xf32>, vector<4x128xf32>, vector<2x128xf32> -> vector<2x128xf32>
    %243 = arith.addf %238, %242 : vector<2x128xf32>
    %244 = vector.extract_strided_slice %219 {offsets = [8, 0], sizes = [2, 4], strides = [1, 1]} : vector<98x4xf32> to vector<2x4xf32>
    %c4_160 = arith.constant 4 : index
    %c0_161 = arith.constant 0 : index
    %c0_162 = arith.constant 0 : index
    %245 = vector.load %arg9[%c4_160, %c0_161, %c0_162] : memref<49x4x128xf32, #tpu.memory_space<vmem>>, vector<1x4x128xf32>
    %246 = vector.shape_cast %245 : vector<1x4x128xf32> to vector<4x128xf32>
    %cst_163 = arith.constant dense<0.000000e+00> : vector<2x128xf32>
    %247 = tpu.matmul %244, %246, %cst_163 {dimension_numbers = #tpu.dot_dimension_numbers<[1], [0], [0], [1], [0, 0, 1, 1], [], []>} : vector<2x4xf32>, vector<4x128xf32>, vector<2x128xf32> -> vector<2x128xf32>
    %248 = arith.addf %243, %247 : vector<2x128xf32>
    %249 = vector.extract_strided_slice %219 {offsets = [10, 0], sizes = [2, 4], strides = [1, 1]} : vector<98x4xf32> to vector<2x4xf32>
    %c5_164 = arith.constant 5 : index
    %c0_165 = arith.constant 0 : index
    %c0_166 = arith.constant 0 : index
    %250 = vector.load %arg9[%c5_164, %c0_165, %c0_166] : memref<49x4x128xf32, #tpu.memory_space<vmem>>, vector<1x4x128xf32>
    %251 = vector.shape_cast %250 : vector<1x4x128xf32> to vector<4x128xf32>
    %cst_167 = arith.constant dense<0.000000e+00> : vector<2x128xf32>
    %252 = tpu.matmul %249, %251, %cst_167 {dimension_numbers = #tpu.dot_dimension_numbers<[1], [0], [0], [1], [0, 0, 1, 1], [], []>} : vector<2x4xf32>, vector<4x128xf32>, vector<2x128xf32> -> vector<2x128xf32>
    %253 = arith.addf %248, %252 : vector<2x128xf32>
    %254 = vector.extract_strided_slice %219 {offsets = [12, 0], sizes = [2, 4], strides = [1, 1]} : vector<98x4xf32> to vector<2x4xf32>
    %c6_168 = arith.constant 6 : index
    %c0_169 = arith.constant 0 : index
    %c0_170 = arith.constant 0 : index
    %255 = vector.load %arg9[%c6_168, %c0_169, %c0_170] : memref<49x4x128xf32, #tpu.memory_space<vmem>>, vector<1x4x128xf32>
    %256 = vector.shape_cast %255 : vector<1x4x128xf32> to vector<4x128xf32>
    %cst_171 = arith.constant dense<0.000000e+00> : vector<2x128xf32>
    %257 = tpu.matmul %254, %256, %cst_171 {dimension_numbers = #tpu.dot_dimension_numbers<[1], [0], [0], [1], [0, 0, 1, 1], [], []>} : vector<2x4xf32>, vector<4x128xf32>, vector<2x128xf32> -> vector<2x128xf32>
    %258 = arith.addf %253, %257 : vector<2x128xf32>
    %259 = vector.extract_strided_slice %219 {offsets = [14, 0], sizes = [2, 4], strides = [1, 1]} : vector<98x4xf32> to vector<2x4xf32>
    %c7_172 = arith.constant 7 : index
    %c0_173 = arith.constant 0 : index
    %c0_174 = arith.constant 0 : index
    %260 = vector.load %arg9[%c7_172, %c0_173, %c0_174] : memref<49x4x128xf32, #tpu.memory_space<vmem>>, vector<1x4x128xf32>
    %261 = vector.shape_cast %260 : vector<1x4x128xf32> to vector<4x128xf32>
    %cst_175 = arith.constant dense<0.000000e+00> : vector<2x128xf32>
    %262 = tpu.matmul %259, %261, %cst_175 {dimension_numbers = #tpu.dot_dimension_numbers<[1], [0], [0], [1], [0, 0, 1, 1], [], []>} : vector<2x4xf32>, vector<4x128xf32>, vector<2x128xf32> -> vector<2x128xf32>
    %263 = arith.addf %258, %262 : vector<2x128xf32>
    %264 = vector.extract_strided_slice %219 {offsets = [16, 0], sizes = [2, 4], strides = [1, 1]} : vector<98x4xf32> to vector<2x4xf32>
    %c8_176 = arith.constant 8 : index
    %c0_177 = arith.constant 0 : index
    %c0_178 = arith.constant 0 : index
    %265 = vector.load %arg9[%c8_176, %c0_177, %c0_178] : memref<49x4x128xf32, #tpu.memory_space<vmem>>, vector<1x4x128xf32>
    %266 = vector.shape_cast %265 : vector<1x4x128xf32> to vector<4x128xf32>
    %cst_179 = arith.constant dense<0.000000e+00> : vector<2x128xf32>
    %267 = tpu.matmul %264, %266, %cst_179 {dimension_numbers = #tpu.dot_dimension_numbers<[1], [0], [0], [1], [0, 0, 1, 1], [], []>} : vector<2x4xf32>, vector<4x128xf32>, vector<2x128xf32> -> vector<2x128xf32>
    %268 = arith.addf %263, %267 : vector<2x128xf32>
    %269 = vector.extract_strided_slice %219 {offsets = [18, 0], sizes = [2, 4], strides = [1, 1]} : vector<98x4xf32> to vector<2x4xf32>
    %c9 = arith.constant 9 : index
    %c0_180 = arith.constant 0 : index
    %c0_181 = arith.constant 0 : index
    %270 = vector.load %arg9[%c9, %c0_180, %c0_181] : memref<49x4x128xf32, #tpu.memory_space<vmem>>, vector<1x4x128xf32>
    %271 = vector.shape_cast %270 : vector<1x4x128xf32> to vector<4x128xf32>
    %cst_182 = arith.constant dense<0.000000e+00> : vector<2x128xf32>
    %272 = tpu.matmul %269, %271, %cst_182 {dimension_numbers = #tpu.dot_dimension_numbers<[1], [0], [0], [1], [0, 0, 1, 1], [], []>} : vector<2x4xf32>, vector<4x128xf32>, vector<2x128xf32> -> vector<2x128xf32>
    %273 = arith.addf %268, %272 : vector<2x128xf32>
    %274 = vector.extract_strided_slice %219 {offsets = [20, 0], sizes = [2, 4], strides = [1, 1]} : vector<98x4xf32> to vector<2x4xf32>
    %c10 = arith.constant 10 : index
    %c0_183 = arith.constant 0 : index
    %c0_184 = arith.constant 0 : index
    %275 = vector.load %arg9[%c10, %c0_183, %c0_184] : memref<49x4x128xf32, #tpu.memory_space<vmem>>, vector<1x4x128xf32>
    %276 = vector.shape_cast %275 : vector<1x4x128xf32> to vector<4x128xf32>
    %cst_185 = arith.constant dense<0.000000e+00> : vector<2x128xf32>
    %277 = tpu.matmul %274, %276, %cst_185 {dimension_numbers = #tpu.dot_dimension_numbers<[1], [0], [0], [1], [0, 0, 1, 1], [], []>} : vector<2x4xf32>, vector<4x128xf32>, vector<2x128xf32> -> vector<2x128xf32>
    %278 = arith.addf %273, %277 : vector<2x128xf32>
    %279 = vector.extract_strided_slice %219 {offsets = [22, 0], sizes = [2, 4], strides = [1, 1]} : vector<98x4xf32> to vector<2x4xf32>
    %c11 = arith.constant 11 : index
    %c0_186 = arith.constant 0 : index
    %c0_187 = arith.constant 0 : index
    %280 = vector.load %arg9[%c11, %c0_186, %c0_187] : memref<49x4x128xf32, #tpu.memory_space<vmem>>, vector<1x4x128xf32>
    %281 = vector.shape_cast %280 : vector<1x4x128xf32> to vector<4x128xf32>
    %cst_188 = arith.constant dense<0.000000e+00> : vector<2x128xf32>
    %282 = tpu.matmul %279, %281, %cst_188 {dimension_numbers = #tpu.dot_dimension_numbers<[1], [0], [0], [1], [0, 0, 1, 1], [], []>} : vector<2x4xf32>, vector<4x128xf32>, vector<2x128xf32> -> vector<2x128xf32>
    %283 = arith.addf %278, %282 : vector<2x128xf32>
    %284 = vector.extract_strided_slice %219 {offsets = [24, 0], sizes = [2, 4], strides = [1, 1]} : vector<98x4xf32> to vector<2x4xf32>
    %c12 = arith.constant 12 : index
    %c0_189 = arith.constant 0 : index
    %c0_190 = arith.constant 0 : index
    %285 = vector.load %arg9[%c12, %c0_189, %c0_190] : memref<49x4x128xf32, #tpu.memory_space<vmem>>, vector<1x4x128xf32>
    %286 = vector.shape_cast %285 : vector<1x4x128xf32> to vector<4x128xf32>
    %cst_191 = arith.constant dense<0.000000e+00> : vector<2x128xf32>
    %287 = tpu.matmul %284, %286, %cst_191 {dimension_numbers = #tpu.dot_dimension_numbers<[1], [0], [0], [1], [0, 0, 1, 1], [], []>} : vector<2x4xf32>, vector<4x128xf32>, vector<2x128xf32> -> vector<2x128xf32>
    %288 = arith.addf %283, %287 : vector<2x128xf32>
    %289 = vector.extract_strided_slice %219 {offsets = [26, 0], sizes = [2, 4], strides = [1, 1]} : vector<98x4xf32> to vector<2x4xf32>
    %c13 = arith.constant 13 : index
    %c0_192 = arith.constant 0 : index
    %c0_193 = arith.constant 0 : index
    %290 = vector.load %arg9[%c13, %c0_192, %c0_193] : memref<49x4x128xf32, #tpu.memory_space<vmem>>, vector<1x4x128xf32>
    %291 = vector.shape_cast %290 : vector<1x4x128xf32> to vector<4x128xf32>
    %cst_194 = arith.constant dense<0.000000e+00> : vector<2x128xf32>
    %292 = tpu.matmul %289, %291, %cst_194 {dimension_numbers = #tpu.dot_dimension_numbers<[1], [0], [0], [1], [0, 0, 1, 1], [], []>} : vector<2x4xf32>, vector<4x128xf32>, vector<2x128xf32> -> vector<2x128xf32>
    %293 = arith.addf %288, %292 : vector<2x128xf32>
    %294 = vector.extract_strided_slice %219 {offsets = [28, 0], sizes = [2, 4], strides = [1, 1]} : vector<98x4xf32> to vector<2x4xf32>
    %c14 = arith.constant 14 : index
    %c0_195 = arith.constant 0 : index
    %c0_196 = arith.constant 0 : index
    %295 = vector.load %arg9[%c14, %c0_195, %c0_196] : memref<49x4x128xf32, #tpu.memory_space<vmem>>, vector<1x4x128xf32>
    %296 = vector.shape_cast %295 : vector<1x4x128xf32> to vector<4x128xf32>
    %cst_197 = arith.constant dense<0.000000e+00> : vector<2x128xf32>
    %297 = tpu.matmul %294, %296, %cst_197 {dimension_numbers = #tpu.dot_dimension_numbers<[1], [0], [0], [1], [0, 0, 1, 1], [], []>} : vector<2x4xf32>, vector<4x128xf32>, vector<2x128xf32> -> vector<2x128xf32>
    %298 = arith.addf %293, %297 : vector<2x128xf32>
    %299 = vector.extract_strided_slice %219 {offsets = [30, 0], sizes = [2, 4], strides = [1, 1]} : vector<98x4xf32> to vector<2x4xf32>
    %c15 = arith.constant 15 : index
    %c0_198 = arith.constant 0 : index
    %c0_199 = arith.constant 0 : index
    %300 = vector.load %arg9[%c15, %c0_198, %c0_199] : memref<49x4x128xf32, #tpu.memory_space<vmem>>, vector<1x4x128xf32>
    %301 = vector.shape_cast %300 : vector<1x4x128xf32> to vector<4x128xf32>
    %cst_200 = arith.constant dense<0.000000e+00> : vector<2x128xf32>
    %302 = tpu.matmul %299, %301, %cst_200 {dimension_numbers = #tpu.dot_dimension_numbers<[1], [0], [0], [1], [0, 0, 1, 1], [], []>} : vector<2x4xf32>, vector<4x128xf32>, vector<2x128xf32> -> vector<2x128xf32>
    %303 = arith.addf %298, %302 : vector<2x128xf32>
    %304 = vector.extract_strided_slice %219 {offsets = [32, 0], sizes = [2, 4], strides = [1, 1]} : vector<98x4xf32> to vector<2x4xf32>
    %c16 = arith.constant 16 : index
    %c0_201 = arith.constant 0 : index
    %c0_202 = arith.constant 0 : index
    %305 = vector.load %arg9[%c16, %c0_201, %c0_202] : memref<49x4x128xf32, #tpu.memory_space<vmem>>, vector<1x4x128xf32>
    %306 = vector.shape_cast %305 : vector<1x4x128xf32> to vector<4x128xf32>
    %cst_203 = arith.constant dense<0.000000e+00> : vector<2x128xf32>
    %307 = tpu.matmul %304, %306, %cst_203 {dimension_numbers = #tpu.dot_dimension_numbers<[1], [0], [0], [1], [0, 0, 1, 1], [], []>} : vector<2x4xf32>, vector<4x128xf32>, vector<2x128xf32> -> vector<2x128xf32>
    %308 = arith.addf %303, %307 : vector<2x128xf32>
    %309 = vector.extract_strided_slice %219 {offsets = [34, 0], sizes = [2, 4], strides = [1, 1]} : vector<98x4xf32> to vector<2x4xf32>
    %c17 = arith.constant 17 : index
    %c0_204 = arith.constant 0 : index
    %c0_205 = arith.constant 0 : index
    %310 = vector.load %arg9[%c17, %c0_204, %c0_205] : memref<49x4x128xf32, #tpu.memory_space<vmem>>, vector<1x4x128xf32>
    %311 = vector.shape_cast %310 : vector<1x4x128xf32> to vector<4x128xf32>
    %cst_206 = arith.constant dense<0.000000e+00> : vector<2x128xf32>
    %312 = tpu.matmul %309, %311, %cst_206 {dimension_numbers = #tpu.dot_dimension_numbers<[1], [0], [0], [1], [0, 0, 1, 1], [], []>} : vector<2x4xf32>, vector<4x128xf32>, vector<2x128xf32> -> vector<2x128xf32>
    %313 = arith.addf %308, %312 : vector<2x128xf32>
    %314 = vector.extract_strided_slice %219 {offsets = [36, 0], sizes = [2, 4], strides = [1, 1]} : vector<98x4xf32> to vector<2x4xf32>
    %c18 = arith.constant 18 : index
    %c0_207 = arith.constant 0 : index
    %c0_208 = arith.constant 0 : index
    %315 = vector.load %arg9[%c18, %c0_207, %c0_208] : memref<49x4x128xf32, #tpu.memory_space<vmem>>, vector<1x4x128xf32>
    %316 = vector.shape_cast %315 : vector<1x4x128xf32> to vector<4x128xf32>
    %cst_209 = arith.constant dense<0.000000e+00> : vector<2x128xf32>
    %317 = tpu.matmul %314, %316, %cst_209 {dimension_numbers = #tpu.dot_dimension_numbers<[1], [0], [0], [1], [0, 0, 1, 1], [], []>} : vector<2x4xf32>, vector<4x128xf32>, vector<2x128xf32> -> vector<2x128xf32>
    %318 = arith.addf %313, %317 : vector<2x128xf32>
    %319 = vector.extract_strided_slice %219 {offsets = [38, 0], sizes = [2, 4], strides = [1, 1]} : vector<98x4xf32> to vector<2x4xf32>
    %c19 = arith.constant 19 : index
    %c0_210 = arith.constant 0 : index
    %c0_211 = arith.constant 0 : index
    %320 = vector.load %arg9[%c19, %c0_210, %c0_211] : memref<49x4x128xf32, #tpu.memory_space<vmem>>, vector<1x4x128xf32>
    %321 = vector.shape_cast %320 : vector<1x4x128xf32> to vector<4x128xf32>
    %cst_212 = arith.constant dense<0.000000e+00> : vector<2x128xf32>
    %322 = tpu.matmul %319, %321, %cst_212 {dimension_numbers = #tpu.dot_dimension_numbers<[1], [0], [0], [1], [0, 0, 1, 1], [], []>} : vector<2x4xf32>, vector<4x128xf32>, vector<2x128xf32> -> vector<2x128xf32>
    %323 = arith.addf %318, %322 : vector<2x128xf32>
    %324 = vector.extract_strided_slice %219 {offsets = [40, 0], sizes = [2, 4], strides = [1, 1]} : vector<98x4xf32> to vector<2x4xf32>
    %c20 = arith.constant 20 : index
    %c0_213 = arith.constant 0 : index
    %c0_214 = arith.constant 0 : index
    %325 = vector.load %arg9[%c20, %c0_213, %c0_214] : memref<49x4x128xf32, #tpu.memory_space<vmem>>, vector<1x4x128xf32>
    %326 = vector.shape_cast %325 : vector<1x4x128xf32> to vector<4x128xf32>
    %cst_215 = arith.constant dense<0.000000e+00> : vector<2x128xf32>
    %327 = tpu.matmul %324, %326, %cst_215 {dimension_numbers = #tpu.dot_dimension_numbers<[1], [0], [0], [1], [0, 0, 1, 1], [], []>} : vector<2x4xf32>, vector<4x128xf32>, vector<2x128xf32> -> vector<2x128xf32>
    %328 = arith.addf %323, %327 : vector<2x128xf32>
    %329 = vector.extract_strided_slice %219 {offsets = [42, 0], sizes = [2, 4], strides = [1, 1]} : vector<98x4xf32> to vector<2x4xf32>
    %c21 = arith.constant 21 : index
    %c0_216 = arith.constant 0 : index
    %c0_217 = arith.constant 0 : index
    %330 = vector.load %arg9[%c21, %c0_216, %c0_217] : memref<49x4x128xf32, #tpu.memory_space<vmem>>, vector<1x4x128xf32>
    %331 = vector.shape_cast %330 : vector<1x4x128xf32> to vector<4x128xf32>
    %cst_218 = arith.constant dense<0.000000e+00> : vector<2x128xf32>
    %332 = tpu.matmul %329, %331, %cst_218 {dimension_numbers = #tpu.dot_dimension_numbers<[1], [0], [0], [1], [0, 0, 1, 1], [], []>} : vector<2x4xf32>, vector<4x128xf32>, vector<2x128xf32> -> vector<2x128xf32>
    %333 = arith.addf %328, %332 : vector<2x128xf32>
    %334 = vector.extract_strided_slice %219 {offsets = [44, 0], sizes = [2, 4], strides = [1, 1]} : vector<98x4xf32> to vector<2x4xf32>
    %c22 = arith.constant 22 : index
    %c0_219 = arith.constant 0 : index
    %c0_220 = arith.constant 0 : index
    %335 = vector.load %arg9[%c22, %c0_219, %c0_220] : memref<49x4x128xf32, #tpu.memory_space<vmem>>, vector<1x4x128xf32>
    %336 = vector.shape_cast %335 : vector<1x4x128xf32> to vector<4x128xf32>
    %cst_221 = arith.constant dense<0.000000e+00> : vector<2x128xf32>
    %337 = tpu.matmul %334, %336, %cst_221 {dimension_numbers = #tpu.dot_dimension_numbers<[1], [0], [0], [1], [0, 0, 1, 1], [], []>} : vector<2x4xf32>, vector<4x128xf32>, vector<2x128xf32> -> vector<2x128xf32>
    %338 = arith.addf %333, %337 : vector<2x128xf32>
    %339 = vector.extract_strided_slice %219 {offsets = [46, 0], sizes = [2, 4], strides = [1, 1]} : vector<98x4xf32> to vector<2x4xf32>
    %c23 = arith.constant 23 : index
    %c0_222 = arith.constant 0 : index
    %c0_223 = arith.constant 0 : index
    %340 = vector.load %arg9[%c23, %c0_222, %c0_223] : memref<49x4x128xf32, #tpu.memory_space<vmem>>, vector<1x4x128xf32>
    %341 = vector.shape_cast %340 : vector<1x4x128xf32> to vector<4x128xf32>
    %cst_224 = arith.constant dense<0.000000e+00> : vector<2x128xf32>
    %342 = tpu.matmul %339, %341, %cst_224 {dimension_numbers = #tpu.dot_dimension_numbers<[1], [0], [0], [1], [0, 0, 1, 1], [], []>} : vector<2x4xf32>, vector<4x128xf32>, vector<2x128xf32> -> vector<2x128xf32>
    %343 = arith.addf %338, %342 : vector<2x128xf32>
    %344 = vector.extract_strided_slice %219 {offsets = [48, 0], sizes = [2, 4], strides = [1, 1]} : vector<98x4xf32> to vector<2x4xf32>
    %c24 = arith.constant 24 : index
    %c0_225 = arith.constant 0 : index
    %c0_226 = arith.constant 0 : index
    %345 = vector.load %arg9[%c24, %c0_225, %c0_226] : memref<49x4x128xf32, #tpu.memory_space<vmem>>, vector<1x4x128xf32>
    %346 = vector.shape_cast %345 : vector<1x4x128xf32> to vector<4x128xf32>
    %cst_227 = arith.constant dense<0.000000e+00> : vector<2x128xf32>
    %347 = tpu.matmul %344, %346, %cst_227 {dimension_numbers = #tpu.dot_dimension_numbers<[1], [0], [0], [1], [0, 0, 1, 1], [], []>} : vector<2x4xf32>, vector<4x128xf32>, vector<2x128xf32> -> vector<2x128xf32>
    %348 = arith.addf %343, %347 : vector<2x128xf32>
    %349 = vector.extract_strided_slice %219 {offsets = [50, 0], sizes = [2, 4], strides = [1, 1]} : vector<98x4xf32> to vector<2x4xf32>
    %c25 = arith.constant 25 : index
    %c0_228 = arith.constant 0 : index
    %c0_229 = arith.constant 0 : index
    %350 = vector.load %arg9[%c25, %c0_228, %c0_229] : memref<49x4x128xf32, #tpu.memory_space<vmem>>, vector<1x4x128xf32>
    %351 = vector.shape_cast %350 : vector<1x4x128xf32> to vector<4x128xf32>
    %cst_230 = arith.constant dense<0.000000e+00> : vector<2x128xf32>
    %352 = tpu.matmul %349, %351, %cst_230 {dimension_numbers = #tpu.dot_dimension_numbers<[1], [0], [0], [1], [0, 0, 1, 1], [], []>} : vector<2x4xf32>, vector<4x128xf32>, vector<2x128xf32> -> vector<2x128xf32>
    %353 = arith.addf %348, %352 : vector<2x128xf32>
    %354 = vector.extract_strided_slice %219 {offsets = [52, 0], sizes = [2, 4], strides = [1, 1]} : vector<98x4xf32> to vector<2x4xf32>
    %c26 = arith.constant 26 : index
    %c0_231 = arith.constant 0 : index
    %c0_232 = arith.constant 0 : index
    %355 = vector.load %arg9[%c26, %c0_231, %c0_232] : memref<49x4x128xf32, #tpu.memory_space<vmem>>, vector<1x4x128xf32>
    %356 = vector.shape_cast %355 : vector<1x4x128xf32> to vector<4x128xf32>
    %cst_233 = arith.constant dense<0.000000e+00> : vector<2x128xf32>
    %357 = tpu.matmul %354, %356, %cst_233 {dimension_numbers = #tpu.dot_dimension_numbers<[1], [0], [0], [1], [0, 0, 1, 1], [], []>} : vector<2x4xf32>, vector<4x128xf32>, vector<2x128xf32> -> vector<2x128xf32>
    %358 = arith.addf %353, %357 : vector<2x128xf32>
    %359 = vector.extract_strided_slice %219 {offsets = [54, 0], sizes = [2, 4], strides = [1, 1]} : vector<98x4xf32> to vector<2x4xf32>
    %c27 = arith.constant 27 : index
    %c0_234 = arith.constant 0 : index
    %c0_235 = arith.constant 0 : index
    %360 = vector.load %arg9[%c27, %c0_234, %c0_235] : memref<49x4x128xf32, #tpu.memory_space<vmem>>, vector<1x4x128xf32>
    %361 = vector.shape_cast %360 : vector<1x4x128xf32> to vector<4x128xf32>
    %cst_236 = arith.constant dense<0.000000e+00> : vector<2x128xf32>
    %362 = tpu.matmul %359, %361, %cst_236 {dimension_numbers = #tpu.dot_dimension_numbers<[1], [0], [0], [1], [0, 0, 1, 1], [], []>} : vector<2x4xf32>, vector<4x128xf32>, vector<2x128xf32> -> vector<2x128xf32>
    %363 = arith.addf %358, %362 : vector<2x128xf32>
    %364 = vector.extract_strided_slice %219 {offsets = [56, 0], sizes = [2, 4], strides = [1, 1]} : vector<98x4xf32> to vector<2x4xf32>
    %c28 = arith.constant 28 : index
    %c0_237 = arith.constant 0 : index
    %c0_238 = arith.constant 0 : index
    %365 = vector.load %arg9[%c28, %c0_237, %c0_238] : memref<49x4x128xf32, #tpu.memory_space<vmem>>, vector<1x4x128xf32>
    %366 = vector.shape_cast %365 : vector<1x4x128xf32> to vector<4x128xf32>
    %cst_239 = arith.constant dense<0.000000e+00> : vector<2x128xf32>
    %367 = tpu.matmul %364, %366, %cst_239 {dimension_numbers = #tpu.dot_dimension_numbers<[1], [0], [0], [1], [0, 0, 1, 1], [], []>} : vector<2x4xf32>, vector<4x128xf32>, vector<2x128xf32> -> vector<2x128xf32>
    %368 = arith.addf %363, %367 : vector<2x128xf32>
    %369 = vector.extract_strided_slice %219 {offsets = [58, 0], sizes = [2, 4], strides = [1, 1]} : vector<98x4xf32> to vector<2x4xf32>
    %c29 = arith.constant 29 : index
    %c0_240 = arith.constant 0 : index
    %c0_241 = arith.constant 0 : index
    %370 = vector.load %arg9[%c29, %c0_240, %c0_241] : memref<49x4x128xf32, #tpu.memory_space<vmem>>, vector<1x4x128xf32>
    %371 = vector.shape_cast %370 : vector<1x4x128xf32> to vector<4x128xf32>
    %cst_242 = arith.constant dense<0.000000e+00> : vector<2x128xf32>
    %372 = tpu.matmul %369, %371, %cst_242 {dimension_numbers = #tpu.dot_dimension_numbers<[1], [0], [0], [1], [0, 0, 1, 1], [], []>} : vector<2x4xf32>, vector<4x128xf32>, vector<2x128xf32> -> vector<2x128xf32>
    %373 = arith.addf %368, %372 : vector<2x128xf32>
    %374 = vector.extract_strided_slice %219 {offsets = [60, 0], sizes = [2, 4], strides = [1, 1]} : vector<98x4xf32> to vector<2x4xf32>
    %c30 = arith.constant 30 : index
    %c0_243 = arith.constant 0 : index
    %c0_244 = arith.constant 0 : index
    %375 = vector.load %arg9[%c30, %c0_243, %c0_244] : memref<49x4x128xf32, #tpu.memory_space<vmem>>, vector<1x4x128xf32>
    %376 = vector.shape_cast %375 : vector<1x4x128xf32> to vector<4x128xf32>
    %cst_245 = arith.constant dense<0.000000e+00> : vector<2x128xf32>
    %377 = tpu.matmul %374, %376, %cst_245 {dimension_numbers = #tpu.dot_dimension_numbers<[1], [0], [0], [1], [0, 0, 1, 1], [], []>} : vector<2x4xf32>, vector<4x128xf32>, vector<2x128xf32> -> vector<2x128xf32>
    %378 = arith.addf %373, %377 : vector<2x128xf32>
    %379 = vector.extract_strided_slice %219 {offsets = [62, 0], sizes = [2, 4], strides = [1, 1]} : vector<98x4xf32> to vector<2x4xf32>
    %c31 = arith.constant 31 : index
    %c0_246 = arith.constant 0 : index
    %c0_247 = arith.constant 0 : index
    %380 = vector.load %arg9[%c31, %c0_246, %c0_247] : memref<49x4x128xf32, #tpu.memory_space<vmem>>, vector<1x4x128xf32>
    %381 = vector.shape_cast %380 : vector<1x4x128xf32> to vector<4x128xf32>
    %cst_248 = arith.constant dense<0.000000e+00> : vector<2x128xf32>
    %382 = tpu.matmul %379, %381, %cst_248 {dimension_numbers = #tpu.dot_dimension_numbers<[1], [0], [0], [1], [0, 0, 1, 1], [], []>} : vector<2x4xf32>, vector<4x128xf32>, vector<2x128xf32> -> vector<2x128xf32>
    %383 = arith.addf %378, %382 : vector<2x128xf32>
    %384 = vector.extract_strided_slice %219 {offsets = [64, 0], sizes = [2, 4], strides = [1, 1]} : vector<98x4xf32> to vector<2x4xf32>
    %c32 = arith.constant 32 : index
    %c0_249 = arith.constant 0 : index
    %c0_250 = arith.constant 0 : index
    %385 = vector.load %arg9[%c32, %c0_249, %c0_250] : memref<49x4x128xf32, #tpu.memory_space<vmem>>, vector<1x4x128xf32>
    %386 = vector.shape_cast %385 : vector<1x4x128xf32> to vector<4x128xf32>
    %cst_251 = arith.constant dense<0.000000e+00> : vector<2x128xf32>
    %387 = tpu.matmul %384, %386, %cst_251 {dimension_numbers = #tpu.dot_dimension_numbers<[1], [0], [0], [1], [0, 0, 1, 1], [], []>} : vector<2x4xf32>, vector<4x128xf32>, vector<2x128xf32> -> vector<2x128xf32>
    %388 = arith.addf %383, %387 : vector<2x128xf32>
    %389 = vector.extract_strided_slice %219 {offsets = [66, 0], sizes = [2, 4], strides = [1, 1]} : vector<98x4xf32> to vector<2x4xf32>
    %c33 = arith.constant 33 : index
    %c0_252 = arith.constant 0 : index
    %c0_253 = arith.constant 0 : index
    %390 = vector.load %arg9[%c33, %c0_252, %c0_253] : memref<49x4x128xf32, #tpu.memory_space<vmem>>, vector<1x4x128xf32>
    %391 = vector.shape_cast %390 : vector<1x4x128xf32> to vector<4x128xf32>
    %cst_254 = arith.constant dense<0.000000e+00> : vector<2x128xf32>
    %392 = tpu.matmul %389, %391, %cst_254 {dimension_numbers = #tpu.dot_dimension_numbers<[1], [0], [0], [1], [0, 0, 1, 1], [], []>} : vector<2x4xf32>, vector<4x128xf32>, vector<2x128xf32> -> vector<2x128xf32>
    %393 = arith.addf %388, %392 : vector<2x128xf32>
    %394 = vector.extract_strided_slice %219 {offsets = [68, 0], sizes = [2, 4], strides = [1, 1]} : vector<98x4xf32> to vector<2x4xf32>
    %c34 = arith.constant 34 : index
    %c0_255 = arith.constant 0 : index
    %c0_256 = arith.constant 0 : index
    %395 = vector.load %arg9[%c34, %c0_255, %c0_256] : memref<49x4x128xf32, #tpu.memory_space<vmem>>, vector<1x4x128xf32>
    %396 = vector.shape_cast %395 : vector<1x4x128xf32> to vector<4x128xf32>
    %cst_257 = arith.constant dense<0.000000e+00> : vector<2x128xf32>
    %397 = tpu.matmul %394, %396, %cst_257 {dimension_numbers = #tpu.dot_dimension_numbers<[1], [0], [0], [1], [0, 0, 1, 1], [], []>} : vector<2x4xf32>, vector<4x128xf32>, vector<2x128xf32> -> vector<2x128xf32>
    %398 = arith.addf %393, %397 : vector<2x128xf32>
    %399 = vector.extract_strided_slice %219 {offsets = [70, 0], sizes = [2, 4], strides = [1, 1]} : vector<98x4xf32> to vector<2x4xf32>
    %c35 = arith.constant 35 : index
    %c0_258 = arith.constant 0 : index
    %c0_259 = arith.constant 0 : index
    %400 = vector.load %arg9[%c35, %c0_258, %c0_259] : memref<49x4x128xf32, #tpu.memory_space<vmem>>, vector<1x4x128xf32>
    %401 = vector.shape_cast %400 : vector<1x4x128xf32> to vector<4x128xf32>
    %cst_260 = arith.constant dense<0.000000e+00> : vector<2x128xf32>
    %402 = tpu.matmul %399, %401, %cst_260 {dimension_numbers = #tpu.dot_dimension_numbers<[1], [0], [0], [1], [0, 0, 1, 1], [], []>} : vector<2x4xf32>, vector<4x128xf32>, vector<2x128xf32> -> vector<2x128xf32>
    %403 = arith.addf %398, %402 : vector<2x128xf32>
    %404 = vector.extract_strided_slice %219 {offsets = [72, 0], sizes = [2, 4], strides = [1, 1]} : vector<98x4xf32> to vector<2x4xf32>
    %c36 = arith.constant 36 : index
    %c0_261 = arith.constant 0 : index
    %c0_262 = arith.constant 0 : index
    %405 = vector.load %arg9[%c36, %c0_261, %c0_262] : memref<49x4x128xf32, #tpu.memory_space<vmem>>, vector<1x4x128xf32>
    %406 = vector.shape_cast %405 : vector<1x4x128xf32> to vector<4x128xf32>
    %cst_263 = arith.constant dense<0.000000e+00> : vector<2x128xf32>
    %407 = tpu.matmul %404, %406, %cst_263 {dimension_numbers = #tpu.dot_dimension_numbers<[1], [0], [0], [1], [0, 0, 1, 1], [], []>} : vector<2x4xf32>, vector<4x128xf32>, vector<2x128xf32> -> vector<2x128xf32>
    %408 = arith.addf %403, %407 : vector<2x128xf32>
    %409 = vector.extract_strided_slice %219 {offsets = [74, 0], sizes = [2, 4], strides = [1, 1]} : vector<98x4xf32> to vector<2x4xf32>
    %c37 = arith.constant 37 : index
    %c0_264 = arith.constant 0 : index
    %c0_265 = arith.constant 0 : index
    %410 = vector.load %arg9[%c37, %c0_264, %c0_265] : memref<49x4x128xf32, #tpu.memory_space<vmem>>, vector<1x4x128xf32>
    %411 = vector.shape_cast %410 : vector<1x4x128xf32> to vector<4x128xf32>
    %cst_266 = arith.constant dense<0.000000e+00> : vector<2x128xf32>
    %412 = tpu.matmul %409, %411, %cst_266 {dimension_numbers = #tpu.dot_dimension_numbers<[1], [0], [0], [1], [0, 0, 1, 1], [], []>} : vector<2x4xf32>, vector<4x128xf32>, vector<2x128xf32> -> vector<2x128xf32>
    %413 = arith.addf %408, %412 : vector<2x128xf32>
    %414 = vector.extract_strided_slice %219 {offsets = [76, 0], sizes = [2, 4], strides = [1, 1]} : vector<98x4xf32> to vector<2x4xf32>
    %c38 = arith.constant 38 : index
    %c0_267 = arith.constant 0 : index
    %c0_268 = arith.constant 0 : index
    %415 = vector.load %arg9[%c38, %c0_267, %c0_268] : memref<49x4x128xf32, #tpu.memory_space<vmem>>, vector<1x4x128xf32>
    %416 = vector.shape_cast %415 : vector<1x4x128xf32> to vector<4x128xf32>
    %cst_269 = arith.constant dense<0.000000e+00> : vector<2x128xf32>
    %417 = tpu.matmul %414, %416, %cst_269 {dimension_numbers = #tpu.dot_dimension_numbers<[1], [0], [0], [1], [0, 0, 1, 1], [], []>} : vector<2x4xf32>, vector<4x128xf32>, vector<2x128xf32> -> vector<2x128xf32>
    %418 = arith.addf %413, %417 : vector<2x128xf32>
    %419 = vector.extract_strided_slice %219 {offsets = [78, 0], sizes = [2, 4], strides = [1, 1]} : vector<98x4xf32> to vector<2x4xf32>
    %c39 = arith.constant 39 : index
    %c0_270 = arith.constant 0 : index
    %c0_271 = arith.constant 0 : index
    %420 = vector.load %arg9[%c39, %c0_270, %c0_271] : memref<49x4x128xf32, #tpu.memory_space<vmem>>, vector<1x4x128xf32>
    %421 = vector.shape_cast %420 : vector<1x4x128xf32> to vector<4x128xf32>
    %cst_272 = arith.constant dense<0.000000e+00> : vector<2x128xf32>
    %422 = tpu.matmul %419, %421, %cst_272 {dimension_numbers = #tpu.dot_dimension_numbers<[1], [0], [0], [1], [0, 0, 1, 1], [], []>} : vector<2x4xf32>, vector<4x128xf32>, vector<2x128xf32> -> vector<2x128xf32>
    %423 = arith.addf %418, %422 : vector<2x128xf32>
    %424 = vector.extract_strided_slice %219 {offsets = [80, 0], sizes = [2, 4], strides = [1, 1]} : vector<98x4xf32> to vector<2x4xf32>
    %c40 = arith.constant 40 : index
    %c0_273 = arith.constant 0 : index
    %c0_274 = arith.constant 0 : index
    %425 = vector.load %arg9[%c40, %c0_273, %c0_274] : memref<49x4x128xf32, #tpu.memory_space<vmem>>, vector<1x4x128xf32>
    %426 = vector.shape_cast %425 : vector<1x4x128xf32> to vector<4x128xf32>
    %cst_275 = arith.constant dense<0.000000e+00> : vector<2x128xf32>
    %427 = tpu.matmul %424, %426, %cst_275 {dimension_numbers = #tpu.dot_dimension_numbers<[1], [0], [0], [1], [0, 0, 1, 1], [], []>} : vector<2x4xf32>, vector<4x128xf32>, vector<2x128xf32> -> vector<2x128xf32>
    %428 = arith.addf %423, %427 : vector<2x128xf32>
    %429 = vector.extract_strided_slice %219 {offsets = [82, 0], sizes = [2, 4], strides = [1, 1]} : vector<98x4xf32> to vector<2x4xf32>
    %c41 = arith.constant 41 : index
    %c0_276 = arith.constant 0 : index
    %c0_277 = arith.constant 0 : index
    %430 = vector.load %arg9[%c41, %c0_276, %c0_277] : memref<49x4x128xf32, #tpu.memory_space<vmem>>, vector<1x4x128xf32>
    %431 = vector.shape_cast %430 : vector<1x4x128xf32> to vector<4x128xf32>
    %cst_278 = arith.constant dense<0.000000e+00> : vector<2x128xf32>
    %432 = tpu.matmul %429, %431, %cst_278 {dimension_numbers = #tpu.dot_dimension_numbers<[1], [0], [0], [1], [0, 0, 1, 1], [], []>} : vector<2x4xf32>, vector<4x128xf32>, vector<2x128xf32> -> vector<2x128xf32>
    %433 = arith.addf %428, %432 : vector<2x128xf32>
    %434 = vector.extract_strided_slice %219 {offsets = [84, 0], sizes = [2, 4], strides = [1, 1]} : vector<98x4xf32> to vector<2x4xf32>
    %c42 = arith.constant 42 : index
    %c0_279 = arith.constant 0 : index
    %c0_280 = arith.constant 0 : index
    %435 = vector.load %arg9[%c42, %c0_279, %c0_280] : memref<49x4x128xf32, #tpu.memory_space<vmem>>, vector<1x4x128xf32>
    %436 = vector.shape_cast %435 : vector<1x4x128xf32> to vector<4x128xf32>
    %cst_281 = arith.constant dense<0.000000e+00> : vector<2x128xf32>
    %437 = tpu.matmul %434, %436, %cst_281 {dimension_numbers = #tpu.dot_dimension_numbers<[1], [0], [0], [1], [0, 0, 1, 1], [], []>} : vector<2x4xf32>, vector<4x128xf32>, vector<2x128xf32> -> vector<2x128xf32>
    %438 = arith.addf %433, %437 : vector<2x128xf32>
    %439 = vector.extract_strided_slice %219 {offsets = [86, 0], sizes = [2, 4], strides = [1, 1]} : vector<98x4xf32> to vector<2x4xf32>
    %c43 = arith.constant 43 : index
    %c0_282 = arith.constant 0 : index
    %c0_283 = arith.constant 0 : index
    %440 = vector.load %arg9[%c43, %c0_282, %c0_283] : memref<49x4x128xf32, #tpu.memory_space<vmem>>, vector<1x4x128xf32>
    %441 = vector.shape_cast %440 : vector<1x4x128xf32> to vector<4x128xf32>
    %cst_284 = arith.constant dense<0.000000e+00> : vector<2x128xf32>
    %442 = tpu.matmul %439, %441, %cst_284 {dimension_numbers = #tpu.dot_dimension_numbers<[1], [0], [0], [1], [0, 0, 1, 1], [], []>} : vector<2x4xf32>, vector<4x128xf32>, vector<2x128xf32> -> vector<2x128xf32>
    %443 = arith.addf %438, %442 : vector<2x128xf32>
    %444 = vector.extract_strided_slice %219 {offsets = [88, 0], sizes = [2, 4], strides = [1, 1]} : vector<98x4xf32> to vector<2x4xf32>
    %c44 = arith.constant 44 : index
    %c0_285 = arith.constant 0 : index
    %c0_286 = arith.constant 0 : index
    %445 = vector.load %arg9[%c44, %c0_285, %c0_286] : memref<49x4x128xf32, #tpu.memory_space<vmem>>, vector<1x4x128xf32>
    %446 = vector.shape_cast %445 : vector<1x4x128xf32> to vector<4x128xf32>
    %cst_287 = arith.constant dense<0.000000e+00> : vector<2x128xf32>
    %447 = tpu.matmul %444, %446, %cst_287 {dimension_numbers = #tpu.dot_dimension_numbers<[1], [0], [0], [1], [0, 0, 1, 1], [], []>} : vector<2x4xf32>, vector<4x128xf32>, vector<2x128xf32> -> vector<2x128xf32>
    %448 = arith.addf %443, %447 : vector<2x128xf32>
    %449 = vector.extract_strided_slice %219 {offsets = [90, 0], sizes = [2, 4], strides = [1, 1]} : vector<98x4xf32> to vector<2x4xf32>
    %c45 = arith.constant 45 : index
    %c0_288 = arith.constant 0 : index
    %c0_289 = arith.constant 0 : index
    %450 = vector.load %arg9[%c45, %c0_288, %c0_289] : memref<49x4x128xf32, #tpu.memory_space<vmem>>, vector<1x4x128xf32>
    %451 = vector.shape_cast %450 : vector<1x4x128xf32> to vector<4x128xf32>
    %cst_290 = arith.constant dense<0.000000e+00> : vector<2x128xf32>
    %452 = tpu.matmul %449, %451, %cst_290 {dimension_numbers = #tpu.dot_dimension_numbers<[1], [0], [0], [1], [0, 0, 1, 1], [], []>} : vector<2x4xf32>, vector<4x128xf32>, vector<2x128xf32> -> vector<2x128xf32>
    %453 = arith.addf %448, %452 : vector<2x128xf32>
    %454 = vector.extract_strided_slice %219 {offsets = [92, 0], sizes = [2, 4], strides = [1, 1]} : vector<98x4xf32> to vector<2x4xf32>
    %c46 = arith.constant 46 : index
    %c0_291 = arith.constant 0 : index
    %c0_292 = arith.constant 0 : index
    %455 = vector.load %arg9[%c46, %c0_291, %c0_292] : memref<49x4x128xf32, #tpu.memory_space<vmem>>, vector<1x4x128xf32>
    %456 = vector.shape_cast %455 : vector<1x4x128xf32> to vector<4x128xf32>
    %cst_293 = arith.constant dense<0.000000e+00> : vector<2x128xf32>
    %457 = tpu.matmul %454, %456, %cst_293 {dimension_numbers = #tpu.dot_dimension_numbers<[1], [0], [0], [1], [0, 0, 1, 1], [], []>} : vector<2x4xf32>, vector<4x128xf32>, vector<2x128xf32> -> vector<2x128xf32>
    %458 = arith.addf %453, %457 : vector<2x128xf32>
    %459 = vector.extract_strided_slice %219 {offsets = [94, 0], sizes = [2, 4], strides = [1, 1]} : vector<98x4xf32> to vector<2x4xf32>
    %c47 = arith.constant 47 : index
    %c0_294 = arith.constant 0 : index
    %c0_295 = arith.constant 0 : index
    %460 = vector.load %arg9[%c47, %c0_294, %c0_295] : memref<49x4x128xf32, #tpu.memory_space<vmem>>, vector<1x4x128xf32>
    %461 = vector.shape_cast %460 : vector<1x4x128xf32> to vector<4x128xf32>
    %cst_296 = arith.constant dense<0.000000e+00> : vector<2x128xf32>
    %462 = tpu.matmul %459, %461, %cst_296 {dimension_numbers = #tpu.dot_dimension_numbers<[1], [0], [0], [1], [0, 0, 1, 1], [], []>} : vector<2x4xf32>, vector<4x128xf32>, vector<2x128xf32> -> vector<2x128xf32>
    %463 = arith.addf %458, %462 : vector<2x128xf32>
    %464 = vector.extract_strided_slice %219 {offsets = [96, 0], sizes = [2, 4], strides = [1, 1]} : vector<98x4xf32> to vector<2x4xf32>
    %c48 = arith.constant 48 : index
    %c0_297 = arith.constant 0 : index
    %c0_298 = arith.constant 0 : index
    %465 = vector.load %arg9[%c48, %c0_297, %c0_298] : memref<49x4x128xf32, #tpu.memory_space<vmem>>, vector<1x4x128xf32>
    %466 = vector.shape_cast %465 : vector<1x4x128xf32> to vector<4x128xf32>
    %cst_299 = arith.constant dense<0.000000e+00> : vector<2x128xf32>
    %467 = tpu.matmul %464, %466, %cst_299 {dimension_numbers = #tpu.dot_dimension_numbers<[1], [0], [0], [1], [0, 0, 1, 1], [], []>} : vector<2x4xf32>, vector<4x128xf32>, vector<2x128xf32> -> vector<2x128xf32>
    %468 = arith.addf %463, %467 : vector<2x128xf32>
    %c0_300 = arith.constant 0 : index
    %c0_301 = arith.constant 0 : index
    %469 = vector.load %arg11[%c0_300, %c0_301] : memref<2x128xf32, #tpu.memory_space<vmem>>, vector<2x128xf32>
    tpu.vector_store %arg11[%c0_300, %c0_301], %468 {strides = array<i32>} : memref<2x128xf32, #tpu.memory_space<vmem>>, vector<2x128xf32>,
    return
  }
}

</mosaic_0001>

<bundles_post_ra>
// kernel: mnist_net_forward.1
= control target key start
LH: loop header
LB: loop body
LE: loop exit
PB: predicated region body
PF: predicated region fallthrough
CT: control target
= control target key end

     0   :  { %vm238_vm0 = vcmask 1040384   ;;  %v15586_v2 = vmov 0.0|0.0   ;;  %vm12146_vm1 = vmmov 1   ;;  %vm12147_vm3 = vmmov 0   ;;  %s15574_s0 = inlined_call_operand.vmem [shape: f32[392,9], index: 0, kind: input, shape index: {}]   ;;  %s15575_s1 = inlined_call_operand.vmem [shape: f32[9,98,9], index: 1, kind: input, shape index: {}]   ;;  %s15576_s2 = inlined_call_operand.vmem [shape: f32[9,98,1], index: 2, kind: input, shape index: {}]   ;;  %s15577_s3 = inlined_call_operand.vmem [shape: f32[9,2], index: 3, kind: input, shape index: {}]   ;;  %s15578_s4 = inlined_call_operand.vmem [shape: f32[1,2], index: 4, kind: input, shape index: {}]   ;;  %s15579_s5 = inlined_call_operand.vmem [shape: f32[1,2], index: 5, kind: input, shape index: {}]   ;;  %s15580_s6 = inlined_call_operand.vmem [shape: f32[9,2,4], index: 6, kind: input, shape index: {}]   ;;  %s15581_s7 = inlined_call_operand.vmem [shape: f32[1,4], index: 7, kind: input, shape index: {}]   ;;  %s15582_s8 = inlined_call_operand.vmem [shape: f32[1,4], index: 8, kind: input, shape index: {}]   ;;  %s15583_s9 = inlined_call_operand.vmem [shape: f32[49,4,128], index: 9, kind: input, shape index: {}]   ;;  %s15584_s10 = inlined_call_operand.vmem [shape: f32[1,128], index: 10, kind: input, shape index: {}]   ;;  %s15585_s11 = inlined_call_operand.hbm [shape: f32[2,128], index: 11, kind: output, shape index: {}]  }
   0x1   :  { %v88_v0 = vld [vmem:[%s15577_s3] sm:$0xff]  ;;  %v89_v1 = vld [vmem:[%s15577_s3 + $0x8] sm:$0x1]  ;;  %11762 = vmatprep.subr.bf16.mxu0 %v15586_v2  ;;  %vm12220_vm2 = vmpackc.low %vm238_vm0, %vm12146_vm1  ;;  %11802 = vmatprep.subr.bf16.mxu1 %v15586_v2  ;;  %v15587_v5 = vmov 0.0   ;;  %vm90_vm4 = vcmask 72704  }
   0x2   :  { %v12218_v3 = vpack.c.bf16 %v89_v1, %v88_v0  ;;  %10614 = vmatprep.mubr.msk.f32.mxu0 %vm12147_vm3, %v15587_v5  ;;  %10692 = vmatprep.mubr.msk.f32.mxu1 %vm12147_vm3, %v15587_v5  ;;  %v39_v6 = vld [vmem:[%s15574_s0] sm:$0xff]  ;;  %v65_v7 = vld [vmem:[%s15574_s0 + $0xd0] sm:$0xff]  ;;  %v40_v8 = vld [vmem:[%s15574_s0 + $0x8] sm:$0xff] }
   0x3   :  { %v66_v9 = vld [vmem:[%s15574_s0 + $0xd8] sm:$0xff]  ;;  %v41_v10 = vld [vmem:[%s15574_s0 + $0x10] sm:$0xff]  ;;  %v67_v11 = vld [vmem:[%s15574_s0 + $0xe0] sm:$0xff] }
   0x4   :  { %11765 = vmatpush3.bf16.msk.msra.mxu0 %vm12220_vm2, %v12218_v3  ;;  %11803 = vmatpush3.bf16.msk.msra.mxu1 %vm12220_vm2, %v12218_v3  ;;  %v42_v12 = vld [vmem:[%s15574_s0 + $0x18] sm:$0xff]  ;;  %v68_v13 = vld [vmem:[%s15574_s0 + $0xe8] sm:$0xff]  ;;  %v43_v14 = vld [vmem:[%s15574_s0 + $0x20] sm:$0xff] }
   0x5   :  { %11774 = vmatprep.subr.bf16.mxu0 %v15586_v2  ;;  %11766 = vmatprep.subr.bf16.mxu1 %v15586_v2  ;;  %v69_v15 = vld [vmem:[%s15574_s0 + $0xf0] sm:$0xff] }
   0x7   :  { %10615 = vmatmul.mubr.msk.f32.vlgmr.msra.gmra.mrb[0].mxu0 %vm90_vm4, %v39_v6  ;;  %10693 = vmatmul.mubr.msk.f32.vlgmr.msra.gmra.mrb[0].mxu1 %vm90_vm4, %v65_v7 }
   0x8   :  { %10617 = vmatprep.mubr.msk.f32.mxu0 %vm12147_vm3, %v15587_v5  ;;  %10695 = vmatprep.mubr.msk.f32.mxu1 %vm12147_vm3, %v15587_v5 }
   0x9   :  { %11777 = vmatpush3.bf16.msk.msra.mxu0 %vm12220_vm2, %v12218_v3  ;;  %11769 = vmatpush3.bf16.msk.msra.mxu1 %vm12220_vm2, %v12218_v3 }
   0xa   :  { %11778 = vmatprep.subr.bf16.mxu0 %v15586_v2  ;;  %11770 = vmatprep.subr.bf16.mxu1 %v15586_v2 }
   0xb   :  { %10618 = vmatmul.mubr.msk.f32.gmra.mrb[2].mxu0 %vm90_vm4, %v40_v8  ;;  %10696 = vmatmul.mubr.msk.f32.gmra.mrb[2].mxu1 %vm90_vm4, %v66_v9 }
   0xc   :  { %10620 = vmatprep.mubr.msk.f32.mxu0 %vm12147_vm3, %v15587_v5  ;;  %10698 = vmatprep.mubr.msk.f32.mxu1 %vm12147_vm3, %v15587_v5 }
   0xf   :  { %10621 = vmatmul.mubr.msk.f32.gmra.mrb[4].mxu0 %vm90_vm4, %v41_v10  ;;  %10699 = vmatmul.mubr.msk.f32.gmra.mrb[4].mxu1 %vm90_vm4, %v67_v11 }
  0x10   :  { %10623 = vmatprep.mubr.msk.f32.mxu0 %vm12147_vm3, %v15587_v5  ;;  %10701 = vmatprep.mubr.msk.f32.mxu1 %vm12147_vm3, %v15587_v5 }
  0x13   :  { %10624 = vmatmul.mubr.msk.f32.gmra.mrb[6].mxu0 %vm90_vm4, %v42_v12  ;;  %10702 = vmatmul.mubr.msk.f32.gmra.mrb[6].mxu1 %vm90_vm4, %v68_v13 }
  0x14   :  { %10626 = vmatprep.mubr.msk.f32.mxu0 %vm12147_vm3, %v15587_v5  ;;  %10704 = vmatprep.mubr.msk.f32.mxu1 %vm12147_vm3, %v15587_v5 }
  0x15   :  { %16 = vsyncpa [#allocation3], 0  ;;  %v44_v16 = vld [vmem:[%s15574_s0 + $0x28] sm:$0xff]  ;;  %v70_v17 = vld [vmem:[%s15574_s0 + $0xf8] sm:$0xff]  ;;  %v12149_v22 = vmov 0   ;;  %vm552_vm5 = vcmask 15360  }
  0x16   :  { %v45_v18 = vld [vmem:[%s15574_s0 + $0x30] sm:$0xff]  ;;  %v71_v19 = vld [vmem:[%s15574_s0 + $0x100] sm:$0xff]  ;;  %v46_v20 = vld [vmem:[%s15574_s0 + $0x38] sm:$0xff]  ;;  %12115 = vset.pattern.permute.xlu0 %v12149_v22  ;;  %12116 = vset.pattern.permute.xlu1 %v12149_v22  ;;  %vm1573_vm6 = vcmask 1041408   ;;  %vm5477_vm7 = vcmask 31744   ;;  %vm5653_vm8 = vcmask 1043456  }
  0x17   :  { %10627 = vmatmul.mubr.msk.f32.gmra.mrb[8].mxu0 %vm90_vm4, %v43_v14  ;;  %10705 = vmatmul.mubr.msk.f32.gmra.mrb[8].mxu1 %vm90_vm4, %v69_v15  ;;  %v72_v21 = vld [vmem:[%s15574_s0 + $0x108] sm:$0xff]  ;;  %v47_v24 = vld [vmem:[%s15574_s0 + $0x40] sm:$0xff]  ;;  %v73_v25 = vld [vmem:[%s15574_s0 + $0x110] sm:$0xff]  ;;  %vm5501_vm9 = vcmask 25600   ;;  %s12150_s14 = smov [#allocation2]  }
  0x18   :  { %10629 = vmatprep.mubr.msk.f32.mxu0 %vm12147_vm3, %v15587_v5  ;;  %10707 = vmatprep.mubr.msk.f32.mxu1 %vm12147_vm3, %v15587_v5  ;;  %v9626_v23 = vld [vmem:[%s15576_s2 + $0x68] sm:$0xff]  ;;  %v9627_v26 = vld [vmem:[%s15576_s2 + $0x70] sm:$0xff]  ;;  %v74_v28 = vld [vmem:[%s15574_s0 + $0x118] sm:$0xff] }
  0x19   :  { %1456 = vperm.xlu0 %12115, %v9626_v23   ;;  %v48_v27 = vld [vmem:[%s15574_s0 + $0x48] sm:$0xff]  ;;  %v49_v30 = vld [vmem:[%s15574_s0 + $0x50] sm:$0xff]  ;;  %v75_v31 = vld [vmem:[%s15574_s0 + $0x120] sm:$0xff] }
  0x1a   :  { %v9630_v29 = vld [vmem:[%s15576_s2 + $0x88] sm:$0xff]  ;;  %v9628_v32 = vld [vmem:[%s15576_s2 + $0x78] sm:$0xff]  ;;  %v9629_v36 = vld [vmem:[%s15576_s2 + $0x80] sm:$0xff] }
  0x1b   :  { %10630 = vmatmul.mubr.msk.f32.gmra.mrb[10].mxu0 %vm90_vm4, %v44_v16  ;;  %10708 = vmatmul.mubr.msk.f32.gmra.mrb[10].mxu1 %vm90_vm4, %v70_v17  ;;  %v9632_v33 = vld [vmem:[%s15576_s2 + $0x98] sm:$0xff]  ;;  %v76_v35 = vld [vmem:[%s15574_s0 + $0x128] sm:$0xff]  ;;  %v51_v38 = vld [vmem:[%s15574_s0 + $0x60] sm:$0xff] }
  0x1c   :  { %10632 = vmatprep.mubr.msk.f32.mxu0 %vm12147_vm3, %v15587_v5  ;;  %10710 = vmatprep.mubr.msk.f32.mxu1 %vm12147_vm3, %v15587_v5  ;;  %v50_v34 = vld [vmem:[%s15574_s0 + $0x58] sm:$0xff]  ;;  %v9634_v37 = vld [vmem:[%s15576_s2 + $0xa8] sm:$0xff]  ;;  %v77_v39 = vld [vmem:[%s15574_s0 + $0x130] sm:$0xff] }
  0x1d   :  { %1461 = vperm.xlu0 %12115, %v9627_v26   ;;  %1466 = vperm.xlu1 %12116, %v9628_v32   ;;  %v9631_v40 = vld [vmem:[%s15576_s2 + $0x90] sm:$0xff]  ;;  %v9636_v41 = vld [vmem:[%s15576_s2 + $0xb8] sm:$0xff]  ;;  %v52_v42 = vld [vmem:[%s15574_s0 + $0x68] sm:$0xff] }
  0x1e   :  { %v78_v43 = vld [vmem:[%s15574_s0 + $0x138] sm:$0xff]  ;;  %v9633_v44 = vld [vmem:[%s15576_s2 + $0xa0] sm:$0xff]  ;;  %v9638_v45 = vld [vmem:[%s15576_s2 + $0xc8] sm:$0x3] }
  0x1f   :  { %10633 = vmatmul.mubr.msk.f32.gmra.mrb[12].mxu0 %vm90_vm4, %v45_v18  ;;  %10711 = vmatmul.mubr.msk.f32.gmra.mrb[12].mxu1 %vm90_vm4, %v71_v19  ;;  %v53_v46 = vld [vmem:[%s15574_s0 + $0x70] sm:$0xff]  ;;  %v79_v47 = vld [vmem:[%s15574_s0 + $0x140] sm:$0xff]  ;;  %v1114_v49 = vld [vmem:[%s15576_s2 + $0x8] sm:$0xff] }
  0x20   :  { %10635 = vmatprep.mubr.msk.f32.mxu0 %vm12147_vm3, %v15587_v5  ;;  %10713 = vmatprep.mubr.msk.f32.mxu1 %vm12147_vm3, %v15587_v5  ;;  %v9635_v48 = vld [vmem:[%s15576_s2 + $0xb0] sm:$0xff]  ;;  %v54_v50 = vld [vmem:[%s15574_s0 + $0x78] sm:$0xff]  ;;  %v80_v51 = vld [vmem:[%s15574_s0 + $0x148] sm:$0xff] }
  0x21   :  { %1476 = vperm.xlu0 %12115, %v9630_v29   ;;  %1471 = vperm.xlu1 %12116, %v9629_v36   ;;  %v9637_v52 = vld [vmem:[%s15576_s2 + $0xc0] sm:$0xff]  ;;  %v1116_v53 = vld [vmem:[%s15576_s2 + $0x18] sm:$0xff]  ;;  %v81_v55 = vld [vmem:[%s15574_s0 + $0x150] sm:$0xff] }
  0x22   :  { %v55_v54 = vld [vmem:[%s15574_s0 + $0x80] sm:$0xff]  ;;  %v1118_v56 = vld [vmem:[%s15576_s2 + $0x28] sm:$0xff]  ;;  %v82_v59 = vld [vmem:[%s15574_s0 + $0x158] sm:$0xff] }
  0x23   :  { %10636 = vmatmul.mubr.msk.f32.gmra.mrb[14].mxu0 %vm90_vm4, %v46_v20  ;;  %10714 = vmatmul.mubr.msk.f32.gmra.mrb[14].mxu1 %vm90_vm4, %v72_v21  ;;  %v1113_v57 = vld [vmem:[%s15576_s2] sm:$0xff]  ;;  %v56_v58 = vld [vmem:[%s15574_s0 + $0x88] sm:$0xff]  ;;  %v1120_v60 = vld [vmem:[%s15576_s2 + $0x38] sm:$0xff] }
  0x24   :  { %10638 = vmatprep.mubr.msk.f32.mxu0 %vm12147_vm3, %v15587_v5  ;;  %10716 = vmatprep.mubr.msk.f32.mxu1 %vm12147_vm3, %v15587_v5  ;;  %v1115_v61 = vld [vmem:[%s15576_s2 + $0x10] sm:$0xff]  ;;  %v83_v63 = vld [vmem:[%s15574_s0 + $0x160] sm:$0xff]  ;;  %v1122_v0 = vld [vmem:[%s15576_s2 + $0x48] sm:$0xff] }
  0x25   :  { %1486 = vperm.xlu0 %12115, %v9632_v33   ;;  %1481 = vperm.xlu1 %12116, %v9631_v40   ;;  %v57_v62 = vld [vmem:[%s15574_s0 + $0x90] sm:$0xff]  ;;  %v1117_v1 = vld [vmem:[%s15576_s2 + $0x20] sm:$0xff]  ;;  %v58_v6 = vld [vmem:[%s15574_s0 + $0x98] sm:$0xff] }
  0x26   :  { %v84_v7 = vld [vmem:[%s15574_s0 + $0x168] sm:$0xff]  ;;  %v1124_v8 = vld [vmem:[%s15576_s2 + $0x58] sm:$0xff]  ;;  %v1119_v9 = vld [vmem:[%s15576_s2 + $0x30] sm:$0xff] }
  0x27   :  { %10639 = vmatmul.mubr.msk.f32.gmra.mrb[16].mxu0 %vm90_vm4, %v47_v24  ;;  %10717 = vmatmul.mubr.msk.f32.gmra.mrb[16].mxu1 %vm90_vm4, %v73_v25  ;;  %v59_v10 = vld [vmem:[%s15574_s0 + $0xa0] sm:$0xff]  ;;  %v85_v11 = vld [vmem:[%s15574_s0 + $0x170] sm:$0xff]  ;;  %v60_v14 = vld [vmem:[%s15574_s0 + $0xa8] sm:$0xff] }
  0x28   :  { %10641 = vmatprep.mubr.msk.f32.mxu0 %vm12147_vm3, %v15587_v5  ;;  %10719 = vmatprep.mubr.msk.f32.mxu1 %vm12147_vm3, %v15587_v5  ;;  %v9695_v12 = vld [vmem:[%s15576_s2 + $0xd0] sm:$0xff]  ;;  %v1121_v13 = vld [vmem:[%s15576_s2 + $0x40] sm:$0xff]  ;;  %v86_v15 = vld [vmem:[%s15574_s0 + $0x178] sm:$0xff] }
  0x29   :  { %1496 = vperm.xlu0 %12115, %v9634_v37   ;;  %1491 = vperm.xlu1 %12116, %v9633_v44   ;;  %v9697_v16 = vld [vmem:[%s15576_s2 + $0xe0] sm:$0xff]  ;;  %v1123_v17 = vld [vmem:[%s15576_s2 + $0x50] sm:$0xff]  ;;  %v62_v22 = vld [vmem:[%s15574_s0 + $0xb8] sm:$0xff] }
  0x2a   :  { %v61_v18 = vld [vmem:[%s15574_s0 + $0xb0] sm:$0xff]  ;;  %v87_v19 = vld [vmem:[%s15574_s0 + $0x180] sm:$0xff]  ;;  %v9696_v25 = vld [vmem:[%s15576_s2 + $0xd8] sm:$0xff] }
  0x2b   :  { %10642 = vmatmul.mubr.msk.f32.gmra.mrb[18].mxu0 %vm90_vm4, %v48_v27  ;;  %10720 = vmatmul.mubr.msk.f32.gmra.mrb[18].mxu1 %vm90_vm4, %v74_v28  ;;  %v9699_v20 = vld [vmem:[%s15576_s2 + $0xf0] sm:$0xff]  ;;  %v1125_v21 = vld [vmem:[%s15576_s2 + $0x60] sm:$0x3]  ;;  %v868_v27 = vld [vmem:[%s15575_s1 + $0x8] sm:$0xff] }
  0x2c   :  { %10644 = vmatprep.mubr.msk.f32.mxu0 %vm12147_vm3, %v15587_v5  ;;  %10722 = vmatprep.mubr.msk.f32.mxu1 %vm12147_vm3, %v15587_v5  ;;  %v867_v23 = vld [vmem:[%s15575_s1] sm:$0xff]  ;;  %v9703_v28 = vld [vmem:[%s15576_s2 + $0x110] sm:$0xff]  ;;  %v9698_v29 = vld [vmem:[%s15576_s2 + $0xe8] sm:$0xff] }
  0x2d   :  { %1506 = vperm.xlu0 %12115, %v9636_v41   ;;  %1501 = vperm.xlu1 %12116, %v9635_v48   ;;  %v9701_v24 = vld [vmem:[%s15576_s2 + $0x100] sm:$0xff]  ;;  %v9700_v33 = vld [vmem:[%s15576_s2 + $0xf8] sm:$0xff]  ;;  %v9707_v36 = vld [vmem:[%s15576_s2 + $0x130] sm:$0x3] }
  0x2e   :  { %v63_v26 = vld [vmem:[%s15574_s0 + $0xc0] sm:$0xff]  ;;  %v9669_v37 = vld [vmem:[%s15575_s1 + $0xd8] sm:$0xff]  ;;  %v9753_v44 = vld [vmem:[%s15576_s2 + $0x150] sm:$0xff] }
  0x2f   :  { %10645 = vmatmul.mubr.msk.f32.gmra.mrb[20].mxu0 %vm90_vm4, %v49_v30  ;;  %10723 = vmatmul.mubr.msk.f32.gmra.mrb[20].mxu1 %vm90_vm4, %v75_v31  ;;  %v64_v30 = vld [vmem:[%s15574_s0 + $0xc8] sm:$0xff]  ;;  %v869_v31 = vld [vmem:[%s15575_s1 + $0x10] sm:$0xff]  ;;  %v9705_v32 = vld [vmem:[%s15576_s2 + $0x120] sm:$0xff]  ;;  %s9527_s0 = sshll.u32 %s12150_s14, 4  ;;  %s9528_s0 = int_to_ptr.vmem [resolvable:$true] %s9527_s0 }
  0x30   :  { %10647 = vmatprep.mubr.msk.f32.mxu0 %vm12147_vm3, %v15587_v5  ;;  %10725 = vmatprep.mubr.msk.f32.mxu1 %vm12147_vm3, %v15587_v5  ;;  %v9751_v40 = vld [vmem:[%s15576_s2 + $0x140] sm:$0xff]  ;;  %p12126_p1 = scmp.lt.s32.totalorder %s9528_s0, %s9528_s0 }
  0x31   :  { %1516 = vperm.xlu0 %12115, %v9638_v45   ;;  %1511 = vperm.xlu1 %12116, %v9637_v52   ;;  %v9670_v41 = vld [vmem:[%s15575_s1 + $0xe0] sm:$0xff]  ;;  %v9671_v45 = vld [vmem:[%s15575_s1 + $0xe8] sm:$0xff]  ;;  %v9757_v52 = vld [vmem:[%s15576_s2 + $0x170] sm:$0xff] }
  0x32   :  { %v9755_v48 = vld [vmem:[%s15576_s2 + $0x160] sm:$0xff] }
  0x33   :  { %10648 = vmatmul.mubr.msk.f32.gmra.mrb[22].mxu0 %vm90_vm4, %v50_v34  ;;  %10726 = vmatmul.mubr.msk.f32.gmra.mrb[22].mxu1 %vm90_vm4, %v76_v35  ;;  %v9668_v34 = vld [vmem:[%s15575_s1 + $0xd0] sm:$0xff]  ;;  %v870_v35 = vld [vmem:[%s15575_s1 + $0x18] sm:$0xff] }
  0x34   :  { %10650 = vmatprep.mubr.msk.f32.mxu0 %vm12147_vm3, %v15587_v5  ;;  %10728 = vmatprep.mubr.msk.f32.mxu1 %vm12147_vm3, %v15587_v5 }
  0x35   :  { %1133 = vperm.xlu0 %12115, %v1114_v49   ;;  %1128 = vperm.xlu1 %12116, %v1113_v57   ;;  %v9672_v49 = vld [vmem:[%s15575_s1 + $0xf0] sm:$0xff]  ;;  %v9674_v57 = vld [vmem:[%s15575_s1 + $0x100] sm:$0xff] }
  0x37   :  { %10651 = vmatmul.mubr.msk.f32.gmra.mrb[24].mxu0 %vm90_vm4, %v51_v38  ;;  %10729 = vmatmul.mubr.msk.f32.gmra.mrb[24].mxu1 %vm90_vm4, %v77_v39  ;;  %v9702_v38 = vld [vmem:[%s15576_s2 + $0x108] sm:$0xff]  ;;  %v871_v39 = vld [vmem:[%s15575_s1 + $0x20] sm:$0xff] }
  0x38   :  { %10653 = vmatprep.mubr.msk.f32.mxu0 %vm12147_vm3, %v15587_v5  ;;  %10731 = vmatprep.mubr.msk.f32.mxu1 %vm12147_vm3, %v15587_v5 }
  0x39   :  { %1143 = vperm.xlu0 %12115, %v1116_v53   ;;  %1138 = vperm.xlu1 %12116, %v1115_v61   ;;  %v9673_v53 = vld [vmem:[%s15575_s1 + $0xf8] sm:$0xff]  ;;  %v9675_v61 = vld [vmem:[%s15575_s1 + $0x108] sm:$0xff] }
  0x3b   :  { %10654 = vmatmul.mubr.msk.f32.gmra.mrb[26].mxu0 %vm90_vm4, %v52_v42  ;;  %10732 = vmatmul.mubr.msk.f32.gmra.mrb[26].mxu1 %vm90_vm4, %v78_v43  ;;  %v9704_v42 = vld [vmem:[%s15576_s2 + $0x118] sm:$0xff]  ;;  %v872_v43 = vld [vmem:[%s15575_s1 + $0x28] sm:$0xff] }
  0x3c   :  { %10656 = vmatprep.mubr.msk.f32.mxu0 %vm12147_vm3, %v15587_v5  ;;  %10734 = vmatprep.mubr.msk.f32.mxu1 %vm12147_vm3, %v15587_v5 }
  0x3d   :  { %1153 = vperm.xlu0 %12115, %v1118_v56   ;;  %1148 = vperm.xlu1 %12116, %v1117_v1   ;;  %v9759_v56 = vld [vmem:[%s15576_s2 + $0x180] sm:$0xff]  ;;  %v9676_v1 = vld [vmem:[%s15575_s1 + $0x110] sm:$0xff] }
  0x3f   :  { %10657 = vmatmul.mubr.msk.f32.gmra.mrb[28].mxu0 %vm90_vm4, %v53_v46  ;;  %10735 = vmatmul.mubr.msk.f32.gmra.mrb[28].mxu1 %vm90_vm4, %v79_v47  ;;  %v9706_v46 = vld [vmem:[%s15576_s2 + $0x128] sm:$0xff]  ;;  %v873_v47 = vld [vmem:[%s15575_s1 + $0x30] sm:$0xff] }
  0x40   :  { %10659 = vmatprep.mubr.msk.f32.mxu0 %vm12147_vm3, %v15587_v5  ;;  %10737 = vmatprep.mubr.msk.f32.mxu1 %vm12147_vm3, %v15587_v5 }
  0x41   :  { %1163 = vperm.xlu0 %12115, %v1120_v60   ;;  %1158 = vperm.xlu1 %12116, %v1119_v9   ;;  %v9761_v60 = vld [vmem:[%s15576_s2 + $0x190] sm:$0xff]  ;;  %v9677_v9 = vld [vmem:[%s15575_s1 + $0x118] sm:$0xff] }
  0x43   :  { %10660 = vmatmul.mubr.msk.f32.gmra.mrb[30].mxu0 %vm90_vm4, %v54_v50  ;;  %10738 = vmatmul.mubr.msk.f32.gmra.mrb[30].mxu1 %vm90_vm4, %v80_v51  ;;  %v9750_v50 = vld [vmem:[%s15576_s2 + $0x138] sm:$0xff] }
  0x44   :  { %10662 = vmatprep.mubr.msk.f32.mxu0 %vm12147_vm3, %v15587_v5  ;;  %10740 = vmatprep.mubr.msk.f32.mxu1 %vm12147_vm3, %v15587_v5  ;;  %v874_v51 = vld [vmem:[%s15575_s1 + $0x38] sm:$0xff] }
  0x45   :  { %1173 = vperm.xlu0 %12115, %v1122_v0   ;;  %1168 = vperm.xlu1 %12116, %v1121_v13   ;;  %v9805_v0 = vld [vmem:[%s15576_s2 + $0x1a0] sm:$0xff] }
  0x46   :  { %v9678_v13 = vld [vmem:[%s15575_s1 + $0x120] sm:$0xff] }
  0x47   :  { %10663 = vmatmul.mubr.msk.f32.gmra.mrb[32].mxu0 %vm90_vm4, %v55_v54  ;;  %10741 = vmatmul.mubr.msk.f32.gmra.mrb[32].mxu1 %vm90_vm4, %v81_v55  ;;  %v9752_v54 = vld [vmem:[%s15576_s2 + $0x148] sm:$0xff]  ;;  %v875_v55 = vld [vmem:[%s15575_s1 + $0x40] sm:$0xff] }
  0x48   :  { %10665 = vmatprep.mubr.msk.f32.mxu0 %vm12147_vm3, %v15587_v5  ;;  %10743 = vmatprep.mubr.msk.f32.mxu1 %vm12147_vm3, %v15587_v5 }
  0x49   :  { %1183 = vperm.xlu0 %12115, %v1124_v8   ;;  %1178 = vperm.xlu1 %12116, %v1123_v17   ;;  %v9807_v8 = vld [vmem:[%s15576_s2 + $0x1b0] sm:$0xff]  ;;  %v9679_v17 = vld [vmem:[%s15575_s1 + $0x128] sm:$0xff] }
  0x4b   :  { %10666 = vmatmul.mubr.msk.f32.gmra.mrb[34].mxu0 %vm90_vm4, %v56_v58  ;;  %10744 = vmatmul.mubr.msk.f32.gmra.mrb[34].mxu1 %vm90_vm4, %v82_v59  ;;  %v9754_v58 = vld [vmem:[%s15576_s2 + $0x158] sm:$0xff]  ;;  %v876_v59 = vld [vmem:[%s15575_s1 + $0x48] sm:$0xff] }
  0x4c   :  { %10668 = vmatprep.mubr.msk.f32.mxu0 %vm12147_vm3, %v15587_v5  ;;  %10746 = vmatprep.mubr.msk.f32.mxu1 %vm12147_vm3, %v15587_v5 }
  0x4d   :  { %2130 = vperm.xlu0 %12115, %v9695_v12   ;;  %1188 = vperm.xlu1 %12116, %v1125_v21   ;;  %v9809_v12 = vld [vmem:[%s15576_s2 + $0x1c0] sm:$0xff]  ;;  %v9680_v21 = vld [vmem:[%s15575_s1 + $0x130] sm:$0x3] }
  0x4f   :  { %10669 = vmatmul.mubr.msk.f32.gmra.mrb[36].mxu0 %vm90_vm4, %v57_v62  ;;  %10747 = vmatmul.mubr.msk.f32.gmra.mrb[36].mxu1 %vm90_vm4, %v83_v63  ;;  %v9756_v62 = vld [vmem:[%s15576_s2 + $0x168] sm:$0xff]  ;;  %v877_v63 = vld [vmem:[%s15575_s1 + $0x50] sm:$0xff] }
  0x50   :  { %10671 = vmatprep.mubr.msk.f32.mxu0 %vm12147_vm3, %v15587_v5  ;;  %10749 = vmatprep.mubr.msk.f32.mxu1 %vm12147_vm3, %v15587_v5 }
  0x51   :  { %2140 = vperm.xlu0 %12115, %v9697_v16   ;;  %2135 = vperm.xlu1 %12116, %v9696_v25   ;;  %v9811_v16 = vld [vmem:[%s15576_s2 + $0x1d0] sm:$0xff]  ;;  %v9723_v25 = vld [vmem:[%s15575_s1 + $0x138] sm:$0xff] }
  0x53   :  { %10672 = vmatmul.mubr.msk.f32.gmra.mrb[38].mxu0 %vm90_vm4, %v58_v6  ;;  %10750 = vmatmul.mubr.msk.f32.gmra.mrb[38].mxu1 %vm90_vm4, %v84_v7  ;;  %v9758_v6 = vld [vmem:[%s15576_s2 + $0x178] sm:$0xff] }
  0x54   :  { %10674 = vmatprep.mubr.msk.f32.mxu0 %vm12147_vm3, %v15587_v5  ;;  %10752 = vmatprep.mubr.msk.f32.mxu1 %vm12147_vm3, %v15587_v5  ;;  %v878_v7 = vld [vmem:[%s15575_s1 + $0x58] sm:$0xff] }
  0x55   :  { %2150 = vperm.xlu0 %12115, %v9699_v20   ;;  %2145 = vperm.xlu1 %12116, %v9698_v29   ;;  %v9813_v20 = vld [vmem:[%s15576_s2 + $0x1e0] sm:$0xff] }
  0x56   :  { %v9724_v29 = vld [vmem:[%s15575_s1 + $0x140] sm:$0xff] }
  0x57   :  { %10675 = vmatmul.mubr.msk.f32.gmra.mrb[40].mxu0 %vm90_vm4, %v59_v10  ;;  %10753 = vmatmul.mubr.msk.f32.gmra.mrb[40].mxu1 %vm90_vm4, %v85_v11  ;;  %v9760_v10 = vld [vmem:[%s15576_s2 + $0x188] sm:$0xff]  ;;  %v879_v11 = vld [vmem:[%s15575_s1 + $0x60] sm:$0x3] }
  0x58   :  { %10677 = vmatprep.mubr.msk.f32.mxu0 %vm12147_vm3, %v15587_v5  ;;  %10755 = vmatprep.mubr.msk.f32.mxu1 %vm12147_vm3, %v15587_v5 }
  0x59   :  { %2160 = vperm.xlu0 %12115, %v9701_v24   ;;  %2155 = vperm.xlu1 %12116, %v9700_v33   ;;  %v9815_v24 = vld [vmem:[%s15576_s2 + $0x1f0] sm:$0xff]  ;;  %v9725_v33 = vld [vmem:[%s15575_s1 + $0x148] sm:$0xff] }
  0x5b   :  { %10678 = vmatmul.mubr.msk.f32.gmra.mrb[42].mxu0 %vm90_vm4, %v60_v14  ;;  %10756 = vmatmul.mubr.msk.f32.gmra.mrb[42].mxu1 %vm90_vm4, %v86_v15  ;;  %v9762_v14 = vld [vmem:[%s15576_s2 + $0x198] sm:$0x3]  ;;  %v9599_v15 = vld [vmem:[%s15575_s1 + $0x68] sm:$0xff] }
  0x5c   :  { %10680 = vmatprep.mubr.msk.f32.mxu0 %vm12147_vm3, %v15587_v5  ;;  %10758 = vmatprep.mubr.msk.f32.mxu1 %vm12147_vm3, %v15587_v5 }
  0x5d   :  { %2170 = vperm.xlu0 %12115, %v9703_v28   ;;  %2165 = vperm.xlu1 %12116, %v9702_v38   ;;  %v9817_v28 = vld [vmem:[%s15576_s2 + $0x200] sm:$0x3]  ;;  %v9816_v38 = vld [vmem:[%s15576_s2 + $0x1f8] sm:$0xff] }
  0x5f   :  { %10681 = vmatmul.mubr.msk.f32.gmra.mrb[44].mxu0 %vm90_vm4, %v61_v18  ;;  %10759 = vmatmul.mubr.msk.f32.gmra.mrb[44].mxu1 %vm90_vm4, %v87_v19  ;;  %v9806_v18 = vld [vmem:[%s15576_s2 + $0x1a8] sm:$0xff]  ;;  %v9600_v19 = vld [vmem:[%s15575_s1 + $0x70] sm:$0xff] }
  0x60   :  { %10683 = vmatprep.mubr.msk.f32.mxu0 %vm12147_vm3, %v15587_v5  ;;  %10765 = vmatprep.mubr.msk.f32.mxu1 %vm12147_vm3, %v15587_v5 }
  0x61   :  { %2180 = vperm.xlu0 %12115, %v9705_v32   ;;  %2175 = vperm.xlu1 %12116, %v9704_v42   ;;  %v9861_v32 = vld [vmem:[%s15576_s2 + $0x210] sm:$0xff]  ;;  %v9860_v42 = vld [vmem:[%s15576_s2 + $0x208] sm:$0xff] }
  0x63   :  { %10684 = vmatmul.mubr.msk.f32.gmra.mrb[46].mxu0 %vm90_vm4, %v62_v22  ;;  %10766 = vmatmul.mubr.msk.f32.vlgmr.msra.gmra.mrb[46].mxu1 %vm90_vm4, %v867_v23  ;;  %v9808_v22 = vld [vmem:[%s15576_s2 + $0x1b8] sm:$0xff] }
  0x64   :  { %10686 = vmatprep.mubr.msk.f32.mxu0 %vm12147_vm3, %v15587_v5  ;;  %10768 = vmatprep.mubr.msk.f32.mxu1 %vm12147_vm3, %v15587_v5  ;;  %v9601_v23 = vld [vmem:[%s15575_s1 + $0x78] sm:$0xff] }
  0x65   :  { %11773 = vmatpush3.bf16.msk.msra.mxu1 %vm12220_vm2, %v12218_v3  ;;  %2190 = vperm.xlu0 %12115, %v9707_v36   ;;  %v9863_v36 = vld [vmem:[%s15576_s2 + $0x220] sm:$0xff] }
  0x66   :  { %10847 = vmatprep.subr.mxu1 %v15587_v5  ;;  %2185 = vperm.xlu1 %12116, %v9706_v46   ;;  %v9862_v46 = vld [vmem:[%s15576_s2 + $0x218] sm:$0xff] }
  0x67   :  { %10687 = vmatmul.mubr.msk.f32.gmra.mrb[48].mxu0 %vm90_vm4, %v63_v26  ;;  %10769 = vmatmul.mubr.msk.f32.gmra.mrb[48].mxu1 %vm90_vm4, %v868_v27  ;;  %v9810_v26 = vld [vmem:[%s15576_s2 + $0x1c8] sm:$0xff]  ;;  %v9602_v27 = vld [vmem:[%s15575_s1 + $0x80] sm:$0xff] }
  0x68   :  { %10689 = vmatprep.mubr.msk.f32.mxu0 %vm12147_vm3, %v15587_v5  ;;  %10771 = vmatprep.mubr.msk.f32.mxu1 %vm12147_vm3, %v15587_v5 }
  0x69   :  { %2649 = vperm.xlu0 %12115, %v9751_v40   ;;  %v9865_v40 = vld [vmem:[%s15576_s2 + $0x230] sm:$0xff] }
  0x6a   :  { %2644 = vperm.xlu1 %12116, %v9750_v50   ;;  %v9864_v50 = vld [vmem:[%s15576_s2 + $0x228] sm:$0xff] }
  0x6b   :  { %10690 = vmatmul.mubr.msk.f32.gmra.mrb[50].mxu0 %vm90_vm4, %v64_v30  ;;  %10772 = vmatmul.mubr.msk.f32.gmra.mrb[50].mxu1 %vm90_vm4, %v869_v31  ;;  %v9812_v30 = vld [vmem:[%s15576_s2 + $0x1d8] sm:$0xff]  ;;  %v9603_v31 = vld [vmem:[%s15575_s1 + $0x88] sm:$0xff] }
  0x6c   :  { %10933 = vmatprep.mubr.msk.f32.mxu0 %vm12147_vm3, %v15587_v5  ;;  %10774 = vmatprep.mubr.msk.f32.mxu1 %vm12147_vm3, %v15587_v5 }
  0x6d   :  { %2659 = vperm.xlu0 %12115, %v9753_v44   ;;  %v9867_v44 = vld [vmem:[%s15576_s2 + $0x240] sm:$0xff] }
  0x6e   :  { %2654 = vperm.xlu1 %12116, %v9752_v54   ;;  %v9866_v54 = vld [vmem:[%s15576_s2 + $0x238] sm:$0xff] }
  0x6f   :  { %10934 = vmatmul.mubr.msk.f32.vlgmr.msra.gmra.mrb[52].mxu0 %vm90_vm4, %v9668_v34  ;;  %10775 = vmatmul.mubr.msk.f32.gmra.mrb[52].mxu1 %vm90_vm4, %v870_v35  ;;  %v9814_v34 = vld [vmem:[%s15576_s2 + $0x1e8] sm:$0xff]  ;;  %v9604_v35 = vld [vmem:[%s15575_s1 + $0x90] sm:$0xff] }
  0x70   :  { %10936 = vmatprep.mubr.msk.f32.mxu0 %vm12147_vm3, %v15587_v5  ;;  %11781 = vmatpush3.bf16.msk.msra.mxu0 %vm12220_vm2, %v12218_v3 }
  0x71   :  { %11782 = vmatprep.subr.bf16.mxu0 %v15586_v2  ;;  %10777 = vmatprep.mubr.msk.f32.mxu1 %vm12147_vm3, %v15587_v5 }
  0x72   :  { %2669 = vperm.xlu0 %12115, %v9755_v48   ;;  %2664 = vperm.xlu1 %12116, %v9754_v58   ;;  %v9869_v48 = vld [vmem:[%s15576_s2 + $0x250] sm:$0xff]  ;;  %v9868_v58 = vld [vmem:[%s15576_s2 + $0x248] sm:$0xff] }
  0x73   :  { %10937 = vmatmul.mubr.msk.f32.gmra.mrb[54].mxu0 %vm90_vm4, %v9669_v37  ;;  %10778 = vmatmul.mubr.msk.f32.gmra.mrb[54].mxu1 %vm90_vm4, %v871_v39  ;;  %v9726_v37 = vld [vmem:[%s15575_s1 + $0x150] sm:$0xff]  ;;  %v9605_v39 = vld [vmem:[%s15575_s1 + $0x98] sm:$0xff] }
  0x74   :  { %10939 = vmatprep.mubr.msk.f32.mxu0 %vm12147_vm3, %v15587_v5  ;;  %10780 = vmatprep.mubr.msk.f32.mxu1 %vm12147_vm3, %v15587_v5 }
  0x76   :  { %2679 = vperm.xlu0 %12115, %v9757_v52   ;;  %2674 = vperm.xlu1 %12116, %v9756_v62   ;;  %v9871_v52 = vld [vmem:[%s15576_s2 + $0x260] sm:$0xff]  ;;  %v9870_v62 = vld [vmem:[%s15576_s2 + $0x258] sm:$0xff] }
  0x77   :  { %10940 = vmatmul.mubr.msk.f32.gmra.mrb[56].mxu0 %vm90_vm4, %v9670_v41  ;;  %10781 = vmatmul.mubr.msk.f32.gmra.mrb[56].mxu1 %vm90_vm4, %v872_v43  ;;  %v9727_v41 = vld [vmem:[%s15575_s1 + $0x158] sm:$0xff]  ;;  %v9606_v43 = vld [vmem:[%s15575_s1 + $0xa0] sm:$0xff] }
  0x78   :  { %10942 = vmatprep.mubr.msk.f32.mxu0 %vm12147_vm3, %v15587_v5  ;;  %10783 = vmatprep.mubr.msk.f32.mxu1 %vm12147_vm3, %v15587_v5 }
  0x7a   :  { %2689 = vperm.xlu0 %12115, %v9759_v56   ;;  %2684 = vperm.xlu1 %12116, %v9758_v6   ;;  %v9915_v56 = vld [vmem:[%s15576_s2 + $0x270] sm:$0xff]  ;;  %v9872_v6 = vld [vmem:[%s15576_s2 + $0x268] sm:$0x3] }
  0x7b   :  { %10943 = vmatmul.mubr.msk.f32.gmra.mrb[58].mxu0 %vm90_vm4, %v9671_v45  ;;  %10784 = vmatmul.mubr.msk.f32.gmra.mrb[58].mxu1 %vm90_vm4, %v873_v47  ;;  %v9728_v45 = vld [vmem:[%s15575_s1 + $0x160] sm:$0xff]  ;;  %v9607_v47 = vld [vmem:[%s15575_s1 + $0xa8] sm:$0xff] }
  0x7c   :  { %10945 = vmatprep.mubr.msk.f32.mxu0 %vm12147_vm3, %v15587_v5  ;;  %10786 = vmatprep.mubr.msk.f32.mxu1 %vm12147_vm3, %v15587_v5 }
  0x7e   :  { %2699 = vperm.xlu0 %12115, %v9761_v60   ;;  %2694 = vperm.xlu1 %12116, %v9760_v10   ;;  %v9917_v60 = vld [vmem:[%s15576_s2 + $0x280] sm:$0xff]  ;;  %v9923_v10 = vld [vmem:[%s15576_s2 + $0x2b0] sm:$0xff] }
  0x7f   :  { %10946 = vmatmul.mubr.msk.f32.gmra.mrb[60].mxu0 %vm90_vm4, %v9672_v49  ;;  %10787 = vmatmul.mubr.msk.f32.gmra.mrb[60].mxu1 %vm90_vm4, %v874_v51  ;;  %v9729_v49 = vld [vmem:[%s15575_s1 + $0x168] sm:$0xff]  ;;  %v9608_v51 = vld [vmem:[%s15575_s1 + $0xb0] sm:$0xff] }
  0x80   :  { %10948 = vmatprep.mubr.msk.f32.mxu0 %vm12147_vm3, %v15587_v5  ;;  %10789 = vmatprep.mubr.msk.f32.mxu1 %vm12147_vm3, %v15587_v5 }
  0x82   :  { %3158 = vperm.xlu0 %12115, %v9805_v0   ;;  %2704 = vperm.xlu1 %12116, %v9762_v14   ;;  %v9919_v0 = vld [vmem:[%s15576_s2 + $0x290] sm:$0xff]  ;;  %v9778_v14 = vld [vmem:[%s15575_s1 + $0x1a0] sm:$0xff] }
  0x83   :  { %10949 = vmatmul.mubr.msk.f32.gmra.mrb[62].mxu0 %vm90_vm4, %v9673_v53  ;;  %10790 = vmatmul.mubr.msk.f32.gmra.mrb[62].mxu1 %vm90_vm4, %v875_v55  ;;  %v9730_v53 = vld [vmem:[%s15575_s1 + $0x170] sm:$0xff]  ;;  %v9609_v55 = vld [vmem:[%s15575_s1 + $0xb8] sm:$0xff] }
  0x84   :  { %10951 = vmatprep.mubr.msk.f32.mxu0 %vm12147_vm3, %v15587_v5  ;;  %10792 = vmatprep.mubr.msk.f32.mxu1 %vm12147_vm3, %v15587_v5 }
  0x86   :  { %3168 = vperm.xlu0 %12115, %v9807_v8   ;;  %3163 = vperm.xlu1 %12116, %v9806_v18   ;;  %v9734_v8 = vld [vmem:[%s15575_s1 + $0x190] sm:$0xff]  ;;  %v9922_v18 = vld [vmem:[%s15576_s2 + $0x2a8] sm:$0xff] }
  0x87   :  { %10952 = vmatmul.mubr.msk.f32.gmra.mrb[64].mxu0 %vm90_vm4, %v9674_v57  ;;  %10793 = vmatmul.mubr.msk.f32.gmra.mrb[64].mxu1 %vm90_vm4, %v876_v59  ;;  %v9731_v57 = vld [vmem:[%s15575_s1 + $0x178] sm:$0xff]  ;;  %v9610_v59 = vld [vmem:[%s15575_s1 + $0xc0] sm:$0xff] }
  0x88   :  { %10954 = vmatprep.mubr.msk.f32.mxu0 %vm12147_vm3, %v15587_v5  ;;  %10795 = vmatprep.mubr.msk.f32.mxu1 %vm12147_vm3, %v15587_v5 }
  0x8a   :  { %3178 = vperm.xlu0 %12115, %v9809_v12   ;;  %3173 = vperm.xlu1 %12116, %v9808_v22   ;;  %v9918_v12 = vld [vmem:[%s15576_s2 + $0x288] sm:$0xff]  ;;  %v9971_v22 = vld [vmem:[%s15576_s2 + $0x2e0] sm:$0xff] }
  0x8b   :  { %10955 = vmatmul.mubr.msk.f32.gmra.mrb[66].mxu0 %vm90_vm4, %v9675_v61  ;;  %10796 = vmatmul.mubr.msk.f32.gmra.mrb[66].mxu1 %vm90_vm4, %v877_v63  ;;  %v9732_v61 = vld [vmem:[%s15575_s1 + $0x180] sm:$0xff]  ;;  %v9611_v63 = vld [vmem:[%s15575_s1 + $0xc8] sm:$0x3] }
  0x8c   :  { %10957 = vmatprep.mubr.msk.f32.mxu0 %vm12147_vm3, %v15587_v5  ;;  %10798 = vmatprep.mubr.msk.f32.mxu1 %vm12147_vm3, %v15587_v5 }
  0x8e   :  { %3188 = vperm.xlu0 %12115, %v9811_v16   ;;  %3183 = vperm.xlu1 %12116, %v9810_v26   ;;  %v9927_v16 = vld [vmem:[%s15576_s2 + $0x2d0] sm:$0x3] }
  0x8f   :  { %10958 = vmatmul.mubr.msk.f32.gmra.mrb[68].mxu0 %vm90_vm4, %v9676_v1  ;;  %10799 = vmatmul.mubr.msk.f32.gmra.mrb[68].mxu1 %vm90_vm4, %v878_v7  ;;  %v9733_v1 = vld [vmem:[%s15575_s1 + $0x188] sm:$0xff]  ;;  %v9921_v7 = vld [vmem:[%s15576_s2 + $0x2a0] sm:$0xff] }
  0x90   :  { %10960 = vmatprep.mubr.msk.f32.mxu0 %vm12147_vm3, %v15587_v5  ;;  %10801 = vmatprep.mubr.msk.f32.mxu1 %vm12147_vm3, %v15587_v5 }
  0x92   :  { %3198 = vperm.xlu0 %12115, %v9813_v20   ;;  %3193 = vperm.xlu1 %12116, %v9812_v30  }
  0x93   :  { %10961 = vmatmul.mubr.msk.f32.gmra.mrb[70].mxu0 %vm90_vm4, %v9677_v9  ;;  %10802 = vmatmul.mubr.msk.f32.gmra.mrb[70].mxu1 %vm90_vm4, %v879_v11  ;;  %v9916_v9 = vld [vmem:[%s15576_s2 + $0x278] sm:$0xff] }
  0x94   :  { %10963 = vmatprep.mubr.msk.f32.mxu0 %vm12147_vm3, %v15587_v5  ;;  %10808 = vmatprep.mubr.msk.f32.mxu1 %vm12147_vm3, %v15587_v5  ;;  %v9735_v11 = vld [vmem:[%s15575_s1 + $0x198] sm:$0x3] }
  0x96   :  { %3208 = vperm.xlu0 %12115, %v9815_v24   ;;  %3203 = vperm.xlu1 %12116, %v9814_v34  }
  0x97   :  { %10964 = vmatmul.mubr.msk.f32.gmra.mrb[72].mxu0 %vm90_vm4, %v9678_v13  ;;  %10809 = vmatmul.mubr.msk.f32.vlgmr.msra.gmra.mrb[72].mxu1 %vm90_vm4, %v9599_v15  ;;  %v9925_v13 = vld [vmem:[%s15576_s2 + $0x2c0] sm:$0xff]  ;;  %v9920_v15 = vld [vmem:[%s15576_s2 + $0x298] sm:$0xff] }
  0x98   :  { %10966 = vmatprep.mubr.msk.f32.mxu0 %vm12147_vm3, %v15587_v5  ;;  %10811 = vmatprep.mubr.msk.f32.mxu1 %vm12147_vm3, %v15587_v5 }
  0x9a   :  { %3218 = vperm.xlu0 %12115, %v9817_v28   ;;  %3213 = vperm.xlu1 %12116, %v9816_v38  }
  0x9b   :  { %10967 = vmatmul.mubr.msk.f32.gmra.mrb[74].mxu0 %vm90_vm4, %v9679_v17  ;;  %10812 = vmatmul.mubr.msk.f32.gmra.mrb[74].mxu1 %vm90_vm4, %v9600_v19  ;;  %v9779_v17 = vld [vmem:[%s15575_s1 + $0x1a8] sm:$0xff] }
  0x9c   :  { %10969 = vmatprep.mubr.msk.f32.mxu0 %vm12147_vm3, %v15587_v5  ;;  %10814 = vmatprep.mubr.msk.f32.mxu1 %vm12147_vm3, %v15587_v5 }
  0x9e   :  { %3677 = vperm.xlu0 %12115, %v9861_v32   ;;  %3672 = vperm.xlu1 %12116, %v9860_v42   ;;  %v9782_v42 = vld [vmem:[%s15575_s1 + $0x1c0] sm:$0xff] }
  0x9f   :  { %10970 = vmatmul.mubr.msk.f32.gmra.mrb[76].mxu0 %vm90_vm4, %v9680_v21  ;;  %10815 = vmatmul.mubr.msk.f32.gmra.mrb[76].mxu1 %vm90_vm4, %v9601_v23  ;;  %v9780_v23 = vld [vmem:[%s15575_s1 + $0x1b0] sm:$0xff] }
  0xa0   :  { %11017 = vmatprep.mubr.msk.f32.mxu0 %vm12147_vm3, %v15587_v5  ;;  %10817 = vmatprep.mubr.msk.f32.mxu1 %vm12147_vm3, %v15587_v5 }
  0xa2   :  { %3687 = vperm.xlu0 %12115, %v9863_v36   ;;  %3682 = vperm.xlu1 %12116, %v9862_v46  }
  0xa3   :  { %11018 = vmatmul.mubr.msk.f32.vlgmr.msra.gmra.mrb[78].mxu0 %vm90_vm4, %v9723_v25  ;;  %10818 = vmatmul.mubr.msk.f32.gmra.mrb[78].mxu1 %vm90_vm4, %v9602_v27  ;;  %v9924_v25 = vld [vmem:[%s15576_s2 + $0x2b8] sm:$0xff] }
  0xa4   :  { %11020 = vmatprep.mubr.msk.f32.mxu0 %vm12147_vm3, %v15587_v5  ;;  %11785 = vmatpush3.bf16.msk.msra.mxu0 %vm12220_vm2, %v12218_v3 }
  0xa5   :  { %11786 = vmatprep.subr.bf16.mxu0 %v15586_v2  ;;  %10820 = vmatprep.mubr.msk.f32.mxu1 %vm12147_vm3, %v15587_v5 }
  0xa6   :  { %3697 = vperm.xlu0 %12115, %v9865_v40   ;;  %3692 = vperm.xlu1 %12116, %v9864_v50   ;;  %v9975_v40 = vld [vmem:[%s15576_s2 + $0x300] sm:$0xff] }
  0xa7   :  { %11021 = vmatmul.mubr.msk.f32.gmra.mrb[80].mxu0 %vm90_vm4, %v9724_v29  ;;  %10821 = vmatmul.mubr.msk.f32.gmra.mrb[80].mxu1 %vm90_vm4, %v9603_v31  ;;  %v9973_v31 = vld [vmem:[%s15576_s2 + $0x2f0] sm:$0xff] }
  0xa8   :  { %11023 = vmatprep.mubr.msk.f32.mxu0 %vm12147_vm3, %v15587_v5  ;;  %10823 = vmatprep.mubr.msk.f32.mxu1 %vm12147_vm3, %v15587_v5 }
  0xaa   :  { %3707 = vperm.xlu0 %12115, %v9867_v44   ;;  %3702 = vperm.xlu1 %12116, %v9866_v54   ;;  %v9970_v44 = vld [vmem:[%s15576_s2 + $0x2d8] sm:$0xff] }
  0xab   :  { %11024 = vmatmul.mubr.msk.f32.gmra.mrb[82].mxu0 %vm90_vm4, %v9725_v33  ;;  %10824 = vmatmul.mubr.msk.f32.gmra.mrb[82].mxu1 %vm90_vm4, %v9604_v35  ;;  %v9781_v33 = vld [vmem:[%s15575_s1 + $0x1b8] sm:$0xff]  ;;  %v9926_v35 = vld [vmem:[%s15576_s2 + $0x2c8] sm:$0xff] }
  0xac   :  { %11026 = vmatprep.mubr.msk.f32.mxu0 %vm12147_vm3, %v15587_v5  ;;  %10826 = vmatprep.mubr.msk.f32.mxu1 %vm12147_vm3, %v15587_v5 }
  0xae   :  { %3717 = vperm.xlu0 %12115, %v9869_v48   ;;  %3712 = vperm.xlu1 %12116, %v9868_v58  }
  0xaf   :  { %11027 = vmatmul.mubr.msk.f32.gmra.mrb[84].mxu0 %vm90_vm4, %v9726_v37  ;;  %10827 = vmatmul.mubr.msk.f32.gmra.mrb[84].mxu1 %vm90_vm4, %v9605_v39 }
  0xb0   :  { %11029 = vmatprep.mubr.msk.f32.mxu0 %vm12147_vm3, %v15587_v5  ;;  %10829 = vmatprep.mubr.msk.f32.mxu1 %vm12147_vm3, %v15587_v5 }
  0xb2   :  { %3727 = vperm.xlu0 %12115, %v9871_v52   ;;  %3722 = vperm.xlu1 %12116, %v9870_v62  }
  0xb3   :  { %11030 = vmatmul.mubr.msk.f32.gmra.mrb[86].mxu0 %vm90_vm4, %v9727_v41  ;;  %10830 = vmatmul.mubr.msk.f32.gmra.mrb[86].mxu1 %vm90_vm4, %v9606_v43 }
  0xb4   :  { %11032 = vmatprep.mubr.msk.f32.mxu0 %vm12147_vm3, %v15587_v5  ;;  %10832 = vmatprep.mubr.msk.f32.mxu1 %vm12147_vm3, %v15587_v5 }
  0xb6   :  { %4186 = vperm.xlu0 %12115, %v9915_v56   ;;  %3732 = vperm.xlu1 %12116, %v9872_v6  }
  0xb7   :  { %11033 = vmatmul.mubr.msk.f32.gmra.mrb[88].mxu0 %vm90_vm4, %v9728_v45  ;;  %10833 = vmatmul.mubr.msk.f32.gmra.mrb[88].mxu1 %vm90_vm4, %v9607_v47 }
  0xb8   :  { %11035 = vmatprep.mubr.msk.f32.mxu0 %vm12147_vm3, %v15587_v5  ;;  %10835 = vmatprep.mubr.msk.f32.mxu1 %vm12147_vm3, %v15587_v5 }
  0xba   :  { %4196 = vperm.xlu0 %12115, %v9917_v60   ;;  %4191 = vperm.xlu1 %12116, %v9916_v9   ;;  %v9784_v60 = vld [vmem:[%s15575_s1 + $0x1d0] sm:$0xff] }
  0xbb   :  { %11036 = vmatmul.mubr.msk.f32.gmra.mrb[90].mxu0 %vm90_vm4, %v9729_v49  ;;  %10836 = vmatmul.mubr.msk.f32.gmra.mrb[90].mxu1 %vm90_vm4, %v9608_v51  ;;  %v9977_v49 = vld [vmem:[%s15576_s2 + $0x310] sm:$0xff]  ;;  %v9783_v51 = vld [vmem:[%s15575_s1 + $0x1c8] sm:$0xff] }
  0xbc   :  { %11038 = vmatprep.mubr.msk.f32.mxu0 %vm12147_vm3, %v15587_v5  ;;  %10838 = vmatprep.mubr.msk.f32.mxu1 %vm12147_vm3, %v15587_v5 }
  0xbe   :  { %4206 = vperm.xlu0 %12115, %v9919_v0   ;;  %4201 = vperm.xlu1 %12116, %v9918_v12  }
  0xbf   :  { %11039 = vmatmul.mubr.msk.f32.gmra.mrb[92].mxu0 %vm90_vm4, %v9730_v53  ;;  %10839 = vmatmul.mubr.msk.f32.gmra.mrb[92].mxu1 %vm90_vm4, %v9609_v55  ;;  %v9972_v53 = vld [vmem:[%s15576_s2 + $0x2e8] sm:$0xff]  ;;  %v13217_v55 = vpop.permute.xlu0 %1456 }
  0xc0   :  { %11041 = vmatprep.mubr.msk.f32.mxu0 %vm12147_vm3, %v15587_v5  ;;  %10841 = vmatprep.mubr.msk.f32.mxu1 %vm12147_vm3, %v15587_v5 }
  0xc2   :  { %4216 = vperm.xlu0 %12115, %v9921_v7   ;;  %4211 = vperm.xlu1 %12116, %v9920_v15   ;;  %v9785_v7 = vld [vmem:[%s15575_s1 + $0x1d8] sm:$0xff] }
  0xc3   :  { %11042 = vmatmul.mubr.msk.f32.gmra.mrb[94].mxu0 %vm90_vm4, %v9731_v57  ;;  %10842 = vmatmul.mubr.msk.f32.gmra.mrb[94].mxu1 %vm90_vm4, %v9610_v59 }
  0xc4   :  { %11044 = vmatprep.mubr.msk.f32.mxu0 %vm12147_vm3, %v15587_v5  ;;  %10844 = vmatprep.mubr.msk.f32.mxu1 %vm12147_vm3, %v15587_v5 }
  0xc6   :  { %4226 = vperm.xlu0 %12115, %v9923_v10   ;;  %4221 = vperm.xlu1 %12116, %v9922_v18  }
  0xc7   :  { %11045 = vmatmul.mubr.msk.f32.gmra.mrb[96].mxu0 %vm90_vm4, %v9732_v61  ;;  %10845 = vmatmul.mubr.msk.f32.gmra.mrb[96].mxu1 %vm90_vm4, %v9611_v63 }
  0xc8   :  { %11047 = vmatprep.mubr.msk.f32.mxu0 %vm12147_vm3, %v15587_v5  ;;  %10849 = vmatprep.mubr.msk.f32.mxu1 %vm12147_vm3, %v15587_v5 }
  0xca   :  { %4236 = vperm.xlu0 %12115, %v9925_v13   ;;  %4231 = vperm.xlu1 %12116, %v9924_v25  }
  0xcb   :  { %11048 = vmatmul.mubr.msk.f32.gmra.mrb[98].mxu0 %vm90_vm4, %v9733_v1 }
  0xcc   :  { %11050 = vmatprep.mubr.msk.f32.mxu0 %vm12147_vm3, %v15587_v5 }
  0xce   :  { %4246 = vperm.xlu0 %12115, %v9927_v16   ;;  %4241 = vperm.xlu1 %12116, %v9926_v35   ;;  %v13279_v35 = vpop.permute.xlu0 %1461 }
  0xcf   :  { %11051 = vmatmul.mubr.msk.f32.gmra.mrb[100].mxu0 %vm90_vm4, %v9734_v8 }
  0xd0   :  { %11053 = vmatprep.mubr.msk.f32.mxu0 %vm12147_vm3, %v15587_v5 }
  0xd2   :  { %4705 = vperm.xlu0 %12115, %v9971_v22   ;;  %4700 = vperm.xlu1 %12116, %v9970_v44  }
  0xd3   :  { %11054 = vmatmul.mubr.msk.f32.gmra.mrb[102].mxu0 %vm90_vm4, %v9735_v11 }
  0xd4   :  { %11101 = vmatprep.mubr.msk.f32.mxu0 %vm12147_vm3, %v15587_v5 }
  0xd6   :  { %4715 = vperm.xlu0 %12115, %v9973_v31   ;;  %4710 = vperm.xlu1 %12116, %v9972_v53  }
  0xd7   :  { %11102 = vmatmul.mubr.msk.f32.vlgmr.msra.gmra.mrb[104].mxu0 %vm90_vm4, %v9778_v14  ;;  %v9786_v14 = vld [vmem:[%s15575_s1 + $0x1e0] sm:$0xff] }
  0xd8   :  { %11104 = vmatprep.mubr.msk.f32.mxu0 %vm12147_vm3, %v15587_v5  ;;  %11789 = vmatpush3.bf16.msk.msra.mxu0 %vm12220_vm2, %v12218_v3 }
  0xd9   :  { %11790 = vmatprep.subr.bf16.mxu0 %v15586_v2 }
  0xda   :  { %v13143_v19 = vpop.f32.mrb[0].mxu0  ;;  %v13146_v21 = vpop.f32.mrb[0].mxu1  ;;  %4725 = vperm.xlu0 %12115, %v9975_v40  }
  0xdb   :  { %v10616_v20 = vpop.f32.mrb[1].mxu0  ;;  %11105 = vmatmul.mubr.msk.f32.gmra.mrb[106].mxu0 %vm90_vm4, %v9779_v17  ;;  %v10694_v24 = vpop.f32.mrb[1].mxu1  ;;  %v553_v27 = vsel %vm552_vm5, %v13143_v19, 0.0 }
  0xdc   :  { %11107 = vmatprep.mubr.msk.f32.mxu0 %vm12147_vm3, %v15587_v5 }
  0xde   :  { %v13159_v26 = vpop.f32.mrb[2].mxu0  ;;  %v13166_v30 = vpop.f32.mrb[2].mxu1  ;;  %4735 = vperm.xlu0 %12115, %v9977_v49  }
  0xdf   :  { %v554_v28 = vsel %vm552_vm5, %v13159_v26, 0.0  ;;  %v10619_v29 = vpop.f32.mrb[3].mxu0  ;;  %11108 = vmatmul.mubr.msk.f32.gmra.mrb[108].mxu0 %vm90_vm4, %v9780_v23  ;;  %v10697_v34 = vpop.f32.mrb[3].mxu1  ;;  %v9787_v23 = vld [vmem:[%s15575_s1 + $0x1e8] sm:$0xff] }
  0xe0   :  { %v555_v32 = vadd.f32 %v554_v28, %v553_v27  ;;  %11110 = vmatprep.mubr.msk.f32.mxu0 %vm12147_vm3, %v15587_v5 }
  0xe2   :  { %v13179_v36 = vpop.f32.mrb[4].mxu0  ;;  %v13184_v39 = vpop.f32.mrb[4].mxu1 }
  0xe3   :  { %v556_v37 = vsel %vm552_vm5, %v13179_v36, 0.0  ;;  %v10622_v38 = vpop.f32.mrb[5].mxu0  ;;  %11111 = vmatmul.mubr.msk.f32.gmra.mrb[110].mxu0 %vm90_vm4, %v9781_v33  ;;  %v10700_v43 = vpop.f32.mrb[5].mxu1 }
  0xe4   :  { %v557_v41 = vadd.f32 %v556_v37, %v555_v32  ;;  %11113 = vmatprep.mubr.msk.f32.mxu0 %vm12147_vm3, %v15587_v5  ;;  %v9788_v32 = vld [vmem:[%s15575_s1 + $0x1f0] sm:$0xff] }
  0xe6   :  { %v13197_v45 = vpop.f32.mrb[6].mxu0  ;;  %v13202_v48 = vpop.f32.mrb[6].mxu1 }
  0xe7   :  { %v558_v46 = vsel %vm552_vm5, %v13197_v45, 0.0  ;;  %v10625_v47 = vpop.f32.mrb[7].mxu0  ;;  %11114 = vmatmul.mubr.msk.f32.gmra.mrb[112].mxu0 %vm90_vm4, %v9782_v42  ;;  %v10703_v52 = vpop.f32.mrb[7].mxu1  ;;  %v9789_v42 = vld [vmem:[%s15575_s1 + $0x1f8] sm:$0xff] }
  0xe8   :  { %v559_v50 = vadd.f32 %v558_v46, %v557_v41  ;;  %11116 = vmatprep.mubr.msk.f32.mxu0 %vm12147_vm3, %v15587_v5  ;;  %v13303_v52 = vpop.permute.xlu0 %1476 }
  0xe9   :  { %15593 = vst [vmem:[#allocation5_spill] sm:$0xff] %v13303_v52 }
  0xea   :  { %v13215_v54 = vpop.f32.mrb[8].mxu0  ;;  %v13222_v58 = vpop.f32.mrb[8].mxu1 }
  0xeb   :  { %v560_v56 = vsel %vm552_vm5, %v13215_v54, 0.0  ;;  %v10628_v57 = vpop.f32.mrb[9].mxu0  ;;  %11117 = vmatmul.mubr.msk.f32.gmra.mrb[114].mxu0 %vm90_vm4, %v9783_v51  ;;  %v10706_v61 = vpop.f32.mrb[9].mxu1  ;;  %v9790_v51 = vld [vmem:[%s15575_s1 + $0x200] sm:$0x3] }
  0xec   :  { %v561_v59 = vadd.f32 %v560_v56, %v559_v50  ;;  %11119 = vmatprep.mubr.msk.f32.mxu0 %vm12147_vm3, %v15587_v5  ;;  %v13307_v57 = vpop.permute.xlu1 %1466 }
  0xed   :  { %15594 = vst [vmem:[#allocation6_spill] sm:$0xff] %v13307_v57  ;;  %v608_v57 = vsel %vm552_vm5, %v13184_v39, 0.0 }
  0xee   :  { %v13229_v62 = vpop.f32.mrb[10].mxu0  ;;  %v13234_v1 = vpop.f32.mrb[10].mxu1 }
  0xef   :  { %v562_v63 = vsel %vm552_vm5, %v13229_v62, 0.0  ;;  %v10631_v0 = vpop.f32.mrb[11].mxu0  ;;  %11120 = vmatmul.mubr.msk.f32.gmra.mrb[116].mxu0 %vm90_vm4, %v9784_v60  ;;  %v10709_v8 = vpop.f32.mrb[11].mxu1 }
  0xf0   :  { %v563_v6 = vadd.f32 %v562_v63, %v561_v59  ;;  %11122 = vmatprep.mubr.msk.f32.mxu0 %vm12147_vm3, %v15587_v5  ;;  %v9833_v0 = vld [vmem:[%s15575_s1 + $0x208] sm:$0xff]  ;;  %v13321_v8 = vpop.permute.xlu0 %1486 }
  0xf1   :  { %15595 = vst [vmem:[#allocation7_spill] sm:$0xff] %v13321_v8 }
  0xf2   :  { %v13241_v9 = vpop.f32.mrb[12].mxu0  ;;  %v13246_v12 = vpop.f32.mrb[12].mxu1 }
  0xf3   :  { %v564_v10 = vsel %vm552_vm5, %v13241_v9, 0.0  ;;  %v10634_v11 = vpop.f32.mrb[13].mxu0  ;;  %11123 = vmatmul.mubr.msk.f32.gmra.mrb[118].mxu0 %vm90_vm4, %v9785_v7  ;;  %v10712_v15 = vpop.f32.mrb[13].mxu1 }
  0xf4   :  { %v565_v13 = vadd.f32 %v564_v10, %v563_v6  ;;  %11125 = vmatprep.mubr.msk.f32.mxu0 %vm12147_vm3, %v15587_v5  ;;  %v9834_v15 = vld [vmem:[%s15575_s1 + $0x210] sm:$0xff] }
  0xf6   :  { %v13253_v16 = vpop.f32.mrb[14].mxu0  ;;  %v13258_v20 = vpop.f32.mrb[14].mxu1 }
  0xf7   :  { %v566_v17 = vsel %vm552_vm5, %v13253_v16, 0.0  ;;  %v10637_v18 = vpop.f32.mrb[15].mxu0  ;;  %11126 = vmatmul.mubr.msk.f32.gmra.mrb[120].mxu0 %vm90_vm4, %v9786_v14  ;;  %v10715_v24 = vpop.f32.mrb[15].mxu1 }
  0xf8   :  { %v567_v22 = vadd.f32 %v566_v17, %v565_v13  ;;  %11128 = vmatprep.mubr.msk.f32.mxu0 %vm12147_vm3, %v15587_v5  ;;  %v13333_v17 = vpop.permute.xlu1 %1471 }
  0xf9   :  { %15596 = vst [vmem:[#allocation8_spill] sm:$0xff] %v13333_v17 }
  0xfa   :  { %v13265_v25 = vpop.f32.mrb[16].mxu0  ;;  %v13270_v29 = vpop.f32.mrb[16].mxu1 }
  0xfb   :  { %v568_v27 = vsel %vm552_vm5, %v13265_v25, 0.0  ;;  %v10640_v28 = vpop.f32.mrb[17].mxu0  ;;  %11129 = vmatmul.mubr.msk.f32.gmra.mrb[122].mxu0 %vm90_vm4, %v9787_v23  ;;  %v10718_v33 = vpop.f32.mrb[17].mxu1  ;;  %v9974_v23 = vld [vmem:[%s15576_s2 + $0x2f8] sm:$0xff] }
  0xfc   :  { %v569_v31 = vadd.f32 %v568_v27, %v567_v22  ;;  %11131 = vmatprep.mubr.msk.f32.mxu0 %vm12147_vm3, %v15587_v5  ;;  %v9979_v22 = vld [vmem:[%s15576_s2 + $0x320] sm:$0xff]  ;;  %4720 = vperm.xlu1 %12116, %v9974_v23   ;;  %v9835_v33 = vld [vmem:[%s15575_s1 + $0x218] sm:$0xff] }
  0xfd   :  { %4745 = vperm.xlu0 %12115, %v9979_v22   ;;  %v9837_v22 = vld [vmem:[%s15575_s1 + $0x228] sm:$0xff] }
  0xfe   :  { %v13277_v34 = vpop.f32.mrb[18].mxu0  ;;  %v13284_v40 = vpop.f32.mrb[18].mxu1 }
  0xff   :  { %v570_v37 = vsel %vm552_vm5, %v13277_v34, 0.0  ;;  %v10643_v38 = vpop.f32.mrb[19].mxu0  ;;  %11132 = vmatmul.mubr.msk.f32.gmra.mrb[124].mxu0 %vm90_vm4, %v9788_v32  ;;  %v10721_v43 = vpop.f32.mrb[19].mxu1 }
 0x100   :  { %v571_v41 = vadd.f32 %v570_v37, %v569_v31  ;;  %11134 = vmatprep.mubr.msk.f32.mxu0 %vm12147_vm3, %v15587_v5  ;;  %v13357_v37 = vpop.permute.xlu0 %1496 }
 0x101   :  { %15597 = vst [vmem:[#allocation9_spill] sm:$0xff] %v13357_v37  ;;  %v9843_v37 = vld [vmem:[%s15575_s1 + $0x258] sm:$0xff] }
 0x102   :  { %v13291_v44 = vpop.f32.mrb[20].mxu0  ;;  %v13296_v49 = vpop.f32.mrb[20].mxu1 }
 0x103   :  { %v572_v46 = vsel %vm552_vm5, %v13291_v44, 0.0  ;;  %v10646_v47 = vpop.f32.mrb[21].mxu0  ;;  %11135 = vmatmul.mubr.msk.f32.gmra.mrb[126].mxu0 %vm90_vm4, %v9789_v42  ;;  %v10724_v53 = vpop.f32.mrb[21].mxu1  ;;  %v9976_v42 = vld [vmem:[%s15576_s2 + $0x308] sm:$0xff] }
 0x104   :  { %v573_v50 = vadd.f32 %v572_v46, %v571_v41  ;;  %11137 = vmatprep.mubr.msk.f32.mxu0 %vm12147_vm3, %v15587_v5  ;;  %v9981_v41 = vld [vmem:[%s15576_s2 + $0x330] sm:$0xff]  ;;  %v13367_v46 = vpop.permute.xlu1 %1481  ;;  %4730 = vperm.xlu1 %12116, %v9976_v42  }
 0x105   :  { %15598 = vst [vmem:[#allocation10_spill] sm:$0xff] %v13367_v46  ;;  %4755 = vperm.xlu0 %12115, %v9981_v41  }
 0x106   :  { %v13305_v56 = vpop.f32.mrb[22].mxu0  ;;  %v13312_v61 = vpop.f32.mrb[22].mxu1 }
 0x107   :  { %v574_v59 = vsel %vm552_vm5, %v13305_v56, 0.0  ;;  %v10649_v60 = vpop.f32.mrb[23].mxu0  ;;  %11138 = vmatmul.mubr.msk.f32.gmra.mrb[128].mxu0 %vm90_vm4, %v9790_v51  ;;  %v10727_v6 = vpop.f32.mrb[23].mxu1 }
 0x108   :  { %v575_v63 = vadd.f32 %v574_v59, %v573_v50  ;;  %11185 = vmatprep.mubr.msk.f32.mxu0 %vm12147_vm3, %v15587_v5  ;;  %v9836_v59 = vld [vmem:[%s15575_s1 + $0x220] sm:$0xff]  ;;  %v13399_v23 = vpop.permute.xlu1 %1491 }
 0x109   :  { %15600 = vst [vmem:[#allocation12_spill] sm:$0xff] %v13399_v23 }
 0x10a   :  { %v13319_v7 = vpop.f32.mrb[24].mxu0  ;;  %v13326_v13 = vpop.f32.mrb[24].mxu1 }
 0x10b   :  { %v576_v10 = vsel %vm552_vm5, %v13319_v7, 0.0  ;;  %v10652_v11 = vpop.f32.mrb[25].mxu0  ;;  %11186 = vmatmul.mubr.msk.f32.vlgmr.msra.gmra.mrb[130].mxu0 %vm90_vm4, %v9833_v0  ;;  %v10730_v18 = vpop.f32.mrb[25].mxu1  ;;  %v9978_v0 = vld [vmem:[%s15576_s2 + $0x318] sm:$0xff] }
 0x10c   :  { %v577_v14 = vadd.f32 %v576_v10, %v575_v63  ;;  %11188 = vmatprep.mubr.msk.f32.mxu0 %vm12147_vm3, %v15587_v5  ;;  %11793 = vmatpush3.bf16.msk.msra.mxu0 %vm12220_vm2, %v12218_v3  ;;  %v10025_v63 = vld [vmem:[%s15576_s2 + $0x340] sm:$0xff]  ;;  %v13387_v10 = vpop.permute.xlu0 %1506 }
 0x10d   :  { %11794 = vmatprep.subr.bf16.mxu0 %v15586_v2  ;;  %15599 = vst [vmem:[#allocation11_spill] sm:$0xff] %v13387_v10  ;;  %5214 = vperm.xlu0 %12115, %v10025_v63   ;;  %v9982_v63 = vld [vmem:[%s15576_s2 + $0x338] sm:$0x3]  ;;  %v9842_v10 = vld [vmem:[%s15575_s1 + $0x250] sm:$0xff] }
 0x10e   :  { %v13345_v24 = vpop.f32.mrb[26].mxu0  ;;  %v13350_v31 = vpop.f32.mrb[26].mxu1  ;;  %4740 = vperm.xlu1 %12116, %v9978_v0  }
 0x10f   :  { %v578_v27 = vsel %vm552_vm5, %v13345_v24, 0.0  ;;  %v10655_v28 = vpop.f32.mrb[27].mxu0  ;;  %11189 = vmatmul.mubr.msk.f32.gmra.mrb[132].mxu0 %vm90_vm4, %v9834_v15  ;;  %v10733_v38 = vpop.f32.mrb[27].mxu1 }
 0x110   :  { %v579_v32 = vadd.f32 %v578_v27, %v577_v14  ;;  %11191 = vmatprep.mubr.msk.f32.mxu0 %vm12147_vm3, %v15587_v5  ;;  %v10027_v28 = vld [vmem:[%s15576_s2 + $0x350] sm:$0xff] }
 0x111   :  { %5224 = vperm.xlu0 %12115, %v10027_v28   ;;  %v9839_v28 = vld [vmem:[%s15575_s1 + $0x238] sm:$0xff] }
 0x112   :  { %v13365_v43 = vpop.f32.mrb[28].mxu0  ;;  %v13372_v51 = vpop.f32.mrb[28].mxu1 }
 0x113   :  { %v580_v47 = vsel %vm552_vm5, %v13365_v43, 0.0  ;;  %v10658_v50 = vpop.f32.mrb[29].mxu0  ;;  %11192 = vmatmul.mubr.msk.f32.gmra.mrb[134].mxu0 %vm90_vm4, %v9835_v33  ;;  %v10736_v60 = vpop.f32.mrb[29].mxu1 }
 0x114   :  { %v581_v53 = vadd.f32 %v580_v47, %v579_v32  ;;  %11194 = vmatprep.mubr.msk.f32.mxu0 %vm12147_vm3, %v15587_v5  ;;  %v9980_v32 = vld [vmem:[%s15576_s2 + $0x328] sm:$0xff]  ;;  %v9838_v50 = vld [vmem:[%s15575_s1 + $0x230] sm:$0xff]  ;;  %v10029_v60 = vld [vmem:[%s15576_s2 + $0x360] sm:$0xff] }
 0x115   :  { %4750 = vperm.xlu1 %12116, %v9980_v32   ;;  %5234 = vperm.xlu0 %12115, %v10029_v60  }
 0x116   :  { %v13385_v6 = vpop.f32.mrb[30].mxu0  ;;  %v13392_v15 = vpop.f32.mrb[30].mxu1 }
 0x117   :  { %v582_v11 = vsel %vm552_vm5, %v13385_v6, 0.0  ;;  %v10661_v14 = vpop.f32.mrb[31].mxu0  ;;  %11195 = vmatmul.mubr.msk.f32.gmra.mrb[136].mxu0 %vm90_vm4, %v9836_v59  ;;  %v10739_v27 = vpop.f32.mrb[31].mxu1 }
 0x118   :  { %v583_v18 = vadd.f32 %v582_v11, %v581_v53  ;;  %11197 = vmatprep.mubr.msk.f32.mxu0 %vm12147_vm3, %v15587_v5  ;;  %v13419_v53 = vpop.permute.xlu0 %1516  ;;  %v13429_v11 = vpop.permute.xlu1 %1501 }
 0x119   :  { %15601 = vst [vmem:[#allocation13_spill] sm:$0xff] %v13419_v53  ;;  %15602 = vst [vmem:[#allocation14_spill] sm:$0xff] %v13429_v11  ;;  %4760 = vperm.xlu1 %12116, %v9982_v63  }
 0x11a   :  { %v13407_v33 = vpop.f32.mrb[32].mxu0  ;;  %v13412_v42 = vpop.f32.mrb[32].mxu1 }
 0x11b   :  { %v584_v38 = vsel %vm552_vm5, %v13407_v33, 0.0  ;;  %v10664_v41 = vpop.f32.mrb[33].mxu0  ;;  %11198 = vmatmul.mubr.msk.f32.gmra.mrb[138].mxu0 %vm90_vm4, %v9837_v22  ;;  %v10742_v59 = vpop.f32.mrb[33].mxu1 }
 0x11c   :  { %v585_v47 = vadd.f32 %v584_v38, %v583_v18  ;;  %11200 = vmatprep.mubr.msk.f32.mxu0 %vm12147_vm3, %v15587_v5  ;;  %v10031_v38 = vld [vmem:[%s15576_s2 + $0x370] sm:$0xff]  ;;  %v10026_v41 = vld [vmem:[%s15576_s2 + $0x348] sm:$0xff]  ;;  %v13449_v59 = vpop.permute.xlu0 %1133 }
 0x11d   :  { %15603 = vst [vmem:[#allocation15_spill] sm:$0xff] %v13449_v59  ;;  %5244 = vperm.xlu0 %12115, %v10031_v38   ;;  %5219 = vperm.xlu1 %12116, %v10026_v41   ;;  %v10033_v41 = vld [vmem:[%s15576_s2 + $0x380] sm:$0xff]  ;;  %v9841_v59 = vld [vmem:[%s15575_s1 + $0x248] sm:$0xff] }
 0x11e   :  { %v13427_v0 = vpop.f32.mrb[34].mxu0  ;;  %v13434_v22 = vpop.f32.mrb[34].mxu1 }
 0x11f   :  { %v586_v14 = vsel %vm552_vm5, %v13427_v0, 0.0  ;;  %v10667_v18 = vpop.f32.mrb[35].mxu0  ;;  %11201 = vmatmul.mubr.msk.f32.gmra.mrb[140].mxu0 %vm90_vm4, %v9838_v50  ;;  %v10745_v32 = vpop.f32.mrb[35].mxu1 }
 0x120   :  { %v587_v27 = vadd.f32 %v586_v14, %v585_v47  ;;  %11203 = vmatprep.mubr.msk.f32.mxu0 %vm12147_vm3, %v15587_v5  ;;  %v9840_v18 = vld [vmem:[%s15575_s1 + $0x240] sm:$0xff]  ;;  %v13461_v32 = vpop.permute.xlu1 %1511  ;;  %v13481_v53 = vpop.permute.xlu0 %1143 }
 0x121   :  { %15604 = vst [vmem:[#allocation16_spill] sm:$0xff] %v13461_v32  ;;  %5254 = vperm.xlu0 %12115, %v10033_v41   ;;  %15605 = vst [vmem:[#allocation17_spill] sm:$0xff] %v13481_v53  ;;  %v15607_v32 = vmov 0.0  }
 0x122   :  { %v13447_v50 = vpop.f32.mrb[36].mxu0  ;;  %v13454_v63 = vpop.f32.mrb[36].mxu1 }
 0x123   :  { %v588_v47 = vsel %vm552_vm5, %v13447_v50, 0.0  ;;  %v10670_v60 = vpop.f32.mrb[37].mxu0  ;;  %11204 = vmatmul.mubr.msk.f32.gmra.mrb[142].mxu0 %vm90_vm4, %v9839_v28  ;;  %v10748_v38 = vpop.f32.mrb[37].mxu1  ;;  %v10028_v28 = vld [vmem:[%s15576_s2 + $0x358] sm:$0xff] }
 0x124   :  { %v589_v14 = vadd.f32 %v588_v47, %v587_v27  ;;  %11206 = vmatprep.mubr.msk.f32.mxu0 %vm12147_vm3, %v15587_v5  ;;  %5229 = vperm.xlu1 %12116, %v10028_v28   ;;  %v10035_v28 = vld [vmem:[%s15576_s2 + $0x390] sm:$0xff] }
 0x125   :  { %5264 = vperm.xlu0 %12115, %v10035_v28   ;;  %v10037_v28 = vld [vmem:[%s15576_s2 + $0x3a0] sm:$0x3] }
 0x126   :  { %v13469_v60 = vpop.f32.mrb[38].mxu0  ;;  %v13474_v2 = vpop.f32.mrb[38].mxu1 }
 0x127   :  { %v590_v27 = vsel %vm552_vm5, %v13469_v60, 0.0  ;;  %v10673_v47 = vpop.f32.mrb[39].mxu0  ;;  %11207 = vmatmul.mubr.msk.f32.gmra.mrb[144].mxu0 %vm90_vm4, %v9840_v18  ;;  %v10751_v41 = vpop.f32.mrb[39].mxu1  ;;  %v10030_v18 = vld [vmem:[%s15576_s2 + $0x368] sm:$0xff] }
 0x128   :  { %v591_v38 = vadd.f32 %v590_v27, %v589_v14  ;;  %11209 = vmatprep.mubr.msk.f32.mxu0 %vm12147_vm3, %v15587_v5  ;;  %v13491_v14 = vpop.permute.xlu1 %1128  ;;  %5239 = vperm.xlu1 %12116, %v10030_v18   ;;  %v13511_v18 = vpop.permute.xlu0 %1153 }
 0x129   :  { %15606 = vst [vmem:[#allocation18_spill] sm:$0xff] %v13491_v14  ;;  %15608 = vst [vmem:[#allocation19_spill] sm:$0xff] %v13511_v18  ;;  %5274 = vperm.xlu0 %12115, %v10037_v28  }
 0x12a   :  { %v13489_v47 = vpop.f32.mrb[40].mxu0  ;;  %v13496_v41 = vpop.f32.mrb[40].mxu1 }
 0x12b   :  { %v592_v27 = vsel %vm552_vm5, %v13489_v47, 0.0  ;;  %v10676_v5 = vpop.f32.mrb[41].mxu0  ;;  %11210 = vmatmul.mubr.msk.f32.gmra.mrb[146].mxu0 %vm90_vm4, %v9841_v59  ;;  %v10754_v11 = vpop.f32.mrb[41].mxu1 }
 0x12c   :  { %v593_v53 = vadd.f32 %v592_v27, %v591_v38  ;;  %11212 = vmatprep.mubr.msk.f32.mxu0 %vm12147_vm3, %v15607_v32  ;;  %v10032_v5 = vld [vmem:[%s15576_s2 + $0x378] sm:$0xff]  ;;  %v13523_v23 = vpop.permute.xlu1 %1138 }
 0x12d   :  { %5249 = vperm.xlu1 %12116, %v10032_v5   ;;  %15609 = vst [vmem:[#allocation20_spill] sm:$0xff] %v13523_v23  ;;  %v10034_v5 = vld [vmem:[%s15576_s2 + $0x388] sm:$0xff] }
 0x12e   :  { %v13509_v59 = vpop.f32.mrb[42].mxu0  ;;  %v13516_v11 = vpop.f32.mrb[42].mxu1 }
 0x12f   :  { %v594_v38 = vsel %vm552_vm5, %v13509_v59, 0.0  ;;  %v10679_v27 = vpop.f32.mrb[43].mxu0  ;;  %11213 = vmatmul.mubr.msk.f32.gmra.mrb[148].mxu0 %vm90_vm4, %v9842_v10  ;;  %v10757_v28 = vpop.f32.mrb[43].mxu1 }
 0x130   :  { %v595_v14 = vadd.f32 %v594_v38, %v593_v53  ;;  %11215 = vmatprep.mubr.msk.f32.mxu0 %vm12147_vm3, %v15607_v32  ;;  %v9844_v28 = vld [vmem:[%s15575_s1 + $0x260] sm:$0xff] }
 0x131   :  { %5259 = vperm.xlu1 %12116, %v10034_v5   ;;  %v10036_v5 = vld [vmem:[%s15576_s2 + $0x398] sm:$0xff] }
 0x132   :  { %v13528_v27 = vpop.f32.mrb[44].mxu0  ;;  %v13533_v38 = vpop.f32.mrb[44].mxu1 }
 0x133   :  { %v596_v10 = vsel %vm552_vm5, %v13528_v27, 0.0  ;;  %v10682_v53 = vpop.f32.mrb[45].mxu0  ;;  %11216 = vmatmul.mubr.msk.f32.gmra.mrb[150].mxu0 %vm90_vm4, %v9843_v37  ;;  %v10760_v23 = vpop.f32.mrb[45].mxu1 }
 0x134   :  { %v597_v18 = vadd.f32 %v596_v10, %v595_v14  ;;  %11218 = vmatprep.mubr.msk.f32.mxu0 %vm12147_vm3, %v15607_v32  ;;  %v13545_v53 = vpop.permute.xlu1 %1148  ;;  %v9845_v23 = vld [vmem:[%s15575_s1 + $0x268] sm:$0x3] }
 0x135   :  { %15610 = vst [vmem:[#allocation21_spill] sm:$0xff] %v13545_v53  ;;  %5269 = vperm.xlu1 %12116, %v10036_v5  }
 0x136   :  { %v13543_v8 = vpop.f32.mrb[46].mxu0 }
 0x137   :  { %v598_v37 = vsel %vm552_vm5, %v13543_v8, 0.0  ;;  %v10685_v14 = vpop.f32.mrb[47].mxu0  ;;  %11219 = vmatmul.mubr.msk.f32.gmra.mrb[152].mxu0 %vm90_vm4, %v9844_v28 }
 0x138   :  { %v599_v10 = vadd.f32 %v598_v37, %v597_v18  ;;  %11221 = vmatprep.mubr.msk.f32.mxu0 %vm12147_vm3, %v15607_v32  ;;  %v9888_v18 = vld [vmem:[%s15575_s1 + $0x270] sm:$0xff] }
 0x13a   :  { %v13555_v46 = vpop.f32.mrb[48].mxu0 }
 0x13b   :  { %v600_v53 = vsel %vm552_vm5, %v13555_v46, 0.0  ;;  %v10688_v5 = vpop.f32.mrb[49].mxu0  ;;  %11222 = vmatmul.mubr.msk.f32.gmra.mrb[154].mxu0 %vm90_vm4, %v9845_v23  ;;  %v15611_v23 = vmov 0.0|0.0  }
 0x13c   :  { %v601_v52 = vadd.f32 %v600_v53, %v599_v10  ;;  %11269 = vmatprep.mubr.msk.f32.mxu0 %vm12147_vm3, %v15607_v32  ;;  %v9889_v53 = vld [vmem:[%s15575_s1 + $0x278] sm:$0xff]  ;;  %v604_v10 = vsel %vm552_vm5, %v13146_v21, 0.0 }
 0x13e   :  { %v13565_v28 = vpop.f32.mrb[50].mxu0 }
 0x13f   :  { %v602_v37 = vsel %vm552_vm5, %v13565_v28, 0.0  ;;  %v10691_v14 = vpop.f32.mrb[51].mxu0  ;;  %11270 = vmatmul.mubr.msk.f32.vlgmr.msra.gmra.mrb[156].mxu0 %vm90_vm4, %v9888_v18 }
 0x140   :  { %v603_v17 = vadd.f32 %v602_v37, %v601_v52  ;;  %11272 = vmatprep.mubr.msk.f32.mxu0 %vm12147_vm3, %v15607_v32  ;;  %11797 = vmatpush3.bf16.msk.msra.mxu0 %vm12220_vm2, %v12218_v3  ;;  %v606_v52 = vsel %vm552_vm5, %v13166_v30, 0.0  ;;  %v9890_v37 = vld [vmem:[%s15575_s1 + $0x280] sm:$0xff] }
 0x141   :  { %11798 = vmatprep.subr.bf16.mxu0 %v15611_v23 }
 0x142   :  { %v605_v5 = vadd.f32 %v604_v10, %v603_v17  ;;  %v13589_v14 = vpop.f32.mrb[52].mxu0  ;;  %v610_v10 = vsel %vm552_vm5, %v13202_v48, 0.0 }
 0x143   :  { %11273 = vmatmul.mubr.msk.f32.gmra.mrb[158].mxu0 %vm90_vm4, %v9889_v53  ;;  %15612 = vst [vmem:[#allocation22_spill] sm:$0xff] %v13589_v14  ;;  %v10935_v17 = vpop.f32.mrb[53].mxu0 }
 0x144   :  { %v607_v18 = vadd.f32 %v606_v52, %v605_v5  ;;  %11275 = vmatprep.mubr.msk.f32.mxu0 %vm12147_vm3, %v15607_v32  ;;  %v9891_v52 = vld [vmem:[%s15575_s1 + $0x288] sm:$0xff] }
 0x146   :  { %v609_v23 = vadd.f32 %v608_v57, %v607_v18  ;;  %v13596_v53 = vpop.f32.mrb[54].mxu0  ;;  %v612_v57 = vsel %vm552_vm5, %v13222_v58, 0.0 }
 0x147   :  { %11276 = vmatmul.mubr.msk.f32.gmra.mrb[160].mxu0 %vm90_vm4, %v9890_v37  ;;  %15613 = vst [vmem:[#allocation23_spill] sm:$0xff] %v13596_v53  ;;  %v10938_v14 = vpop.f32.mrb[55].mxu0  ;;  %v614_v37 = vsel %vm552_vm5, %v13234_v1, 0.0  ;;  %v616_v53 = vsel %vm552_vm5, %v13246_v12, 0.0 }
 0x148   :  { %v611_v5 = vadd.f32 %v610_v10, %v609_v23  ;;  %11278 = vmatprep.mubr.msk.f32.mxu0 %vm12147_vm3, %v15607_v32  ;;  %v9892_v14 = vld [vmem:[%s15575_s1 + $0x290] sm:$0xff] }
 0x14a   :  { %v613_v18 = vadd.f32 %v612_v57, %v611_v5  ;;  %v13605_v17 = vpop.f32.mrb[56].mxu0 }
 0x14b   :  { %15614 = vst [vmem:[#allocation24_spill] sm:$0xff] %v13605_v17  ;;  %11279 = vmatmul.mubr.msk.f32.gmra.mrb[162].mxu0 %vm90_vm4, %v9891_v52  ;;  %v10941_v23 = vpop.f32.mrb[57].mxu0  ;;  %v618_v17 = vsel %vm552_vm5, %v13258_v20, 0.0 }
 0x14c   :  { %v615_v10 = vadd.f32 %v614_v37, %v613_v18  ;;  %11281 = vmatprep.mubr.msk.f32.mxu0 %vm12147_vm3, %v15607_v32  ;;  %v9893_v37 = vld [vmem:[%s15575_s1 + $0x298] sm:$0xff]  ;;  %v620_v23 = vsel %vm552_vm5, %v13270_v29, 0.0 }
 0x14e   :  { %v617_v5 = vadd.f32 %v616_v53, %v615_v10  ;;  %v13617_v57 = vpop.f32.mrb[58].mxu0 }
 0x14f   :  { %15615 = vst [vmem:[#allocation25_spill] sm:$0xff] %v13617_v57  ;;  %11282 = vmatmul.mubr.msk.f32.gmra.mrb[164].mxu0 %vm90_vm4, %v9892_v14  ;;  %v10944_v52 = vpop.f32.mrb[59].mxu0  ;;  %v622_v57 = vsel %vm552_vm5, %v13284_v40, 0.0 }
 0x150   :  { %v619_v18 = vadd.f32 %v618_v17, %v617_v5  ;;  %11284 = vmatprep.mubr.msk.f32.mxu0 %vm12147_vm3, %v15607_v32  ;;  %v9894_v5 = vld [vmem:[%s15575_s1 + $0x2a0] sm:$0xff]  ;;  %v624_v52 = vsel %vm552_vm5, %v13296_v49, 0.0 }
 0x152   :  { %v621_v53 = vadd.f32 %v620_v23, %v619_v18  ;;  %v13629_v10 = vpop.f32.mrb[60].mxu0 }
 0x153   :  { %15616 = vst [vmem:[#allocation26_spill] sm:$0xff] %v13629_v10  ;;  %11285 = vmatmul.mubr.msk.f32.gmra.mrb[166].mxu0 %vm90_vm4, %v9893_v37  ;;  %v10947_v14 = vpop.f32.mrb[61].mxu0  ;;  %v626_v10 = vsel %vm552_vm5, %v13312_v61, 0.0 }
 0x154   :  { %v623_v17 = vadd.f32 %v622_v57, %v621_v53  ;;  %11287 = vmatprep.mubr.msk.f32.mxu0 %vm12147_vm3, %v15607_v32  ;;  %v9895_v53 = vld [vmem:[%s15575_s1 + $0x2a8] sm:$0xff]  ;;  %v628_v14 = vsel %vm552_vm5, %v13326_v13, 0.0 }
 0x156   :  { %v625_v18 = vadd.f32 %v624_v52, %v623_v17  ;;  %v13641_v23 = vpop.f32.mrb[62].mxu0 }
 0x157   :  { %15617 = vst [vmem:[#allocation27_spill] sm:$0xff] %v13641_v23  ;;  %11288 = vmatmul.mubr.msk.f32.gmra.mrb[168].mxu0 %vm90_vm4, %v9894_v5  ;;  %v10950_v37 = vpop.f32.mrb[63].mxu0  ;;  %v630_v23 = vsel %vm552_vm5, %v13350_v31, 0.0 }
 0x158   :  { %v627_v57 = vadd.f32 %v626_v10, %v625_v18  ;;  %11290 = vmatprep.mubr.msk.f32.mxu0 %vm12147_vm3, %v15607_v32  ;;  %v9896_v18 = vld [vmem:[%s15575_s1 + $0x2b0] sm:$0xff]  ;;  %v632_v37 = vsel %vm552_vm5, %v13372_v51, 0.0 }
 0x15a   :  { %v629_v17 = vadd.f32 %v628_v14, %v627_v57  ;;  %v13653_v52 = vpop.f32.mrb[64].mxu0 }
 0x15b   :  { %15618 = vst [vmem:[#allocation28_spill] sm:$0xff] %v13653_v52  ;;  %11291 = vmatmul.mubr.msk.f32.gmra.mrb[170].mxu0 %vm90_vm4, %v9895_v53  ;;  %v10953_v5 = vpop.f32.mrb[65].mxu0  ;;  %v634_v52 = vsel %vm552_vm5, %v13392_v15, 0.0 }
 0x15c   :  { %v631_v10 = vadd.f32 %v630_v23, %v629_v17  ;;  %11293 = vmatprep.mubr.msk.f32.mxu0 %vm12147_vm3, %v15607_v32  ;;  %v9897_v17 = vld [vmem:[%s15575_s1 + $0x2b8] sm:$0xff]  ;;  %v636_v5 = vsel %vm552_vm5, %v13412_v42, 0.0 }
 0x15e   :  { %v633_v57 = vadd.f32 %v632_v37, %v631_v10  ;;  %v13665_v14 = vpop.f32.mrb[66].mxu0 }
 0x15f   :  { %15619 = vst [vmem:[#allocation29_spill] sm:$0xff] %v13665_v14  ;;  %11294 = vmatmul.mubr.msk.f32.gmra.mrb[172].mxu0 %vm90_vm4, %v9896_v18  ;;  %v10956_v53 = vpop.f32.mrb[67].mxu0  ;;  %v638_v14 = vsel %vm552_vm5, %v13434_v22, 0.0 }
 0x160   :  { %v635_v23 = vadd.f32 %v634_v52, %v633_v57  ;;  %11296 = vmatprep.mubr.msk.f32.mxu0 %vm12147_vm3, %v15607_v32  ;;  %v9898_v57 = vld [vmem:[%s15575_s1 + $0x2c0] sm:$0xff]  ;;  %v640_v53 = vsel %vm552_vm5, %v13454_v63, 0.0 }
 0x162   :  { %v637_v10 = vadd.f32 %v636_v5, %v635_v23  ;;  %v13677_v37 = vpop.f32.mrb[68].mxu0 }
 0x163   :  { %15620 = vst [vmem:[#allocation30_spill] sm:$0xff] %v13677_v37  ;;  %11297 = vmatmul.mubr.msk.f32.gmra.mrb[174].mxu0 %vm90_vm4, %v9897_v17  ;;  %v10959_v18 = vpop.f32.mrb[69].mxu0  ;;  %v642_v37 = vsel %vm552_vm5, %v13474_v2, 0.0 }
 0x164   :  { %v639_v52 = vadd.f32 %v638_v14, %v637_v10  ;;  %11299 = vmatprep.mubr.msk.f32.mxu0 %vm12147_vm3, %v15607_v32  ;;  %v9899_v10 = vld [vmem:[%s15575_s1 + $0x2c8] sm:$0xff]  ;;  %v644_v18 = vsel %vm552_vm5, %v13496_v41, 0.0 }
 0x166   :  { %v641_v23 = vadd.f32 %v640_v53, %v639_v52  ;;  %v13689_v5 = vpop.f32.mrb[70].mxu0 }
 0x167   :  { %15621 = vst [vmem:[#allocation31_spill] sm:$0xff] %v13689_v5  ;;  %11300 = vmatmul.mubr.msk.f32.gmra.mrb[176].mxu0 %vm90_vm4, %v9898_v57  ;;  %v10962_v17 = vpop.f32.mrb[71].mxu0  ;;  %v646_v5 = vsel %vm552_vm5, %v13516_v11, 0.0  ;;  %v648_v57 = vsel %vm552_vm5, %v13533_v38, 0.0 }
 0x168   :  { %v643_v14 = vadd.f32 %v642_v37, %v641_v23  ;;  %11302 = vmatprep.mubr.msk.f32.mxu0 %vm12147_vm3, %v15607_v32  ;;  %v9900_v17 = vld [vmem:[%s15575_s1 + $0x2d0] sm:$0x3] }
 0x16a   :  { %v645_v52 = vadd.f32 %v644_v18, %v643_v14  ;;  %v13701_v53 = vpop.f32.mrb[72].mxu0 }
 0x16b   :  { %15622 = vst [vmem:[#allocation32_spill] sm:$0xff] %v13701_v53  ;;  %11303 = vmatmul.mubr.msk.f32.gmra.mrb[178].mxu0 %vm90_vm4, %v9899_v10  ;;  %v10965_v37 = vpop.f32.mrb[73].mxu0 }
 0x16c   :  { %v647_v23 = vadd.f32 %v646_v5, %v645_v52  ;;  %11305 = vmatprep.mubr.msk.f32.mxu0 %vm12147_vm3, %v15607_v32  ;;  %v9943_v5 = vld [vmem:[%s15575_s1 + $0x2d8] sm:$0xff] }
 0x16e   :  { %v649_v14 = vadd.f32 %v648_v57, %v647_v23  ;;  %v13713_v18 = vpop.f32.mrb[74].mxu0 }
 0x16f   :  { %15623 = vst [vmem:[#allocation33_spill] sm:$0xff] %v13713_v18  ;;  %11306 = vmatmul.mubr.msk.f32.gmra.mrb[180].mxu0 %vm90_vm4, %v9900_v17  ;;  %v10968_v53 = vpop.f32.mrb[75].mxu0 }
 0x170   :  { %11353 = vmatprep.mubr.msk.f32.mxu0 %vm12147_vm3, %v15607_v32  ;;  %v650_v10 = vrot.slane %v649_v14, 4  ;;  %v9944_v53 = vld [vmem:[%s15575_s1 + $0x2e0] sm:$0xff] }
 0x172   :  { %v13721_v52 = vpop.f32.mrb[76].mxu0  ;;  %v651_v57 = vadd.f32 %v650_v10, %v649_v14  ;;  %v9946_v10 = vld [vmem:[%s15575_s1 + $0x2f0] sm:$0xff] }
 0x173   :  { %15624 = vst [vmem:[#allocation34_spill] sm:$0xff] %v13721_v52  ;;  %11354 = vmatmul.mubr.msk.f32.vlgmr.msra.gmra.mrb[182].mxu0 %vm90_vm4, %v9943_v5  ;;  %v10971_v37 = vpop.f32.mrb[77].mxu0  ;;  %v13736_v5 = vpop.f32.mrb[46].mxu1 }
 0x174   :  { %11356 = vmatprep.mubr.msk.f32.mxu0 %vm12147_vm3, %v15607_v32  ;;  %11801 = vmatpush3.bf16.msk.msra.mxu0 %vm12220_vm2, %v12218_v3  ;;  %15626 = vst [vmem:[#allocation36_spill] sm:$0xff] %v13736_v5  ;;  %v9945_v37 = vld [vmem:[%s15575_s1 + $0x2e8] sm:$0xff]  ;;  %v10767_v52 = vpop.f32.mrb[47].mxu1  ;;  %v652_v4 = vrot.slane %v651_v57, 2 }
 0x175   :  { %11517 = vmatprep.subr.mxu0 %v15607_v32  ;;  %v9947_v52 = vld [vmem:[%s15575_s1 + $0x2f8] sm:$0xff] }
 0x176   :  { %v13733_v23 = vpop.f32.mrb[78].mxu0 }
 0x177   :  { %15625 = vst [vmem:[#allocation35_spill] sm:$0xff] %v13733_v23  ;;  %11357 = vmatmul.mubr.msk.f32.gmra.mrb[184].mxu0 %vm90_vm4, %v9944_v53  ;;  %v11019_v17 = vpop.f32.mrb[79].mxu0  ;;  %v653_v53 = vadd.f32 %v652_v4, %v651_v57 }
 0x178   :  { %11359 = vmatprep.mubr.msk.f32.mxu0 %vm12147_vm3, %v15607_v32 }
 0x17a   :  { %v13743_v3 = vpop.f32.mrb[80].mxu0 }
 0x17b   :  { %15627 = vst [vmem:[#allocation37_spill] sm:$0xff] %v13743_v3  ;;  %11360 = vmatmul.mubr.msk.f32.gmra.mrb[186].mxu0 %vm90_vm4, %v9945_v37  ;;  %v11022_v14 = vpop.f32.mrb[81].mxu0  ;;  %v13759_v37 = vpop.f32.mrb[48].mxu1 }
 0x17c   :  { %11362 = vmatprep.mubr.msk.f32.mxu0 %vm12147_vm3, %v15607_v32  ;;  %15629 = vst [vmem:[#allocation39_spill] sm:$0xff] %v13759_v37  ;;  %v654_v14 = vrot.slane %v653_v53, 1  ;;  %v10770_v18 = vpop.f32.mrb[49].mxu1 }
 0x17d   :  { %v9949_v18 = vld [vmem:[%s15575_s1 + $0x308] sm:$0xff] }
 0x17e   :  { %v13751_v17 = vpop.f32.mrb[82].mxu0  ;;  %v655_v4 = vadd.f32 %v654_v14, %v653_v53 }
 0x17f   :  { %15628 = vst [vmem:[#allocation38_spill] sm:$0xff] %v13751_v17  ;;  %11363 = vmatmul.mubr.msk.f32.gmra.mrb[188].mxu0 %vm90_vm4, %v9946_v10  ;;  %v11025_v23 = vpop.f32.mrb[83].mxu0  ;;  %v13771_v17 = vpop.f32.mrb[50].mxu1 }
 0x180   :  { %11365 = vmatprep.mubr.msk.f32.mxu0 %vm12147_vm3, %v15607_v32  ;;  %v9948_v23 = vld [vmem:[%s15575_s1 + $0x300] sm:$0xff]  ;;  %15632 = vst [vmem:[#allocation42_spill] sm:$0xff] %v13771_v17  ;;  %v13781_v5 = vmul.f32 0.0025510204, %v655_v4 }
 0x182   :  { %v13761_v3 = vpop.f32.mrb[84].mxu0 }
 0x183   :  { %15630 = vst [vmem:[#allocation40_spill] sm:$0xff] %v13761_v3  ;;  %11366 = vmatmul.mubr.msk.f32.gmra.mrb[190].mxu0 %vm90_vm4, %v9947_v52  ;;  %v11028_v57 = vpop.f32.mrb[85].mxu0  ;;  %v10773_v3 = vpop.f32.mrb[51].mxu1 }
 0x184   :  { %11368 = vmatprep.mubr.msk.f32.mxu0 %vm12147_vm3, %v15607_v32  ;;  %v13779_v52 = vpop.f32.mrb[52].mxu1  ;;  %v9950_v3 = vld [vmem:[%s15575_s1 + $0x310] sm:$0xff] }
 0x185   :  { %15633 = vst [vmem:[#allocation43_spill] sm:$0xff] %v13779_v52  ;;  %v10776_v57 = vpop.f32.mrb[53].mxu1  ;;  %v664_v52 = vsub.f32 %v13241_v9, %v13781_v5 }
 0x186   :  { %v13769_v10 = vpop.f32.mrb[86].mxu0  ;;  %v13797_v57 = vpop.f32.mrb[54].mxu1 }
 0x187   :  { %15631 = vst [vmem:[#allocation41_spill] sm:$0xff] %v13769_v10  ;;  %11369 = vmatmul.mubr.msk.f32.gmra.mrb[192].mxu0 %vm90_vm4, %v9948_v23  ;;  %v11031_v37 = vpop.f32.mrb[87].mxu0  ;;  %v659_v23 = vsub.f32 %v13159_v26, %v13781_v5  ;;  %15636 = vst [vmem:[#allocation46_spill] sm:$0xff] %v13797_v57  ;;  %v661_v26 = vsub.f32 %v13197_v45, %v13781_v5  ;;  %v9952_v45 = vld [vmem:[%s15575_s1 + $0x320] sm:$0xff] }
 0x188   :  { %11371 = vmatprep.mubr.msk.f32.mxu0 %vm12147_vm3, %v15607_v32  ;;  %v658_v37 = vsub.f32 %v13143_v19, %v13781_v5  ;;  %v9951_v19 = vld [vmem:[%s15575_s1 + $0x318] sm:$0xff] }
 0x189   :  { %v708_v10 = vmul.f32 %v659_v23, %v659_v23  ;;  %v663_v23 = vsub.f32 %v13229_v62, %v13781_v5  ;;  %v9953_v62 = vld [vmem:[%s15575_s1 + $0x328] sm:$0xff] }
 0x18a   :  { %v13783_v53 = vpop.f32.mrb[88].mxu0 }
 0x18b   :  { %15634 = vst [vmem:[#allocation44_spill] sm:$0xff] %v13783_v53  ;;  %11372 = vmatmul.mubr.msk.f32.gmra.mrb[194].mxu0 %vm90_vm4, %v9949_v18  ;;  %v11034_v14 = vpop.f32.mrb[89].mxu0  ;;  %v660_v53 = vsub.f32 %v13179_v36, %v13781_v5  ;;  %v662_v36 = vsub.f32 %v13215_v54, %v13781_v5 }
 0x18c   :  { %11374 = vmatprep.mubr.msk.f32.mxu0 %vm12147_vm3, %v15607_v32  ;;  %v10779_v14 = vpop.f32.mrb[55].mxu1 }
 0x18d   :  { %v709_v14 = vmul.f32 %v660_v53, %v660_v53  ;;  %v711_v17 = vmul.f32 %v662_v36, %v662_v36 }
 0x18e   :  { %v13795_v4 = vpop.f32.mrb[90].mxu0 }
 0x18f   :  { %15635 = vst [vmem:[#allocation45_spill] sm:$0xff] %v13795_v4  ;;  %11375 = vmatmul.mubr.msk.f32.gmra.mrb[196].mxu0 %vm90_vm4, %v9950_v3  ;;  %v11037_v18 = vpop.f32.mrb[91].mxu0  ;;  %v707_v4 = vmul.f32 %v658_v37, %v658_v37 }
 0x190   :  { %11377 = vmatprep.mubr.msk.f32.mxu0 %vm12147_vm3, %v15607_v32  ;;  %v13812_v18 = vpop.f32.mrb[56].mxu1 }
 0x191   :  { %15638 = vst [vmem:[#allocation48_spill] sm:$0xff] %v13812_v18  ;;  %v10782_v37 = vpop.f32.mrb[57].mxu1 }
 0x192   :  { %v13809_v57 = vpop.f32.mrb[92].mxu0  ;;  %v759_v37 = vsel %vm552_vm5, %v709_v14, 0.0 }
 0x193   :  { %15637 = vst [vmem:[#allocation47_spill] sm:$0xff] %v13809_v57  ;;  %11378 = vmatmul.mubr.msk.f32.gmra.mrb[198].mxu0 %vm90_vm4, %v9951_v19  ;;  %v11040_v3 = vpop.f32.mrb[93].mxu0  ;;  %v710_v57 = vmul.f32 %v661_v26, %v661_v26  ;;  %v756_v19 = vsel %vm552_vm5, %v707_v4, 0.0 }
 0x194   :  { %11380 = vmatprep.mubr.msk.f32.mxu0 %vm12147_vm3, %v15607_v32  ;;  %v757_v3 = vsel %vm552_vm5, %v708_v10, 0.0  ;;  %v13836_v10 = vpop.f32.mrb[58].mxu1 }
 0x195   :  { %v758_v54 = vadd.f32 %v757_v3, %v756_v19  ;;  %15640 = vst [vmem:[#allocation50_spill] sm:$0xff] %v13836_v10  ;;  %v10785_v26 = vpop.f32.mrb[59].mxu1  ;;  %v712_v19 = vmul.f32 %v663_v23, %v663_v23  ;;  %v761_v9 = vsel %vm552_vm5, %v710_v57, 0.0  ;;  %v666_v10 = vsub.f32 %v13265_v25, %v13781_v5 }
 0x196   :  { %v13825_v18 = vpop.f32.mrb[94].mxu0  ;;  %v13843_v14 = vpop.f32.mrb[60].mxu1  ;;  %v667_v23 = vsub.f32 %v13277_v34, %v13781_v5  ;;  %v9955_v34 = vld [vmem:[%s15575_s1 + $0x338] sm:$0x3] }
 0x197   :  { %15639 = vst [vmem:[#allocation49_spill] sm:$0xff] %v13825_v18  ;;  %11381 = vmatmul.mubr.msk.f32.gmra.mrb[200].mxu0 %vm90_vm4, %v9952_v45  ;;  %v11043_v53 = vpop.f32.mrb[95].mxu0  ;;  %v760_v4 = vadd.f32 %v759_v37, %v758_v54  ;;  %v665_v45 = vsub.f32 %v13253_v16, %v13781_v5  ;;  %v10788_v18 = vpop.f32.mrb[61].mxu1  ;;  %v713_v54 = vmul.f32 %v664_v52, %v664_v52  ;;  %v763_v37 = vsel %vm552_vm5, %v711_v17, 0.0  ;;  %v9954_v16 = vld [vmem:[%s15575_s1 + $0x330] sm:$0xff] }
 0x198   :  { %11383 = vmatprep.mubr.msk.f32.mxu0 %vm12147_vm3, %v15607_v32  ;;  %v765_v18 = vsel %vm552_vm5, %v712_v19, 0.0  ;;  %v668_v52 = vsub.f32 %v13291_v44, %v13781_v5  ;;  %v715_v26 = vmul.f32 %v666_v10, %v666_v10 }
 0x199   :  { %v762_v3 = vadd.f32 %v761_v9, %v760_v4  ;;  %v767_v9 = vsel %vm552_vm5, %v713_v54, 0.0 }
 0x19a   :  { %v13841_v36 = vpop.f32.mrb[96].mxu0 }
 0x19b   :  { %11384 = vmatmul.mubr.msk.f32.gmra.mrb[202].mxu0 %vm90_vm4, %v9953_v62  ;;  %v11046_v53 = vpop.f32.mrb[97].mxu0  ;;  %v764_v57 = vadd.f32 %v763_v37, %v762_v3  ;;  %v714_v62 = vmul.f32 %v665_v45, %v665_v45  ;;  %v13868_v45 = vpop.f32.mrb[62].mxu1  ;;  %v716_v37 = vmul.f32 %v667_v23, %v667_v23 }
 0x19c   :  { %11386 = vmatprep.mubr.msk.f32.mxu0 %vm12147_vm3, %v15607_v32  ;;  %v10791_v3 = vpop.f32.mrb[63].mxu1  ;;  %v669_v53 = vsub.f32 %v13305_v56, %v13781_v5  ;;  %v9998_v56 = vld [vmem:[%s15575_s1 + $0x340] sm:$0xff] }
 0x19d   :  { %v766_v25 = vadd.f32 %v765_v18, %v764_v57  ;;  %v769_v44 = vsel %vm552_vm5, %v714_v62, 0.0  ;;  %v670_v57 = vsub.f32 %v13319_v7, %v13781_v5  ;;  %v717_v18 = vmul.f32 %v668_v52, %v668_v52  ;;  %v13884_v62 = vpop.f32.mrb[64].mxu1 }
 0x19e   :  { %v13857_v4 = vpop.f32.mrb[98].mxu0  ;;  %v10794_v52 = vpop.f32.mrb[65].mxu1  ;;  %v672_v3 = vsub.f32 %v13365_v43, %v13781_v5 }
 0x19f   :  { %11387 = vmatmul.mubr.msk.f32.gmra.mrb[204].mxu0 %vm90_vm4, %v9954_v16  ;;  %v11049_v17 = vpop.f32.mrb[99].mxu0  ;;  %v768_v19 = vadd.f32 %v767_v9, %v766_v25  ;;  %v671_v25 = vsub.f32 %v13345_v24, %v13781_v5  ;;  %v718_v9 = vmul.f32 %v669_v53, %v669_v53  ;;  %v9999_v24 = vld [vmem:[%s15575_s1 + $0x348] sm:$0xff]  ;;  %v13905_v43 = vpop.f32.mrb[66].mxu1 }
 0x1a0   :  { %11389 = vmatprep.mubr.msk.f32.mxu0 %vm12147_vm3, %v15607_v32  ;;  %v771_v17 = vsel %vm552_vm5, %v715_v26, 0.0  ;;  %v721_v52 = vmul.f32 %v672_v3, %v672_v3 }
 0x1a1   :  { %v770_v54 = vadd.f32 %v769_v44, %v768_v19  ;;  %v719_v44 = vmul.f32 %v670_v57, %v670_v57 }
 0x1a2   :  { %v13873_v10 = vpop.f32.mrb[100].mxu0 }
 0x1a3   :  { %11390 = vmatmul.mubr.msk.f32.gmra.mrb[206].mxu0 %vm90_vm4, %v9955_v34  ;;  %v11052_v16 = vpop.f32.mrb[101].mxu0  ;;  %v772_v23 = vadd.f32 %v771_v17, %v770_v54  ;;  %v773_v34 = vsel %vm552_vm5, %v716_v37, 0.0  ;;  %v775_v54 = vsel %vm552_vm5, %v717_v18, 0.0  ;;  %v673_v37 = vsub.f32 %v13385_v6, %v13781_v5  ;;  %v10000_v6 = vld [vmem:[%s15575_s1 + $0x350] sm:$0xff] }
 0x1a4   :  { %11437 = vmatprep.mubr.msk.f32.mxu0 %vm12147_vm3, %v15607_v32  ;;  %v720_v16 = vmul.f32 %v671_v25, %v671_v25  ;;  %v777_v17 = vsel %vm552_vm5, %v718_v9, 0.0 }
 0x1a5   :  { %v774_v26 = vadd.f32 %v773_v34, %v772_v23  ;;  %v10797_v23 = vpop.f32.mrb[67].mxu1  ;;  %v674_v34 = vsub.f32 %v13407_v33, %v13781_v5 }
 0x1a6   :  { %v13889_v7 = vpop.f32.mrb[102].mxu0  ;;  %v13916_v25 = vpop.f32.mrb[68].mxu1  ;;  %v781_v33 = vsel %vm552_vm5, %v720_v16, 0.0  ;;  %v783_v23 = vsel %vm552_vm5, %v721_v52, 0.0  ;;  %v677_v16 = vsub.f32 %v13469_v60, %v13781_v5  ;;  %v10002_v60 = vld [vmem:[%s15575_s1 + $0x360] sm:$0xff] }
 0x1a7   :  { %11438 = vmatmul.mubr.msk.f32.vlgmr.msra.gmra.mrb[208].mxu0 %vm90_vm4, %v9998_v56  ;;  %v11055_v19 = vpop.f32.mrb[103].mxu0  ;;  %v776_v53 = vadd.f32 %v775_v54, %v774_v26  ;;  %v779_v26 = vsel %vm552_vm5, %v719_v44, 0.0  ;;  %v675_v54 = vsub.f32 %v13427_v0, %v13781_v5  ;;  %v10001_v0 = vld [vmem:[%s15575_s1 + $0x358] sm:$0xff] }
 0x1a8   :  { %11440 = vmatprep.mubr.msk.f32.mxu0 %vm12147_vm3, %v15607_v32  ;;  %v10800_v19 = vpop.f32.mrb[69].mxu1 }
 0x1a9   :  { %v778_v57 = vadd.f32 %v777_v17, %v776_v53  ;;  %v676_v17 = vsub.f32 %v13447_v50, %v13781_v5  ;;  %v13937_v50 = vpop.f32.mrb[70].mxu1  ;;  %v678_v19 = vsub.f32 %v13489_v47, %v13781_v5 }
 0x1aa   :  { %v13903_v56 = vpop.f32.mrb[104].mxu0 }
 0x1ab   :  { %11441 = vmatmul.mubr.msk.f32.gmra.mrb[210].mxu0 %vm90_vm4, %v9999_v24  ;;  %v11103_v18 = vpop.f32.mrb[105].mxu0  ;;  %v780_v9 = vadd.f32 %v779_v26, %v778_v57  ;;  %v722_v24 = vmul.f32 %v673_v37, %v673_v37  ;;  %v724_v57 = vmul.f32 %v675_v54, %v675_v54 }
 0x1ac   :  { %11443 = vmatprep.mubr.msk.f32.mxu0 %vm12147_vm3, %v15607_v32  ;;  %v723_v18 = vmul.f32 %v674_v34, %v674_v34 }
 0x1ad   :  { %v782_v44 = vadd.f32 %v781_v33, %v780_v9  ;;  %v785_v26 = vsel %vm552_vm5, %v722_v24, 0.0  ;;  %v10803_v9 = vpop.f32.mrb[71].mxu1  ;;  %v725_v33 = vmul.f32 %v676_v17, %v676_v17  ;;  %v679_v24 = vsub.f32 %v13509_v59, %v13781_v5  ;;  %v10003_v59 = vld [vmem:[%s15575_s1 + $0x368] sm:$0xff] }
 0x1ae   :  { %v13921_v3 = vpop.f32.mrb[106].mxu0 }
 0x1af   :  { %11444 = vmatmul.mubr.msk.f32.gmra.mrb[212].mxu0 %vm90_vm4, %v10000_v6  ;;  %v11106_v53 = vpop.f32.mrb[107].mxu0  ;;  %v784_v37 = vadd.f32 %v783_v23, %v782_v44  ;;  %v787_v44 = vsel %vm552_vm5, %v723_v18, 0.0  ;;  %v789_v23 = vsel %vm552_vm5, %v724_v57, 0.0  ;;  %v13954_v18 = vpop.f32.mrb[72].mxu1  ;;  %v728_v9 = vmul.f32 %v679_v24, %v679_v24 }
 0x1b0   :  { %11446 = vmatprep.mubr.msk.f32.mxu0 %vm12147_vm3, %v15607_v32  ;;  %v726_v53 = vmul.f32 %v677_v16, %v677_v16  ;;  %v10810_v16 = vpop.f32.mrb[73].mxu1 }
 0x1b1   :  { %v786_v34 = vadd.f32 %v785_v26, %v784_v37  ;;  %v680_v37 = vsub.f32 %v13528_v27, %v13781_v5  ;;  %v727_v26 = vmul.f32 %v678_v19, %v678_v19  ;;  %v13978_v24 = vpop.f32.mrb[74].mxu1 }
 0x1b2   :  { %v13935_v6 = vpop.f32.mrb[108].mxu0 }
 0x1b3   :  { %11447 = vmatmul.mubr.msk.f32.gmra.mrb[214].mxu0 %vm90_vm4, %v10001_v0  ;;  %v11109_v52 = vpop.f32.mrb[109].mxu0  ;;  %v788_v54 = vadd.f32 %v787_v44, %v786_v34  ;;  %v791_v34 = vsel %vm552_vm5, %v725_v33, 0.0  ;;  %v793_v44 = vsel %vm552_vm5, %v726_v53, 0.0  ;;  %v682_v33 = vsub.f32 %v13555_v46, %v13781_v5 }
 0x1b4   :  { %11449 = vmatprep.mubr.msk.f32.mxu0 %vm12147_vm3, %v15607_v32  ;;  %v681_v52 = vsub.f32 %v13543_v8, %v13781_v5  ;;  %v10004_v8 = vld [vmem:[%s15575_s1 + $0x370] sm:$0xff]  ;;  %v797_v46 = vsel %vm552_vm5, %v728_v9, 0.0  ;;  %v685_v9 = vsub.f32 %v13166_v30, %v13781_v5  ;;  %v10006_v30 = vld [vmem:[%s15575_s1 + $0x380] sm:$0xff] }
 0x1b5   :  { %v790_v47 = vadd.f32 %v789_v23, %v788_v54  ;;  %v729_v54 = vmul.f32 %v680_v37, %v680_v37  ;;  %v795_v23 = vsel %vm552_vm5, %v727_v26, 0.0 }
 0x1b6   :  { %v13951_v0 = vpop.f32.mrb[110].mxu0 }
 0x1b7   :  { %11450 = vmatmul.mubr.msk.f32.gmra.mrb[216].mxu0 %vm90_vm4, %v10002_v60  ;;  %v11112_v17 = vpop.f32.mrb[111].mxu0  ;;  %v792_v57 = vadd.f32 %v791_v34, %v790_v47  ;;  %v10813_v47 = vpop.f32.mrb[75].mxu1  ;;  %v730_v34 = vmul.f32 %v681_v52, %v681_v52 }
 0x1b8   :  { %11452 = vmatprep.mubr.msk.f32.mxu0 %vm12147_vm3, %v15607_v32  ;;  %v683_v17 = vsub.f32 %v13565_v28, %v13781_v5  ;;  %v13985_v26 = vpop.f32.mrb[76].mxu1  ;;  %v10005_v28 = vld [vmem:[%s15575_s1 + $0x378] sm:$0xff] }
 0x1b9   :  { %v794_v27 = vadd.f32 %v793_v44, %v792_v57  ;;  %v10816_v57 = vpop.f32.mrb[77].mxu1  ;;  %v684_v44 = vsub.f32 %v13146_v21, %v13781_v5 }
 0x1ba   :  { %v13967_v60 = vpop.f32.mrb[112].mxu0  ;;  %v734_v57 = vmul.f32 %v685_v9, %v685_v9 }
 0x1bb   :  { %11453 = vmatmul.mubr.msk.f32.gmra.mrb[218].mxu0 %vm90_vm4, %v10003_v59  ;;  %v11115_v19 = vpop.f32.mrb[113].mxu0  ;;  %v796_v53 = vadd.f32 %v795_v23, %v794_v27  ;;  %v731_v27 = vmul.f32 %v682_v33, %v682_v33  ;;  %v732_v23 = vmul.f32 %v683_v17, %v683_v17  ;;  %v733_v47 = vmul.f32 %v684_v44, %v684_v44  ;;  %v9639_v17 = vld [vmem:[%s15580_s6 + $0x2] sm:$0x3] }
 0x1bc   :  { %11455 = vmatprep.mubr.msk.f32.mxu0 %vm12147_vm3, %v15607_v32  ;;  %v799_v19 = vsel %vm552_vm5, %v729_v54, 0.0  ;;  %v686_v54 = vsub.f32 %v13184_v39, %v13781_v5  ;;  %10848 = vmatpush3.msk.msra.mxu1 %vm1573_vm6, %v9639_v17 }
 0x1bd   :  { %v798_v59 = vadd.f32 %v797_v46, %v796_v53  ;;  %v803_v46 = vsel %vm552_vm5, %v731_v27, 0.0  ;;  %v805_v44 = vsel %vm552_vm5, %v732_v23, 0.0  ;;  %10888 = vmatprep.subr.mxu1 %v15607_v32 }
 0x1be   :  { %v13983_v37 = vpop.f32.mrb[114].mxu0 }
 0x1bf   :  { %11456 = vmatmul.mubr.msk.f32.gmra.mrb[220].mxu0 %vm90_vm4, %v10004_v8  ;;  %v11118_v16 = vpop.f32.mrb[115].mxu0  ;;  %v800_v52 = vadd.f32 %v799_v19, %v798_v59  ;;  %v801_v8 = vsel %vm552_vm5, %v730_v34, 0.0  ;;  %v14013_v34 = vpop.f32.mrb[78].mxu1 }
 0x1c0   :  { %11458 = vmatprep.mubr.msk.f32.mxu0 %vm12147_vm3, %v15607_v32  ;;  %v10819_v39 = vpop.f32.mrb[79].mxu1  ;;  %v687_v16 = vsub.f32 %v13202_v48, %v13781_v5  ;;  %v10007_v48 = vld [vmem:[%s15575_s1 + $0x388] sm:$0xff] }
 0x1c1   :  { %v802_v21 = vadd.f32 %v801_v8, %v800_v52  ;;  %v688_v52 = vsub.f32 %v13222_v58, %v13781_v5  ;;  %v735_v8 = vmul.f32 %v686_v54, %v686_v54  ;;  %v14031_v23 = vpop.f32.mrb[80].mxu1 }
 0x1c2   :  { %v13999_v53 = vpop.f32.mrb[116].mxu0  ;;  %v10822_v54 = vpop.f32.mrb[81].mxu1 }
 0x1c3   :  { %11459 = vmatmul.mubr.msk.f32.gmra.mrb[222].mxu0 %vm90_vm4, %v10005_v28  ;;  %v11121_v33 = vpop.f32.mrb[117].mxu0  ;;  %v804_v59 = vadd.f32 %v803_v46, %v802_v21  ;;  %v807_v21 = vsel %vm552_vm5, %v733_v47, 0.0  ;;  %v736_v46 = vmul.f32 %v687_v16, %v687_v16  ;;  %v737_v39 = vmul.f32 %v688_v52, %v688_v52 }
 0x1c4   :  { %11461 = vmatprep.mubr.msk.f32.mxu0 %vm12147_vm3, %v15607_v32  ;;  %v689_v33 = vsub.f32 %v13234_v1, %v13781_v5  ;;  %v10008_v1 = vld [vmem:[%s15575_s1 + $0x390] sm:$0xff] }
 0x1c5   :  { %v806_v19 = vadd.f32 %v805_v44, %v804_v59  ;;  %v690_v59 = vsub.f32 %v13246_v12, %v13781_v5  ;;  %v811_v44 = vsel %vm552_vm5, %v735_v8, 0.0  ;;  %v14052_v12 = vpop.f32.mrb[82].mxu1  ;;  %v815_v54 = vsel %vm552_vm5, %v737_v39, 0.0 }
 0x1c6   :  { %v14019_v27 = vpop.f32.mrb[118].mxu0 }
 0x1c7   :  { %11462 = vmatmul.mubr.msk.f32.gmra.mrb[224].mxu0 %vm90_vm4, %v10006_v30  ;;  %v11124_v28 = vpop.f32.mrb[119].mxu0  ;;  %v808_v9 = vadd.f32 %v807_v21, %v806_v19  ;;  %v809_v30 = vsel %vm552_vm5, %v734_v57, 0.0  ;;  %v691_v57 = vsub.f32 %v13258_v20, %v13781_v5  ;;  %v738_v19 = vmul.f32 %v689_v33, %v689_v33  ;;  %v10009_v20 = vld [vmem:[%s15575_s1 + $0x398] sm:$0xff] }
 0x1c8   :  { %11464 = vmatprep.mubr.msk.f32.mxu0 %vm12147_vm3, %v15607_v32  ;;  %v813_v28 = vsel %vm552_vm5, %v736_v46, 0.0 }
 0x1c9   :  { %v810_v47 = vadd.f32 %v809_v30, %v808_v9  ;;  %v692_v9 = vsub.f32 %v13270_v29, %v13781_v5  ;;  %v739_v30 = vmul.f32 %v690_v59, %v690_v59  ;;  %v817_v29 = vsel %vm552_vm5, %v738_v19, 0.0 }
 0x1ca   :  { %v14036_v58 = vpop.f32.mrb[120].mxu0  ;;  %v695_v19 = vsub.f32 %v13312_v61, %v13781_v5 }
 0x1cb   :  { %11465 = vmatmul.mubr.msk.f32.gmra.mrb[226].mxu0 %vm90_vm4, %v10007_v48  ;;  %v11127_v17 = vpop.f32.mrb[121].mxu0  ;;  %v812_v16 = vadd.f32 %v811_v44, %v810_v47  ;;  %v10825_v48 = vpop.f32.mrb[83].mxu1  ;;  %v740_v44 = vmul.f32 %v691_v57, %v691_v57 }
 0x1cc   :  { %11467 = vmatprep.mubr.msk.f32.mxu0 %vm12147_vm3, %v15607_v32  ;;  %v14063_v33 = vpop.f32.mrb[84].mxu1  ;;  %v693_v17 = vsub.f32 %v13284_v40, %v13781_v5  ;;  %v10010_v40 = vld [vmem:[%s15575_s1 + $0x3a0] sm:$0x3] }
 0x1cd   :  { %v814_v52 = vadd.f32 %v813_v28, %v812_v16  ;;  %v10828_v47 = vpop.f32.mrb[85].mxu1  ;;  %v694_v16 = vsub.f32 %v13296_v49, %v13781_v5  ;;  %v741_v28 = vmul.f32 %v692_v9, %v692_v9  ;;  %v821_v48 = vsel %vm552_vm5, %v740_v44, 0.0 }
 0x1ce   :  { %v14050_v21 = vpop.f32.mrb[122].mxu0  ;;  %v14084_v49 = vpop.f32.mrb[86].mxu1  ;;  %v744_v44 = vmul.f32 %v695_v19, %v695_v19 }
 0x1cf   :  { %11468 = vmatmul.mubr.msk.f32.gmra.mrb[228].mxu0 %vm90_vm4, %v10008_v1  ;;  %v11130_v8 = vpop.f32.mrb[123].mxu0  ;;  %v816_v46 = vadd.f32 %v815_v54, %v814_v52  ;;  %v742_v52 = vmul.f32 %v693_v17, %v693_v17  ;;  %v743_v47 = vmul.f32 %v694_v16, %v694_v16  ;;  %v697_v17 = vsub.f32 %v13350_v31, %v13781_v5 }
 0x1d0   :  { %11470 = vmatprep.mubr.msk.f32.mxu0 %vm12147_vm3, %v15607_v32  ;;  %v819_v8 = vsel %vm552_vm5, %v739_v30, 0.0  ;;  %v699_v31 = vsub.f32 %v13392_v15, %v13781_v5  ;;  %v701_v15 = vsub.f32 %v13434_v22, %v13781_v5  ;;  %v703_v22 = vsub.f32 %v13474_v2, %v13781_v5 }
 0x1d1   :  { %v818_v39 = vadd.f32 %v817_v29, %v816_v46  ;;  %v696_v46 = vsub.f32 %v13326_v13, %v13781_v5  ;;  %v823_v29 = vsel %vm552_vm5, %v741_v28, 0.0  ;;  %v698_v13 = vsub.f32 %v13372_v51, %v13781_v5 }
 0x1d2   :  { %v14068_v59 = vpop.f32.mrb[124].mxu0  ;;  %v827_v28 = vsel %vm552_vm5, %v743_v47, 0.0  ;;  %v746_v19 = vmul.f32 %v697_v17, %v697_v17  ;;  %v748_v17 = vmul.f32 %v699_v31, %v699_v31  ;;  %v750_v31 = vmul.f32 %v701_v15, %v701_v15 }
 0x1d3   :  { %11471 = vmatmul.mubr.msk.f32.gmra.mrb[230].mxu0 %vm90_vm4, %v10009_v20  ;;  %v11133_v1 = vpop.f32.mrb[125].mxu0  ;;  %v820_v57 = vadd.f32 %v819_v8, %v818_v39  ;;  %v10831_v20 = vpop.f32.mrb[87].mxu1  ;;  %v825_v39 = vsel %vm552_vm5, %v742_v52, 0.0  ;;  %v745_v16 = vmul.f32 %v696_v46, %v696_v46  ;;  %v829_v52 = vsel %vm552_vm5, %v744_v44, 0.0 }
 0x1d4   :  { %11473 = vmatprep.mubr.msk.f32.mxu0 %vm12147_vm3, %v15607_v32  ;;  %v833_v44 = vsel %vm552_vm5, %v746_v19, 0.0  ;;  %v837_v19 = vsel %vm552_vm5, %v748_v17, 0.0  ;;  %v705_v2 = vsub.f32 %v13516_v11, %v13781_v5  ;;  %v752_v15 = vmul.f32 %v703_v22, %v703_v22 }
 0x1d5   :  { %v822_v9 = vadd.f32 %v821_v48, %v820_v57  ;;  %v14097_v57 = vpop.f32.mrb[88].mxu1  ;;  %v831_v51 = vsel %vm552_vm5, %v745_v16, 0.0  ;;  %v841_v17 = vsel %vm552_vm5, %v750_v31, 0.0 }
 0x1d6   :  { %v14082_v54 = vpop.f32.mrb[126].mxu0  ;;  %v10834_v48 = vpop.f32.mrb[89].mxu1 }
 0x1d7   :  { %11474 = vmatmul.mubr.msk.f32.gmra.mrb[232].mxu0 %vm90_vm4, %v10010_v40  ;;  %v11136_v30 = vpop.f32.mrb[127].mxu0  ;;  %v824_v61 = vadd.f32 %v823_v29, %v822_v9  ;;  %v14110_v46 = vpop.f32.mrb[90].mxu1 }
 0x1d8   :  { %11519 = vmatprep.mubr.msk.f32.mxu0 %vm12147_vm3, %v15607_v32 }
 0x1d9   :  { %v826_v8 = vadd.f32 %v825_v39, %v824_v61  ;;  %v700_v61 = vsub.f32 %v13412_v42, %v13781_v5  ;;  %v747_v39 = vmul.f32 %v698_v13, %v698_v13  ;;  %v702_v13 = vsub.f32 %v13454_v63, %v13781_v5 }
 0x1da   :  { %v14095_v1 = vpop.f32.mrb[128].mxu0 }
 0x1db   :  { %v11139_v40 = vpop.f32.mrb[129].mxu0  ;;  %v828_v9 = vadd.f32 %v827_v28, %v826_v8  ;;  %v10837_v8 = vpop.f32.mrb[91].mxu1  ;;  %v749_v16 = vmul.f32 %v700_v61, %v700_v61 }
 0x1dc   :  { %v14117_v28 = vpop.f32.mrb[92].mxu1 }
 0x1dd   :  { %v830_v20 = vadd.f32 %v829_v52, %v828_v9  ;;  %v10840_v42 = vpop.f32.mrb[93].mxu1  ;;  %v835_v52 = vsel %vm552_vm5, %v747_v39, 0.0  ;;  %v839_v63 = vsel %vm552_vm5, %v749_v16, 0.0 }
 0x1de   :  { %v14105_v30 = vpop.f32.mrb[130].mxu0  ;;  %v14130_v61 = vpop.f32.mrb[94].mxu1 }
 0x1df   :  { %v11187_v29 = vpop.f32.mrb[131].mxu0  ;;  %v832_v47 = vadd.f32 %v831_v51, %v830_v20 }
 0x1e1   :  { %v834_v48 = vadd.f32 %v833_v44, %v832_v47  ;;  %v704_v47 = vsub.f32 %v13496_v41, %v13781_v5  ;;  %v751_v44 = vmul.f32 %v702_v13, %v702_v13  ;;  %v706_v41 = vsub.f32 %v13533_v38, %v13781_v5 }
 0x1e2   :  { %v14115_v40 = vpop.f32.mrb[132].mxu0 }
 0x1e3   :  { %v11190_v9 = vpop.f32.mrb[133].mxu0  ;;  %v836_v20 = vadd.f32 %v835_v52, %v834_v48  ;;  %v10843_v48 = vpop.f32.mrb[95].mxu1  ;;  %v753_v13 = vmul.f32 %v704_v47, %v704_v47  ;;  %v843_v16 = vsel %vm552_vm5, %v751_v44, 0.0 }
 0x1e4   :  { %v755_v48 = vmul.f32 %v706_v41, %v706_v41 }
 0x1e5   :  { %v838_v51 = vadd.f32 %v837_v19, %v836_v20  ;;  %v14140_v19 = vpop.f32.mrb[96].mxu1 }
 0x1e6   :  { %v14125_v29 = vpop.f32.mrb[134].mxu0  ;;  %v10846_v22 = vpop.f32.mrb[97].mxu1 }
 0x1e7   :  { %v11193_v8 = vpop.f32.mrb[135].mxu0  ;;  %v840_v39 = vadd.f32 %v839_v63, %v838_v51  ;;  %v754_v51 = vmul.f32 %v705_v2, %v705_v2 }
 0x1e8   :  { %v845_v8 = vsel %vm552_vm5, %v752_v15, 0.0 }
 0x1e9   :  { %v842_v42 = vadd.f32 %v841_v17, %v840_v39  ;;  %v847_v39 = vsel %vm552_vm5, %v753_v13, 0.0  ;;  %v849_v38 = vsel %vm552_vm5, %v754_v51, 0.0 }
 0x1ea   :  { %v14135_v9 = vpop.f32.mrb[136].mxu0 }
 0x1eb   :  { %v11196_v52 = vpop.f32.mrb[137].mxu0  ;;  %v844_v20 = vadd.f32 %v843_v16, %v842_v42 }
 0x1ec   :  { %v851_v52 = vsel %vm552_vm5, %v755_v48, 0.0 }
 0x1ed   :  { %v846_v31 = vadd.f32 %v845_v8, %v844_v20 }
 0x1ee   :  { %v14143_v11 = vpop.f32.mrb[138].mxu0 }
 0x1ef   :  { %15641 = vst [vmem:[#allocation51_spill] sm:$0xff] %v14143_v11  ;;  %v11199_v63 = vpop.f32.mrb[139].mxu0  ;;  %v848_v17 = vadd.f32 %v847_v39, %v846_v31 }
 0x1f1   :  { %v850_v44 = vadd.f32 %v849_v38, %v848_v17 }
 0x1f2   :  { %v14147_v47 = vpop.f32.mrb[140].mxu0 }
 0x1f3   :  { %v11202_v42 = vpop.f32.mrb[141].mxu0  ;;  %v852_v2 = vadd.f32 %v851_v52, %v850_v44 }
 0x1f5   :  { %v853_v42 = vrot.slane %v852_v2, 4 }
 0x1f6   :  { %v14150_v16 = vpop.f32.mrb[142].mxu0 }
 0x1f7   :  { %v11205_v15 = vpop.f32.mrb[143].mxu0 }
 0x1fa   :  { %v14152_v11 = vpop.f32.mrb[144].mxu0 }
 0x1fb   :  { %15642 = vst [vmem:[#allocation52_spill] sm:$0xff] %v14152_v11  ;;  %v11208_v20 = vpop.f32.mrb[145].mxu0 }
 0x1fc   :  { %v854_v20 = vadd.f32 %v853_v42, %v852_v2 }
 0x1fe   :  { %v14154_v8 = vpop.f32.mrb[146].mxu0 }
 0x1ff   :  { %15643 = vst [vmem:[#allocation53_spill] sm:$0xff] %v14154_v8  ;;  %v11211_v41 = vpop.f32.mrb[147].mxu0 }
 0x202   :  { %v14156_v13 = vpop.f32.mrb[148].mxu0 }
 0x203   :  { %15644 = vst [vmem:[#allocation54_spill] sm:$0xff] %v14156_v13  ;;  %v11214_v22 = vpop.f32.mrb[149].mxu0  ;;  %v855_v13 = vrot.slane %v854_v20, 2 }
 0x206   :  { %v14158_v51 = vpop.f32.mrb[150].mxu0 }
 0x207   :  { %15645 = vst [vmem:[#allocation55_spill] sm:$0xff] %v14158_v51  ;;  %v11217_v31 = vpop.f32.mrb[151].mxu0 }
 0x20a   :  { %v14160_v63 = vpop.f32.mrb[152].mxu0 }
 0x20b   :  { %15646 = vst [vmem:[#allocation56_spill] sm:$0xff] %v14160_v63  ;;  %v11220_v39 = vpop.f32.mrb[153].mxu0  ;;  %v856_v63 = vadd.f32 %v855_v13, %v854_v20 }
 0x20e   :  { %v14162_v48 = vpop.f32.mrb[154].mxu0 }
 0x20f   :  { %15647 = vst [vmem:[#allocation57_spill] sm:$0xff] %v14162_v48  ;;  %v11223_v17 = vpop.f32.mrb[155].mxu0 }
 0x210   :  { %v857_v17 = vrot.slane %v856_v63, 1 }
 0x212   :  { %v14164_v38 = vpop.f32.mrb[156].mxu0 }
 0x213   :  { %15648 = vst [vmem:[#allocation58_spill] sm:$0xff] %v14164_v38  ;;  %v11271_v44 = vpop.f32.mrb[157].mxu0  ;;  %v858_v38 = vadd.f32 %v857_v17, %v856_v63 }
 0x215   :  { %v859_v2 = vmul.f32 0.0025510204, %v858_v38  ;;  %v860_v38 = vld [vmem:[%s15578_s4] sm:$0x1] }
 0x216   :  { %v14166_v52 = vpop.f32.mrb[158].mxu0 }
 0x217   :  { %15649 = vst [vmem:[#allocation59_spill] sm:$0xff] %v14166_v52  ;;  %v11274_v15 = vpop.f32.mrb[159].mxu0 }
 0x21a   :  { %v14168_v41 = vpop.f32.mrb[160].mxu0 }
 0x21b   :  { %15650 = vst [vmem:[#allocation60_spill] sm:$0xff] %v14168_v41  ;;  %v11277_v22 = vpop.f32.mrb[161].mxu0  ;;  %v861_v41 = vadd.f32 1e-05, %v859_v2 }
 0x21d   :  { %12117 = vrsqrt.f32 %v861_v41 }
 0x21e   :  { %v14170_v51 = vpop.f32.mrb[162].mxu0 }
 0x21f   :  { %v11280_v31 = vpop.f32.mrb[163].mxu0 }
 0x222   :  { %v14172_v39 = vpop.f32.mrb[164].mxu0 }
 0x223   :  { %v11283_v48 = vpop.f32.mrb[165].mxu0 }
 0x226   :  { %v14174_v8 = vpop.f32.mrb[166].mxu0 }
 0x227   :  { %15651 = vst [vmem:[#allocation61_spill] sm:$0xff] %v14174_v8  ;;  %v11286_v44 = vpop.f32.mrb[167].mxu0  ;;  %v12118_v63 = vpop.eup %12117 }
 0x228   :  { %v863_v2 = vmul.f32 %v12118_v63, %v860_v38 }
 0x22a   :  { %v14176_v11 = vpop.f32.mrb[168].mxu0 }
 0x22b   :  { %v11289_v15 = vpop.f32.mrb[169].mxu0 }
 0x22c   :  { %v1050_v15 = vlaneseq }
 0x22e   :  { %v14178_v42 = vpop.f32.mrb[170].mxu0 }
 0x22f   :  { %15652 = vst [vmem:[#allocation62_spill] sm:$0xff] %v14178_v42  ;;  %v11292_v22 = vpop.f32.mrb[171].mxu0 }
 0x232   :  { %v14180_v52 = vpop.f32.mrb[172].mxu0 }
 0x233   :  { %15653 = vst [vmem:[#allocation63_spill] sm:$0xff] %v14180_v52  ;;  %v11295_v31 = vpop.f32.mrb[173].mxu0 }
 0x234   :  { %v1051_v31 = vshrl.u32 %v1050_v15, 7 }
 0x236   :  { %v14182_v13 = vpop.f32.mrb[174].mxu0 }
 0x237   :  { %15654 = vst [vmem:[#allocation64_spill] sm:$0xff] %v14182_v13  ;;  %v11298_v48 = vpop.f32.mrb[175].mxu0  ;;  %v865_v13 = vmul.f32 %v863_v2, %v13781_v5 }
 0x23a   :  { %v14184_v20 = vpop.f32.mrb[176].mxu0 }
 0x23b   :  { %15655 = vst [vmem:[#allocation65_spill] sm:$0xff] %v14184_v20  ;;  %v11301_v8 = vpop.f32.mrb[177].mxu0  ;;  %v14199_v20 = vsub.s32 0, %v1051_v31 }
 0x23c   :  { %v864_v8 = vld [vmem:[%s15579_s5] sm:$0x1] }
 0x23d   :  { %15657 = vst [vmem:[#allocation67_spill] sm:$0xff] %v14199_v20  ;;  %v866_v52 = vsub.f32 %v864_v8, %v865_v13  ;;  %v14204_v63 = vrot.slane %v863_v2, %v14199_v20 }
 0x23e   :  { %v14186_v44 = vpop.f32.mrb[178].mxu0 }
 0x23f   :  { %15656 = vst [vmem:[#allocation66_spill] sm:$0xff] %v14186_v44  ;;  %v11304_v17 = vpop.f32.mrb[179].mxu0  ;;  %v14207_v38 = vrot.slane %v866_v52, %v14199_v20  ;;  %v1389_v13 = vmul.f32 %v13978_v24, %v14204_v63  ;;  %v1390_v2 = vmul.f32 %v13985_v26, %v14204_v63  ;;  %v1204_v24 = vld [vmem:[%s15580_s6] sm:$0x3] }
 0x241   :  { %v1402_v52 = vadd.f32 %v1389_v13, %v14207_v38  ;;  %v1403_v20 = vadd.f32 %v1390_v2, %v14207_v38 }
 0x242   :  { %v14191_v22 = vpop.f32.mrb[180].mxu0 }
 0x243   :  { %v11307_v41 = vpop.f32.mrb[181].mxu0 }
 0x244   :  { %v1388_v41 = vmul.f32 %v13954_v18, %v14204_v63  ;;  %v1415_v18 = vmul.f32 0.01, %v1402_v52 }
 0x246   :  { %v14194_v48 = vpop.f32.mrb[182].mxu0 }
 0x247   :  { %v11355_v44 = vpop.f32.mrb[183].mxu0 }
 0x248   :  { %v1401_v44 = vadd.f32 %v1388_v41, %v14207_v38  ;;  %v1391_v41 = vmul.f32 %v14013_v34, %v14204_v63 }
 0x24a   :  { %v14201_v42 = vpop.f32.mrb[184].mxu0  ;;  %v1404_v13 = vadd.f32 %v1391_v41, %v14207_v38  ;;  %v15661_v41 = vld [vmem:[#allocation6_spill] sm:$0xff] }
 0x24b   :  { %15658 = vst [vmem:[#allocation68_spill] sm:$0xff] %v14201_v42  ;;  %v11358_v17 = vpop.f32.mrb[185].mxu0  ;;  %v1416_v42 = vmul.f32 0.01, %v1403_v20 }
 0x24c   :  { %v1414_v17 = vmul.f32 0.01, %v1401_v44 }
 0x24e   :  { %v14209_v5 = vpop.f32.mrb[186].mxu0 }
 0x24f   :  { %15659 = vst [vmem:[#allocation69_spill] sm:$0xff] %v14209_v5  ;;  %v11361_v15 = vpop.f32.mrb[187].mxu0 }
 0x250   :  { %v1427_v15 = vmax.f32 %v1401_v44, %v1414_v17  ;;  %v1392_v44 = vmul.f32 %v14031_v23, %v14204_v63  ;;  %v1429_v17 = vmax.f32 %v1403_v20, %v1416_v42  ;;  %v1393_v23 = vmul.f32 %v14052_v12, %v14204_v63 }
 0x252   :  { %v14214_v31 = vpop.f32.mrb[188].mxu0  ;;  %v1406_v20 = vadd.f32 %v1393_v23, %v14207_v38  ;;  %v15663_v23 = vld [vmem:[#allocation5_spill] sm:$0xff] }
 0x253   :  { %15660 = vst [vmem:[#allocation70_spill] sm:$0xff] %v14214_v31  ;;  %v11364_v8 = vpop.f32.mrb[189].mxu0  ;;  %v1519_v31 = vmul.f32 %v13217_v55, %v1427_v15  ;;  %v1417_v15 = vmul.f32 0.01, %v1404_v13 }
 0x254   :  { %v1428_v8 = vmax.f32 %v1402_v52, %v1415_v18  ;;  %v1405_v52 = vadd.f32 %v1392_v44, %v14207_v38  ;;  %v15662_v44 = vld [vmem:[#allocation8_spill] sm:$0xff] }
 0x255   :  { %10850 = vmatmul.mubr.msk.f32.vlgmr.msra.gmra.mrb[98].mxu1 %vm552_vm5, %v1519_v31 }
 0x256   :  { %v14222_v5 = vpop.f32.mrb[190].mxu0  ;;  %10889 = vmatpush3.msk.msra.mxu1 %vm1573_vm6, %v1204_v24  ;;  %10852 = vmatprep.mubr.msk.f32.mxu1 %vm12147_vm3, %v15607_v32  ;;  %v1520_v34 = vmul.f32 %v13279_v35, %v1428_v8  ;;  %v1521_v24 = vmul.f32 %v15661_v41, %v1429_v17  ;;  %v1430_v35 = vmax.f32 %v1404_v13, %v1417_v15  ;;  %v1418_v42 = vmul.f32 0.01, %v1405_v52 }
 0x257   :  { %v11367_v26 = vpop.f32.mrb[191].mxu0  ;;  %10972 = vmatprep.subr.mxu1 %v15607_v32  ;;  %v1395_v17 = vmul.f32 %v14084_v49, %v14204_v63 }
 0x258   :  { %v1394_v26 = vmul.f32 %v14063_v33, %v14204_v63 }
 0x259   :  { %10853 = vmatmul.mubr.msk.f32.gmra.mrb[100].mxu1 %vm552_vm5, %v1520_v34  ;;  %v1431_v34 = vmax.f32 %v1405_v52, %v1418_v42  ;;  %v1408_v52 = vadd.f32 %v1395_v17, %v14207_v38  ;;  %v15664_v42 = vld [vmem:[#allocation10_spill] sm:$0xff] }
 0x25a   :  { %v14234_v2 = vpop.f32.mrb[192].mxu0  ;;  %10855 = vmatprep.mubr.msk.f32.mxu1 %vm12147_vm3, %v15607_v32  ;;  %v1407_v13 = vadd.f32 %v1394_v26, %v14207_v38 }
 0x25b   :  { %v11370_v55 = vpop.f32.mrb[193].mxu0  ;;  %v1523_v41 = vmul.f32 %v15663_v23, %v1431_v34 }
 0x25c   :  { %v1522_v55 = vmul.f32 %v15662_v44, %v1430_v35  ;;  %v1396_v35 = vmul.f32 %v14097_v57, %v14204_v63 }
 0x25d   :  { %10856 = vmatmul.mubr.msk.f32.gmra.mrb[102].mxu1 %vm552_vm5, %v1521_v24 }
 0x25e   :  { %v14245_v31 = vpop.f32.mrb[194].mxu0  ;;  %10858 = vmatprep.mubr.msk.f32.mxu1 %vm12147_vm3, %v15607_v32  ;;  %v1409_v34 = vadd.f32 %v1396_v35, %v14207_v38 }
 0x25f   :  { %v11373_v18 = vpop.f32.mrb[195].mxu0 }
 0x260   :  { %v1419_v18 = vmul.f32 0.01, %v1406_v20 }
 0x261   :  { %10859 = vmatmul.mubr.msk.f32.gmra.mrb[104].mxu1 %vm552_vm5, %v1522_v55  ;;  %v1421_v55 = vmul.f32 0.01, %v1408_v52 }
 0x262   :  { %v14254_v12 = vpop.f32.mrb[196].mxu0  ;;  %10861 = vmatprep.mubr.msk.f32.mxu1 %vm12147_vm3, %v15607_v32  ;;  %v1432_v24 = vmax.f32 %v1406_v20, %v1419_v18  ;;  %v1397_v18 = vmul.f32 %v14110_v46, %v14204_v63 }
 0x263   :  { %v11376_v8 = vpop.f32.mrb[197].mxu0 }
 0x264   :  { %v1420_v8 = vmul.f32 0.01, %v1407_v13  ;;  %v1524_v26 = vmul.f32 %v15664_v42, %v1432_v24  ;;  %v1422_v24 = vmul.f32 0.01, %v1409_v34  ;;  %v15666_v42 = vld [vmem:[#allocation12_spill] sm:$0xff] }
 0x265   :  { %10862 = vmatmul.mubr.msk.f32.gmra.mrb[106].mxu1 %vm552_vm5, %v1523_v41  ;;  %v1434_v41 = vmax.f32 %v1408_v52, %v1421_v55 }
 0x266   :  { %v14263_v33 = vpop.f32.mrb[198].mxu0  ;;  %10864 = vmatprep.mubr.msk.f32.mxu1 %vm12147_vm3, %v15607_v32  ;;  %v1433_v44 = vmax.f32 %v1407_v13, %v1420_v8  ;;  %v1410_v13 = vadd.f32 %v1397_v18, %v14207_v38  ;;  %v1398_v8 = vmul.f32 %v14117_v28, %v14204_v63  ;;  %v15668_v18 = vld [vmem:[#allocation9_spill] sm:$0xff] }
 0x267   :  { %v11379_v15 = vpop.f32.mrb[199].mxu0 }
 0x268   :  { %v15665_v15 = vld [vmem:[#allocation7_spill] sm:$0xff]  ;;  %v1411_v52 = vadd.f32 %v1398_v8, %v14207_v38  ;;  %v15670_v8 = vld [vmem:[#allocation14_spill] sm:$0xff] }
 0x269   :  { %10865 = vmatmul.mubr.msk.f32.gmra.mrb[108].mxu1 %vm552_vm5, %v1524_v26  ;;  %v1525_v23 = vmul.f32 %v15665_v15, %v1433_v44  ;;  %v1526_v26 = vmul.f32 %v15666_v42, %v1434_v41  ;;  %v1399_v44 = vmul.f32 %v14130_v61, %v14204_v63  ;;  %v1400_v41 = vmul.f32 %v14140_v19, %v14204_v63 }
 0x26a   :  { %v14272_v49 = vpop.f32.mrb[200].mxu0  ;;  %10867 = vmatprep.mubr.msk.f32.mxu1 %vm12147_vm3, %v15607_v32 }
 0x26b   :  { %v11382_v20 = vpop.f32.mrb[201].mxu0 }
 0x26c   :  { %v1435_v20 = vmax.f32 %v1409_v34, %v1422_v24  ;;  %v1412_v34 = vadd.f32 %v1399_v44, %v14207_v38 }
 0x26d   :  { %10868 = vmatmul.mubr.msk.f32.gmra.mrb[110].mxu1 %vm552_vm5, %v1525_v23 }
 0x26e   :  { %v14281_v57 = vpop.f32.mrb[202].mxu0  ;;  %10870 = vmatprep.mubr.msk.f32.mxu1 %vm12147_vm3, %v15607_v32  ;;  %v1527_v15 = vmul.f32 %v15668_v18, %v1435_v20  ;;  %v15671_v20 = vld [vmem:[#allocation36_spill] sm:$0xff]  ;;  %v15673_v18 = vld [vmem:[#allocation11_spill] sm:$0xff] }
 0x26f   :  { %v11385_v17 = vpop.f32.mrb[203].mxu0 }
 0x270   :  { %v1423_v17 = vmul.f32 0.01, %v1410_v13 }
 0x271   :  { %10871 = vmatmul.mubr.msk.f32.gmra.mrb[112].mxu1 %vm552_vm5, %v1526_v26 }
 0x272   :  { %v14290_v46 = vpop.f32.mrb[204].mxu0  ;;  %10873 = vmatprep.mubr.msk.f32.mxu1 %vm12147_vm3, %v15607_v32  ;;  %v1436_v23 = vmax.f32 %v1410_v13, %v1423_v17  ;;  %v1413_v13 = vadd.f32 %v1400_v41, %v14207_v38  ;;  %v1055_v17 = vmul.f32 %v14204_v63, %v15671_v20 }
 0x273   :  { %v11388_v35 = vpop.f32.mrb[205].mxu0 }
 0x274   :  { %v1424_v35 = vmul.f32 0.01, %v1411_v52  ;;  %v1528_v42 = vmul.f32 %v15670_v8, %v1436_v23  ;;  %v1074_v44 = vadd.f32 %v14207_v38, %v1055_v17  ;;  %v1426_v23 = vmul.f32 0.01, %v1413_v13  ;;  %v15676_v17 = vld [vmem:[#allocation16_spill] sm:$0xff] }
 0x275   :  { %10874 = vmatmul.mubr.msk.f32.gmra.mrb[114].mxu1 %vm552_vm5, %v1527_v15 }
 0x276   :  { %v14299_v28 = vpop.f32.mrb[206].mxu0  ;;  %10876 = vmatprep.mubr.msk.f32.mxu1 %vm12147_vm3, %v15607_v32  ;;  %v1437_v26 = vmax.f32 %v1411_v52, %v1424_v35  ;;  %v15674_v35 = vld [vmem:[#allocation39_spill] sm:$0xff]  ;;  %v1087_v20 = vmul.f32 0.01, %v1074_v44 }
 0x277   :  { %15667 = vst [vmem:[#allocation6_spill] sm:$0xff] %v14299_v28  ;;  %v11391_v55 = vpop.f32.mrb[207].mxu0  ;;  %v1056_v41 = vmul.f32 %v14204_v63, %v15674_v35  ;;  %v15679_v28 = vld [vmem:[#allocation43_spill] sm:$0xff] }
 0x278   :  { %v1425_v55 = vmul.f32 0.01, %v1412_v34  ;;  %v1529_v15 = vmul.f32 %v15673_v18, %v1437_v26  ;;  %v1439_v26 = vmax.f32 %v1413_v13, %v1426_v23  ;;  %v1058_v13 = vmul.f32 %v14204_v63, %v15679_v28  ;;  %v15681_v23 = vld [vmem:[#allocation18_spill] sm:$0xff] }
 0x279   :  { %10877 = vmatmul.mubr.msk.f32.gmra.mrb[116].mxu1 %vm552_vm5, %v1528_v42 }
 0x27a   :  { %v14308_v61 = vpop.f32.mrb[208].mxu0  ;;  %10879 = vmatprep.mubr.msk.f32.mxu1 %vm12147_vm3, %v15607_v32 }
 0x27b   :  { %15669 = vst [vmem:[#allocation8_spill] sm:$0xff] %v14308_v61  ;;  %v11439_v24 = vpop.f32.mrb[209].mxu0 }
 0x27c   :  { %v1438_v24 = vmax.f32 %v1412_v34, %v1425_v55  ;;  %v15677_v34 = vld [vmem:[#allocation42_spill] sm:$0xff] }
 0x27d   :  { %10880 = vmatmul.mubr.msk.f32.gmra.mrb[118].mxu1 %vm552_vm5, %v1529_v15  ;;  %v1057_v55 = vmul.f32 %v14204_v63, %v15677_v34 }
 0x27e   :  { %v14317_v19 = vpop.f32.mrb[210].mxu0  ;;  %10882 = vmatprep.mubr.msk.f32.mxu1 %vm12147_vm3, %v15607_v32  ;;  %v1530_v61 = vmul.f32 %v15676_v17, %v1438_v24 }
 0x27f   :  { %15672 = vst [vmem:[#allocation5_spill] sm:$0xff] %v14317_v19  ;;  %v11442_v52 = vpop.f32.mrb[211].mxu0  ;;  %v1075_v19 = vadd.f32 %v14207_v38, %v1056_v41 }
 0x280   :  { %v1100_v52 = vmax.f32 %v1074_v44, %v1087_v20  ;;  %v1077_v20 = vadd.f32 %v14207_v38, %v1058_v13 }
 0x281   :  { %10883 = vmatmul.mubr.msk.f32.gmra.mrb[120].mxu1 %vm552_vm5, %v1530_v61  ;;  %v1088_v35 = vmul.f32 0.01, %v1075_v19 }
 0x282   :  { %v14326_v8 = vpop.f32.mrb[212].mxu0  ;;  %10885 = vmatprep.mubr.msk.f32.mxu1 %vm12147_vm3, %v15607_v32  ;;  %v1191_v17 = vmul.f32 %v15681_v23, %v1100_v52 }
 0x283   :  { %15675 = vst [vmem:[#allocation10_spill] sm:$0xff] %v14326_v8  ;;  %v11445_v42 = vpop.f32.mrb[213].mxu0  ;;  %v15678_v8 = vld [vmem:[#allocation13_spill] sm:$0xff]  ;;  %v1101_v34 = vmax.f32 %v1075_v19, %v1088_v35 }
 0x284   :  { %v1076_v42 = vadd.f32 %v14207_v38, %v1057_v55  ;;  %v1531_v41 = vmul.f32 %v15678_v8, %v1439_v26  ;;  %v9708_v8 = vld [vmem:[%s15580_s6 + $0x4] sm:$0x3]  ;;  %v15682_v26 = vld [vmem:[#allocation46_spill] sm:$0xff] }
 0x285   :  { %v1059_v28 = vmul.f32 %v14204_v63, %v15682_v26  ;;  %v15687_v26 = vld [vmem:[#allocation20_spill] sm:$0xff] }
 0x286   :  { %v14335_v18 = vpop.f32.mrb[214].mxu0  ;;  %10886 = vmatmul.mubr.msk.f32.gmra.mrb[122].mxu1 %vm552_vm5, %v1531_v41  ;;  %v1089_v44 = vmul.f32 0.01, %v1076_v42  ;;  %v1090_v41 = vmul.f32 0.01, %v1077_v20 }
 0x287   :  { %v11448_v15 = vpop.f32.mrb[215].mxu0  ;;  %10890 = vmatprep.mubr.msk.f32.mxu1 %vm12147_vm3, %v15607_v32  ;;  %v1078_v13 = vadd.f32 %v14207_v38, %v1059_v28  ;;  %v15688_v28 = vld [vmem:[#allocation50_spill] sm:$0xff] }
 0x288   :  { %v15684_v15 = vld [vmem:[#allocation15_spill] sm:$0xff]  ;;  %v1102_v35 = vmax.f32 %v1076_v42, %v1089_v44 }
 0x289   :  { %v1192_v52 = vmul.f32 %v15684_v15, %v1101_v34  ;;  %v1103_v34 = vmax.f32 %v1077_v20, %v1090_v41  ;;  %v1091_v42 = vmul.f32 0.01, %v1078_v13  ;;  %v1061_v15 = vmul.f32 %v14204_v63, %v15688_v28 }
 0x28a   :  { %v14344_v24 = vpop.f32.mrb[216].mxu0  ;;  %10891 = vmatmul.mubr.msk.f32.vlgmr.msra.gmra.mrb[98].mxu1 %vm552_vm5, %v1191_v17 }
 0x28b   :  { %15680 = vst [vmem:[#allocation7_spill] sm:$0xff] %v14344_v24  ;;  %v11451_v61 = vpop.f32.mrb[217].mxu0  ;;  %10973 = vmatpush3.msk.msra.mxu1 %vm1573_vm6, %v9708_v8  ;;  %10893 = vmatprep.mubr.msk.f32.mxu1 %vm12147_vm3, %v15607_v32  ;;  %v1080_v20 = vadd.f32 %v14207_v38, %v1061_v15 }
 0x28c   :  { %11056 = vmatprep.subr.mxu1 %v15607_v32  ;;  %v15685_v61 = vld [vmem:[#allocation48_spill] sm:$0xff] }
 0x28d   :  { %v1060_v23 = vmul.f32 %v14204_v63, %v15685_v61 }
 0x28e   :  { %v14356_v55 = vpop.f32.mrb[218].mxu0  ;;  %10894 = vmatmul.mubr.msk.f32.gmra.mrb[100].mxu1 %vm552_vm5, %v1192_v52 }
 0x28f   :  { %15683 = vst [vmem:[#allocation12_spill] sm:$0xff] %v14356_v55  ;;  %v11454_v19 = vpop.f32.mrb[219].mxu0  ;;  %10896 = vmatprep.mubr.msk.f32.mxu1 %vm12147_vm3, %v15607_v32  ;;  %v1079_v44 = vadd.f32 %v14207_v38, %v1060_v23 }
 0x290   :  { %v1193_v19 = vmul.f32 %v15687_v26, %v1102_v35  ;;  %v1062_v35 = vmul.f32 %v14204_v63, %v13843_v14  ;;  %v15690_v26 = vld [vmem:[#allocation21_spill] sm:$0xff] }
 0x291   :  { %v1092_v24 = vmul.f32 0.01, %v1079_v44 }
 0x292   :  { %v14367_v17 = vpop.f32.mrb[220].mxu0  ;;  %10897 = vmatmul.mubr.msk.f32.gmra.mrb[102].mxu1 %vm552_vm5, %v1193_v19 }
 0x293   :  { %15686 = vst [vmem:[#allocation9_spill] sm:$0xff] %v14367_v17  ;;  %v11457_v8 = vpop.f32.mrb[221].mxu0  ;;  %10899 = vmatprep.mubr.msk.f32.mxu1 %vm12147_vm3, %v15607_v32  ;;  %v15689_v17 = vld [vmem:[#allocation17_spill] sm:$0xff]  ;;  %v1105_v28 = vmax.f32 %v1079_v44, %v1092_v24  ;;  %v1064_v44 = vmul.f32 %v14204_v63, %v13884_v62 }
 0x294   :  { %v1194_v55 = vmul.f32 %v15689_v17, %v1103_v34  ;;  %v1104_v8 = vmax.f32 %v1078_v13, %v1091_v42  ;;  %v1081_v13 = vadd.f32 %v14207_v38, %v1062_v35  ;;  %v1063_v17 = vmul.f32 %v14204_v63, %v13868_v45  ;;  %v15691_v34 = vld [vmem:[#allocation19_spill] sm:$0xff] }
 0x295   :  { %v1196_v42 = vmul.f32 %v15691_v34, %v1105_v28  ;;  %v1065_v28 = vmul.f32 %v14204_v63, %v13905_v43 }
 0x296   :  { %v14376_v61 = vpop.f32.mrb[222].mxu0  ;;  %10900 = vmatmul.mubr.msk.f32.gmra.mrb[104].mxu1 %vm552_vm5, %v1194_v55  ;;  %v1195_v19 = vmul.f32 %v15690_v26, %v1104_v8  ;;  %v1082_v24 = vadd.f32 %v14207_v38, %v1063_v17  ;;  %v1159_v8 = vpop.permute.xlu1 %1158 }
 0x297   :  { %v11460_v52 = vpop.f32.mrb[223].mxu0  ;;  %10902 = vmatprep.mubr.msk.f32.mxu1 %vm12147_vm3, %v15607_v32 }
 0x298   :  { %v1093_v52 = vmul.f32 0.01, %v1080_v20 }
 0x29a   :  { %v14385_v41 = vpop.f32.mrb[224].mxu0  ;;  %10903 = vmatmul.mubr.msk.f32.gmra.mrb[106].mxu1 %vm552_vm5, %v1195_v19  ;;  %v1106_v15 = vmax.f32 %v1080_v20, %v1093_v52  ;;  %v1083_v20 = vadd.f32 %v14207_v38, %v1064_v44  ;;  %v1164_v52 = vpop.permute.xlu0 %1163 }
 0x29b   :  { %v11463_v23 = vpop.f32.mrb[225].mxu0  ;;  %10905 = vmatprep.mubr.msk.f32.mxu1 %vm12147_vm3, %v15607_v32 }
 0x29c   :  { %v1094_v23 = vmul.f32 0.01, %v1081_v13  ;;  %v1197_v26 = vmul.f32 %v1159_v8, %v1106_v15  ;;  %v1066_v15 = vmul.f32 %v14204_v63, %v13916_v25 }
 0x29e   :  { %v14394_v14 = vpop.f32.mrb[226].mxu0  ;;  %10906 = vmatmul.mubr.msk.f32.gmra.mrb[108].mxu1 %vm552_vm5, %v1196_v42  ;;  %v1107_v19 = vmax.f32 %v1081_v13, %v1094_v23  ;;  %v1084_v13 = vadd.f32 %v14207_v38, %v1065_v28  ;;  %v1169_v23 = vpop.permute.xlu1 %1168 }
 0x29f   :  { %v11466_v55 = vpop.f32.mrb[227].mxu0  ;;  %10908 = vmatprep.mubr.msk.f32.mxu1 %vm12147_vm3, %v15607_v32  ;;  %v1174_v25 = vpop.permute.xlu0 %1173 }
 0x2a0   :  { %v1095_v55 = vmul.f32 0.01, %v1082_v24  ;;  %v1198_v34 = vmul.f32 %v1164_v52, %v1107_v19  ;;  %v1067_v19 = vmul.f32 %v14204_v63, %v13937_v50 }
 0x2a2   :  { %v14403_v45 = vpop.f32.mrb[228].mxu0  ;;  %10909 = vmatmul.mubr.msk.f32.gmra.mrb[110].mxu1 %vm552_vm5, %v1197_v26  ;;  %v1108_v42 = vmax.f32 %v1082_v24, %v1095_v55  ;;  %v1085_v24 = vadd.f32 %v14207_v38, %v1066_v15 }
 0x2a3   :  { %v11469_v35 = vpop.f32.mrb[229].mxu0  ;;  %10911 = vmatprep.mubr.msk.f32.mxu1 %vm12147_vm3, %v15607_v32 }
 0x2a4   :  { %v1096_v35 = vmul.f32 0.01, %v1083_v20  ;;  %v1199_v8 = vmul.f32 %v1169_v23, %v1108_v42  ;;  %v1098_v52 = vmul.f32 0.01, %v1085_v24  ;;  %v15693_v42 = vld [vmem:[#allocation22_spill] sm:$0xff] }
 0x2a6   :  { %v14411_v62 = vpop.f32.mrb[230].mxu0  ;;  %10912 = vmatmul.mubr.msk.f32.gmra.mrb[112].mxu1 %vm552_vm5, %v1198_v34  ;;  %v1109_v26 = vmax.f32 %v1083_v20, %v1096_v35  ;;  %v1086_v34 = vadd.f32 %v14207_v38, %v1067_v19  ;;  %v2062_v20 = vmul.f32 %v15693_v42, %v14204_v63  ;;  %v1179_v35 = vpop.permute.xlu1 %1178  ;;  %v1111_v23 = vmax.f32 %v1085_v24, %v1098_v52  ;;  %v15695_v42 = vld [vmem:[#allocation24_spill] sm:$0xff] }
 0x2a7   :  { %v11472_v17 = vpop.f32.mrb[231].mxu0  ;;  %10914 = vmatprep.mubr.msk.f32.mxu1 %vm12147_vm3, %v15607_v32 }
 0x2a8   :  { %v1097_v17 = vmul.f32 0.01, %v1084_v13  ;;  %v1200_v55 = vmul.f32 %v1174_v25, %v1109_v26  ;;  %v2075_v50 = vadd.f32 %v2062_v20, %v14207_v38  ;;  %v1184_v26 = vpop.permute.xlu0 %1183  ;;  %v2064_v20 = vmul.f32 %v15695_v42, %v14204_v63 }
 0x2a9   :  { %v1202_v25 = vmul.f32 %v1184_v26, %v1111_v23 }
 0x2aa   :  { %v14419_v43 = vpop.f32.mrb[232].mxu0  ;;  %10915 = vmatmul.mubr.msk.f32.gmra.mrb[114].mxu1 %vm552_vm5, %v1199_v8  ;;  %v1110_v28 = vmax.f32 %v1084_v13, %v1097_v17  ;;  %v15694_v8 = vld [vmem:[#allocation23_spill] sm:$0xff]  ;;  %v2088_v17 = vmul.f32 0.01, %v2075_v50  ;;  %v1189_v24 = vpop.permute.xlu1 %1188 }
 0x2ab   :  { %15692 = vst [vmem:[#allocation14_spill] sm:$0xff] %v14419_v43  ;;  %v11475_v44 = vpop.f32.mrb[233].mxu0  ;;  %10917 = vmatprep.mubr.msk.f32.mxu1 %vm12147_vm3, %v15607_v32  ;;  %v2063_v13 = vmul.f32 %v15694_v8, %v14204_v63  ;;  %v15696_v8 = vld [vmem:[#allocation25_spill] sm:$0xff] }
 0x2ac   :  { %v1201_v15 = vmul.f32 %v1179_v35, %v1110_v28  ;;  %v1099_v44 = vmul.f32 0.01, %v1086_v34  ;;  %v2101_v28 = vmax.f32 %v2075_v50, %v2088_v17  ;;  %v2077_v35 = vadd.f32 %v2064_v20, %v14207_v38  ;;  %v9763_v50 = vld [vmem:[%s15580_s6 + $0x6] sm:$0x3]  ;;  %v15697_v17 = vld [vmem:[#allocation26_spill] sm:$0xff] }
 0x2ad   :  { %v2076_v19 = vadd.f32 %v2063_v13, %v14207_v38  ;;  %v2065_v43 = vmul.f32 %v15696_v8, %v14204_v63 }
 0x2ae   :  { %10918 = vmatmul.mubr.msk.f32.gmra.mrb[116].mxu1 %vm552_vm5, %v1200_v55  ;;  %v1112_v55 = vmax.f32 %v1086_v34, %v1099_v44  ;;  %v2131_v34 = vpop.permute.xlu0 %2130  ;;  %v2090_v13 = vmul.f32 0.01, %v2077_v35 }
 0x2af   :  { %10920 = vmatprep.mubr.msk.f32.mxu1 %vm12147_vm3, %v15607_v32  ;;  %v2089_v52 = vmul.f32 0.01, %v2076_v19  ;;  %v2193_v23 = vmul.f32 %v2131_v34, %v2101_v28  ;;  %v2078_v26 = vadd.f32 %v2065_v43, %v14207_v38 }
 0x2b1   :  { %v2102_v44 = vmax.f32 %v2076_v19, %v2089_v52  ;;  %v2103_v19 = vmax.f32 %v2077_v35, %v2090_v13  ;;  %v2091_v20 = vmul.f32 0.01, %v2078_v26  ;;  %v15699_v35 = vld [vmem:[#allocation28_spill] sm:$0xff] }
 0x2b2   :  { %10921 = vmatmul.mubr.msk.f32.gmra.mrb[118].mxu1 %vm552_vm5, %v1201_v15  ;;  %v1203_v15 = vmul.f32 %v1189_v24, %v1112_v55  ;;  %v2136_v55 = vpop.permute.xlu1 %2135  ;;  %v15698_v24 = vld [vmem:[#allocation27_spill] sm:$0xff]  ;;  %v2141_v52 = vpop.permute.xlu0 %2140 }
 0x2b3   :  { %10923 = vmatprep.mubr.msk.f32.mxu1 %vm12147_vm3, %v15607_v32  ;;  %v2194_v42 = vmul.f32 %v2136_v55, %v2102_v44  ;;  %v2067_v28 = vmul.f32 %v15698_v24, %v14204_v63  ;;  %v2104_v8 = vmax.f32 %v2078_v26, %v2091_v20  ;;  %v2068_v44 = vmul.f32 %v15699_v35, %v14204_v63 }
 0x2b5   :  { %v2081_v55 = vadd.f32 %v2068_v44, %v14207_v38 }
 0x2b6   :  { %10924 = vmatmul.mubr.msk.f32.gmra.mrb[120].mxu1 %vm552_vm5, %v1202_v25  ;;  %v2066_v25 = vmul.f32 %v15697_v17, %v14204_v63  ;;  %v2146_v13 = vpop.permute.xlu1 %2145 }
 0x2b7   :  { %10926 = vmatprep.mubr.msk.f32.mxu1 %vm12147_vm3, %v15607_v32 }
 0x2b8   :  { %v2079_v43 = vadd.f32 %v2066_v25, %v14207_v38 }
 0x2ba   :  { %10927 = vmatmul.mubr.msk.f32.gmra.mrb[122].mxu1 %vm552_vm5, %v1203_v15  ;;  %v2195_v15 = vmul.f32 %v2141_v52, %v2103_v19  ;;  %v2092_v34 = vmul.f32 0.01, %v2079_v43  ;;  %v2151_v19 = vpop.permute.xlu0 %2150 }
 0x2bb   :  { %10974 = vmatprep.mubr.msk.f32.mxu1 %vm12147_vm3, %v15607_v32 }
 0x2bc   :  { %v2105_v17 = vmax.f32 %v2079_v43, %v2092_v34 }
 0x2be   :  { %10975 = vmatmul.mubr.msk.f32.vlgmr.msra.gmra.mrb[98].mxu1 %vm552_vm5, %v2193_v23  ;;  %v2080_v23 = vadd.f32 %v2067_v28, %v14207_v38  ;;  %v2197_v20 = vmul.f32 %v2151_v19, %v2105_v17  ;;  %v2094_v28 = vmul.f32 0.01, %v2081_v55  ;;  %v2161_v17 = vpop.permute.xlu0 %2160 }
 0x2bf   :  { %11057 = vmatpush3.msk.msra.mxu1 %vm1573_vm6, %v9763_v50  ;;  %10977 = vmatprep.mubr.msk.f32.mxu1 %vm12147_vm3, %v15607_v32  ;;  %v2196_v50 = vmul.f32 %v2146_v13, %v2104_v8  ;;  %v2156_v8 = vpop.permute.xlu1 %2155 }
 0x2c0   :  { %11140 = vmatprep.subr.mxu1 %v15607_v32  ;;  %v2093_v25 = vmul.f32 0.01, %v2080_v23  ;;  %v2107_v35 = vmax.f32 %v2081_v55, %v2094_v28 }
 0x2c2   :  { %10978 = vmatmul.mubr.msk.f32.gmra.mrb[100].mxu1 %vm552_vm5, %v2194_v42  ;;  %v15700_v42 = vld [vmem:[#allocation29_spill] sm:$0xff]  ;;  %v2106_v24 = vmax.f32 %v2080_v23, %v2093_v25  ;;  %v2199_v25 = vmul.f32 %v2161_v17, %v2107_v35  ;;  %v2171_v35 = vpop.permute.xlu0 %2170 }
 0x2c3   :  { %10980 = vmatprep.mubr.msk.f32.mxu1 %vm12147_vm3, %v15607_v32  ;;  %v2069_v26 = vmul.f32 %v15700_v42, %v14204_v63 }
 0x2c4   :  { %v2198_v34 = vmul.f32 %v2156_v8, %v2106_v24  ;;  %v2166_v24 = vpop.permute.xlu1 %2165 }
 0x2c5   :  { %v2082_v52 = vadd.f32 %v2069_v26, %v14207_v38 }
 0x2c6   :  { %10981 = vmatmul.mubr.msk.f32.gmra.mrb[102].mxu1 %vm552_vm5, %v2195_v15  ;;  %v15701_v15 = vld [vmem:[#allocation30_spill] sm:$0xff] }
 0x2c7   :  { %10983 = vmatprep.mubr.msk.f32.mxu1 %vm12147_vm3, %v15607_v32  ;;  %v2070_v43 = vmul.f32 %v15701_v15, %v14204_v63  ;;  %v2095_v44 = vmul.f32 0.01, %v2082_v52 }
 0x2c9   :  { %v2083_v13 = vadd.f32 %v2070_v43, %v14207_v38  ;;  %v2108_v42 = vmax.f32 %v2082_v52, %v2095_v44 }
 0x2ca   :  { %10984 = vmatmul.mubr.msk.f32.gmra.mrb[104].mxu1 %vm552_vm5, %v2196_v50  ;;  %v15702_v50 = vld [vmem:[#allocation31_spill] sm:$0xff] }
 0x2cb   :  { %10986 = vmatprep.mubr.msk.f32.mxu1 %vm12147_vm3, %v15607_v32  ;;  %v2071_v23 = vmul.f32 %v15702_v50, %v14204_v63  ;;  %v2096_v26 = vmul.f32 0.01, %v2083_v13  ;;  %v2200_v28 = vmul.f32 %v2166_v24, %v2108_v42  ;;  %v2176_v42 = vpop.permute.xlu1 %2175 }
 0x2cd   :  { %v2084_v19 = vadd.f32 %v2071_v23, %v14207_v38  ;;  %v2109_v15 = vmax.f32 %v2083_v13, %v2096_v26 }
 0x2ce   :  { %10987 = vmatmul.mubr.msk.f32.gmra.mrb[106].mxu1 %vm552_vm5, %v2197_v20  ;;  %v15703_v20 = vld [vmem:[#allocation32_spill] sm:$0xff] }
 0x2cf   :  { %10989 = vmatprep.mubr.msk.f32.mxu1 %vm12147_vm3, %v15607_v32  ;;  %v2072_v55 = vmul.f32 %v15703_v20, %v14204_v63  ;;  %v2097_v43 = vmul.f32 0.01, %v2084_v19  ;;  %v2201_v44 = vmul.f32 %v2171_v35, %v2109_v15  ;;  %v2181_v15 = vpop.permute.xlu0 %2180 }
 0x2d1   :  { %v2085_v8 = vadd.f32 %v2072_v55, %v14207_v38  ;;  %v2110_v50 = vmax.f32 %v2084_v19, %v2097_v43 }
 0x2d2   :  { %10990 = vmatmul.mubr.msk.f32.gmra.mrb[108].mxu1 %vm552_vm5, %v2198_v34  ;;  %v15704_v34 = vld [vmem:[#allocation33_spill] sm:$0xff] }
 0x2d3   :  { %10992 = vmatprep.mubr.msk.f32.mxu1 %vm12147_vm3, %v15607_v32  ;;  %v2073_v52 = vmul.f32 %v15704_v34, %v14204_v63  ;;  %v2098_v23 = vmul.f32 0.01, %v2085_v8  ;;  %v2202_v26 = vmul.f32 %v2176_v42, %v2110_v50  ;;  %v2186_v50 = vpop.permute.xlu1 %2185 }
 0x2d5   :  { %v2086_v17 = vadd.f32 %v2073_v52, %v14207_v38  ;;  %v2111_v20 = vmax.f32 %v2085_v8, %v2098_v23 }
 0x2d6   :  { %10993 = vmatmul.mubr.msk.f32.gmra.mrb[110].mxu1 %vm552_vm5, %v2199_v25  ;;  %v15705_v25 = vld [vmem:[#allocation34_spill] sm:$0xff] }
 0x2d7   :  { %10995 = vmatprep.mubr.msk.f32.mxu1 %vm12147_vm3, %v15607_v32  ;;  %v2074_v13 = vmul.f32 %v15705_v25, %v14204_v63  ;;  %v2099_v55 = vmul.f32 0.01, %v2086_v17  ;;  %v2203_v43 = vmul.f32 %v2181_v15, %v2111_v20  ;;  %v2191_v20 = vpop.permute.xlu0 %2190 }
 0x2d9   :  { %v2087_v24 = vadd.f32 %v2074_v13, %v14207_v38  ;;  %v2112_v34 = vmax.f32 %v2086_v17, %v2099_v55 }
 0x2da   :  { %10996 = vmatmul.mubr.msk.f32.gmra.mrb[112].mxu1 %vm552_vm5, %v2200_v28  ;;  %v15706_v28 = vld [vmem:[#allocation35_spill] sm:$0xff] }
 0x2db   :  { %10998 = vmatprep.mubr.msk.f32.mxu1 %vm12147_vm3, %v15607_v32  ;;  %v2576_v19 = vmul.f32 %v15706_v28, %v14204_v63  ;;  %v2100_v52 = vmul.f32 0.01, %v2087_v24  ;;  %v2204_v23 = vmul.f32 %v2186_v50, %v2112_v34  ;;  %v2645_v34 = vpop.permute.xlu1 %2644 }
 0x2dd   :  { %v2589_v35 = vadd.f32 %v2576_v19, %v14207_v38  ;;  %v2113_v25 = vmax.f32 %v2087_v24, %v2100_v52 }
 0x2de   :  { %10999 = vmatmul.mubr.msk.f32.gmra.mrb[114].mxu1 %vm552_vm5, %v2201_v44  ;;  %v15707_v44 = vld [vmem:[#allocation37_spill] sm:$0xff] }
 0x2df   :  { %11001 = vmatprep.mubr.msk.f32.mxu1 %vm12147_vm3, %v15607_v32  ;;  %v2577_v8 = vmul.f32 %v15707_v44, %v14204_v63  ;;  %v2602_v13 = vmul.f32 0.01, %v2589_v35  ;;  %v2205_v55 = vmul.f32 %v2191_v20, %v2113_v25 }
 0x2e1   :  { %v2590_v42 = vadd.f32 %v2577_v8, %v14207_v38  ;;  %v2615_v28 = vmax.f32 %v2589_v35, %v2602_v13  ;;  %v9818_v35 = vld [vmem:[%s15580_s6 + $0x8] sm:$0x3]  ;;  %v2650_v13 = vpop.permute.xlu0 %2649 }
 0x2e2   :  { %11002 = vmatmul.mubr.msk.f32.gmra.mrb[116].mxu1 %vm552_vm5, %v2202_v26  ;;  %v15708_v26 = vld [vmem:[#allocation38_spill] sm:$0xff] }
 0x2e3   :  { %11004 = vmatprep.mubr.msk.f32.mxu1 %vm12147_vm3, %v15607_v32  ;;  %v2578_v17 = vmul.f32 %v15708_v26, %v14204_v63  ;;  %v2603_v19 = vmul.f32 0.01, %v2590_v42  ;;  %v2707_v52 = vmul.f32 %v2645_v34, %v2615_v28 }
 0x2e5   :  { %v2591_v15 = vadd.f32 %v2578_v17, %v14207_v38  ;;  %v2616_v44 = vmax.f32 %v2590_v42, %v2603_v19  ;;  %v2655_v19 = vpop.permute.xlu1 %2654 }
 0x2e6   :  { %11005 = vmatmul.mubr.msk.f32.gmra.mrb[118].mxu1 %vm552_vm5, %v2203_v43  ;;  %v15709_v43 = vld [vmem:[#allocation40_spill] sm:$0xff] }
 0x2e7   :  { %11007 = vmatprep.mubr.msk.f32.mxu1 %vm12147_vm3, %v15607_v32  ;;  %v2579_v24 = vmul.f32 %v15709_v43, %v14204_v63  ;;  %v2604_v8 = vmul.f32 0.01, %v2591_v15  ;;  %v2708_v26 = vmul.f32 %v2650_v13, %v2616_v44 }
 0x2e9   :  { %v2592_v50 = vadd.f32 %v2579_v24, %v14207_v38  ;;  %v2617_v42 = vmax.f32 %v2591_v15, %v2604_v8  ;;  %v15712_v15 = vld [vmem:[#allocation45_spill] sm:$0xff]  ;;  %v2660_v8 = vpop.permute.xlu0 %2659 }
 0x2ea   :  { %11008 = vmatmul.mubr.msk.f32.gmra.mrb[120].mxu1 %vm552_vm5, %v2204_v23  ;;  %v15710_v23 = vld [vmem:[#allocation41_spill] sm:$0xff]  ;;  %v2582_v44 = vmul.f32 %v15712_v15, %v14204_v63 }
 0x2eb   :  { %11010 = vmatprep.mubr.msk.f32.mxu1 %vm12147_vm3, %v15607_v32  ;;  %v2580_v25 = vmul.f32 %v15710_v23, %v14204_v63  ;;  %v2605_v17 = vmul.f32 0.01, %v2592_v50  ;;  %v2709_v43 = vmul.f32 %v2655_v19, %v2617_v42  ;;  %v2665_v42 = vpop.permute.xlu1 %2664 }
 0x2ec   :  { %v2595_v13 = vadd.f32 %v2582_v44, %v14207_v38 }
 0x2ed   :  { %v2593_v20 = vadd.f32 %v2580_v25, %v14207_v38  ;;  %v2618_v24 = vmax.f32 %v2592_v50, %v2605_v17 }
 0x2ee   :  { %11011 = vmatmul.mubr.msk.f32.gmra.mrb[122].mxu1 %vm552_vm5, %v2205_v55  ;;  %v15711_v55 = vld [vmem:[#allocation44_spill] sm:$0xff] }
 0x2ef   :  { %11058 = vmatprep.mubr.msk.f32.mxu1 %vm12147_vm3, %v15607_v32  ;;  %v2581_v28 = vmul.f32 %v15711_v55, %v14204_v63  ;;  %v2606_v34 = vmul.f32 0.01, %v2593_v20 }
 0x2f1   :  { %v2619_v23 = vmax.f32 %v2593_v20, %v2606_v34 }
 0x2f2   :  { %11059 = vmatmul.mubr.msk.f32.vlgmr.msra.gmra.mrb[98].mxu1 %vm552_vm5, %v2707_v52  ;;  %v2594_v52 = vadd.f32 %v2581_v28, %v14207_v38  ;;  %v2608_v28 = vmul.f32 0.01, %v2595_v13 }
 0x2f3   :  { %11141 = vmatpush3.msk.msra.mxu1 %vm1573_vm6, %v9818_v35  ;;  %11061 = vmatprep.mubr.msk.f32.mxu1 %vm12147_vm3, %v15607_v32  ;;  %v2710_v35 = vmul.f32 %v2660_v8, %v2618_v24  ;;  %v2711_v17 = vmul.f32 %v2665_v42, %v2619_v23  ;;  %v2670_v24 = vpop.permute.xlu0 %2669 }
 0x2f4   :  { %11224 = vmatprep.subr.mxu1 %v15607_v32  ;;  %v2607_v25 = vmul.f32 0.01, %v2594_v52  ;;  %v2621_v15 = vmax.f32 %v2595_v13, %v2608_v28  ;;  %v2586_v13 = vmul.f32 %v13857_v4, %v14204_v63 }
 0x2f6   :  { %11062 = vmatmul.mubr.msk.f32.gmra.mrb[100].mxu1 %vm552_vm5, %v2708_v26  ;;  %v15713_v26 = vld [vmem:[#allocation47_spill] sm:$0xff]  ;;  %v2620_v55 = vmax.f32 %v2594_v52, %v2607_v25  ;;  %v2585_v52 = vmul.f32 %v13841_v36, %v14204_v63  ;;  %v2599_v28 = vadd.f32 %v2586_v13, %v14207_v38 }
 0x2f7   :  { %11064 = vmatprep.mubr.msk.f32.mxu1 %vm12147_vm3, %v15607_v32  ;;  %v2583_v50 = vmul.f32 %v15713_v26, %v14204_v63  ;;  %v2680_v42 = vpop.permute.xlu0 %2679 }
 0x2f8   :  { %v2712_v34 = vmul.f32 %v2670_v24, %v2620_v55  ;;  %v2612_v24 = vmul.f32 0.01, %v2599_v28 }
 0x2f9   :  { %v2596_v19 = vadd.f32 %v2583_v50, %v14207_v38  ;;  %v2598_v50 = vadd.f32 %v2585_v52, %v14207_v38 }
 0x2fa   :  { %11065 = vmatmul.mubr.msk.f32.gmra.mrb[102].mxu1 %vm552_vm5, %v2709_v43  ;;  %v15714_v43 = vld [vmem:[#allocation49_spill] sm:$0xff] }
 0x2fb   :  { %11067 = vmatprep.mubr.msk.f32.mxu1 %vm12147_vm3, %v15607_v32  ;;  %v2584_v20 = vmul.f32 %v15714_v43, %v14204_v63  ;;  %v2609_v44 = vmul.f32 0.01, %v2596_v19  ;;  %v2611_v55 = vmul.f32 0.01, %v2598_v50 }
 0x2fd   :  { %v2597_v8 = vadd.f32 %v2584_v20, %v14207_v38  ;;  %v2622_v25 = vmax.f32 %v2596_v19, %v2609_v44  ;;  %v2587_v19 = vmul.f32 %v13873_v10, %v14204_v63  ;;  %v2624_v20 = vmax.f32 %v2598_v50, %v2611_v55  ;;  %v2690_v44 = vpop.permute.xlu0 %2689 }
 0x2fe   :  { %11068 = vmatmul.mubr.msk.f32.gmra.mrb[104].mxu1 %vm552_vm5, %v2710_v35  ;;  %v2675_v35 = vpop.permute.xlu1 %2674 }
 0x2ff   :  { %11070 = vmatprep.mubr.msk.f32.mxu1 %vm12147_vm3, %v15607_v32  ;;  %v2713_v23 = vmul.f32 %v2675_v35, %v2621_v15  ;;  %v2610_v26 = vmul.f32 0.01, %v2597_v8  ;;  %v2714_v36 = vmul.f32 %v2680_v42, %v2622_v25  ;;  %v2588_v15 = vmul.f32 %v13889_v7, %v14204_v63 }
 0x300   :  { %v2716_v10 = vmul.f32 %v2690_v44, %v2624_v20  ;;  %v3091_v42 = vmul.f32 %v13921_v3, %v14204_v63 }
 0x301   :  { %v2601_v35 = vadd.f32 %v2588_v15, %v14207_v38 }
 0x302   :  { %11071 = vmatmul.mubr.msk.f32.gmra.mrb[106].mxu1 %vm552_vm5, %v2711_v17  ;;  %v2623_v17 = vmax.f32 %v2597_v8, %v2610_v26  ;;  %v2685_v43 = vpop.permute.xlu1 %2684  ;;  %v2625_v8 = vmax.f32 %v2599_v28, %v2612_v24  ;;  %v3104_v28 = vadd.f32 %v3091_v42, %v14207_v38 }
 0x303   :  { %11073 = vmatprep.mubr.msk.f32.mxu1 %vm12147_vm3, %v15607_v32  ;;  %v2614_v50 = vmul.f32 0.01, %v2601_v35 }
 0x304   :  { %v2715_v4 = vmul.f32 %v2685_v43, %v2623_v17  ;;  %v3117_v20 = vmul.f32 0.01, %v3104_v28 }
 0x305   :  { %v2627_v17 = vmax.f32 %v2601_v35, %v2614_v50  ;;  %v3094_v35 = vmul.f32 %v13967_v60, %v14204_v63  ;;  %v3095_v50 = vmul.f32 %v13983_v37, %v14204_v63 }
 0x306   :  { %11074 = vmatmul.mubr.msk.f32.gmra.mrb[108].mxu1 %vm552_vm5, %v2712_v34  ;;  %v2600_v34 = vadd.f32 %v2587_v19, %v14207_v38  ;;  %v2695_v25 = vpop.permute.xlu1 %2694  ;;  %v3092_v19 = vmul.f32 %v13935_v6, %v14204_v63  ;;  %v3130_v44 = vmax.f32 %v3104_v28, %v3117_v20 }
 0x307   :  { %11076 = vmatprep.mubr.msk.f32.mxu1 %vm12147_vm3, %v15607_v32  ;;  %v2717_v7 = vmul.f32 %v2695_v25, %v2625_v8 }
 0x308   :  { %v2613_v52 = vmul.f32 0.01, %v2600_v34  ;;  %v3105_v24 = vadd.f32 %v3092_v19, %v14207_v38 }
 0x30a   :  { %11077 = vmatmul.mubr.msk.f32.gmra.mrb[110].mxu1 %vm552_vm5, %v2713_v23  ;;  %v3090_v23 = vmul.f32 %v13903_v56, %v14204_v63  ;;  %v2626_v26 = vmax.f32 %v2600_v34, %v2613_v52  ;;  %v2705_v43 = vpop.permute.xlu1 %2704  ;;  %v3093_v34 = vmul.f32 %v13951_v0, %v14204_v63  ;;  %v9873_v52 = vld [vmem:[%s15580_s6 + $0xa] sm:$0x3] }
 0x30b   :  { %11079 = vmatprep.mubr.msk.f32.mxu1 %vm12147_vm3, %v15607_v32  ;;  %v2719_v3 = vmul.f32 %v2705_v43, %v2627_v17  ;;  %v3096_v17 = vmul.f32 %v13999_v53, %v14204_v63 }
 0x30c   :  { %v3103_v13 = vadd.f32 %v3090_v23, %v14207_v38  ;;  %v3106_v8 = vadd.f32 %v3093_v34, %v14207_v38 }
 0x30d   :  { %v3109_v43 = vadd.f32 %v3096_v17, %v14207_v38 }
 0x30e   :  { %11080 = vmatmul.mubr.msk.f32.gmra.mrb[112].mxu1 %vm552_vm5, %v2714_v36  ;;  %v2700_v36 = vpop.permute.xlu0 %2699  ;;  %v3116_v55 = vmul.f32 0.01, %v3103_v13  ;;  %v3164_v0 = vpop.permute.xlu1 %3163 }
 0x30f   :  { %11082 = vmatprep.mubr.msk.f32.mxu1 %vm12147_vm3, %v15607_v32  ;;  %v2718_v56 = vmul.f32 %v2700_v36, %v2626_v26  ;;  %v3222_v23 = vmul.f32 %v3164_v0, %v3130_v44  ;;  %v3107_v26 = vadd.f32 %v3094_v35, %v14207_v38 }
 0x311   :  { %v3120_v36 = vmul.f32 0.01, %v3107_v26 }
 0x312   :  { %11083 = vmatmul.mubr.msk.f32.gmra.mrb[114].mxu1 %vm552_vm5, %v2715_v4  ;;  %v3129_v4 = vmax.f32 %v3103_v13, %v3116_v55  ;;  %v3159_v15 = vpop.permute.xlu0 %3158  ;;  %v3174_v55 = vpop.permute.xlu1 %3173 }
 0x313   :  { %11085 = vmatprep.mubr.msk.f32.mxu1 %vm12147_vm3, %v15607_v32  ;;  %v3133_v28 = vmax.f32 %v3107_v26, %v3120_v36 }
 0x314   :  { %v3221_v6 = vmul.f32 %v3159_v15, %v3129_v4  ;;  %v3098_v15 = vmul.f32 %v14036_v58, %v14204_v63 }
 0x316   :  { %11086 = vmatmul.mubr.msk.f32.gmra.mrb[116].mxu1 %vm552_vm5, %v2716_v10  ;;  %v3118_v10 = vmul.f32 0.01, %v3105_v24  ;;  %v3169_v60 = vpop.permute.xlu0 %3168 }
 0x317   :  { %11088 = vmatprep.mubr.msk.f32.mxu1 %vm12147_vm3, %v15607_v32 }
 0x318   :  { %v3131_v25 = vmax.f32 %v3105_v24, %v3118_v10  ;;  %v3122_v24 = vmul.f32 0.01, %v3109_v43 }
 0x31a   :  { %11089 = vmatmul.mubr.msk.f32.gmra.mrb[118].mxu1 %vm552_vm5, %v2717_v7  ;;  %v3119_v7 = vmul.f32 0.01, %v3106_v8  ;;  %v3223_v13 = vmul.f32 %v3169_v60, %v3131_v25  ;;  %v3179_v4 = vpop.permute.xlu0 %3178  ;;  %v3135_v44 = vmax.f32 %v3109_v43, %v3122_v24 }
 0x31b   :  { %11091 = vmatprep.mubr.msk.f32.mxu1 %vm12147_vm3, %v15607_v32  ;;  %v3225_v53 = vmul.f32 %v3179_v4, %v3133_v28  ;;  %v3604_v4 = vmul.f32 %v14105_v30, %v14204_v63 }
 0x31c   :  { %v3132_v42 = vmax.f32 %v3106_v8, %v3119_v7  ;;  %v3111_v8 = vadd.f32 %v3098_v15, %v14207_v38  ;;  %v3100_v7 = vmul.f32 %v14068_v59, %v14204_v63  ;;  %v3605_v15 = vmul.f32 %v14115_v40, %v14204_v63 }
 0x31e   :  { %11092 = vmatmul.mubr.msk.f32.gmra.mrb[120].mxu1 %vm552_vm5, %v2718_v56  ;;  %v3108_v56 = vadd.f32 %v3095_v50, %v14207_v38  ;;  %v3224_v37 = vmul.f32 %v3174_v55, %v3132_v42  ;;  %v3189_v35 = vpop.permute.xlu0 %3188  ;;  %v3101_v42 = vmul.f32 %v14082_v54, %v14204_v63 }
 0x31f   :  { %11094 = vmatprep.mubr.msk.f32.mxu1 %vm12147_vm3, %v15607_v32  ;;  %v3227_v58 = vmul.f32 %v3189_v35, %v3135_v44 }
 0x320   :  { %v3121_v19 = vmul.f32 0.01, %v3108_v56  ;;  %v3114_v55 = vadd.f32 %v3101_v42, %v14207_v38 }
 0x322   :  { %11095 = vmatmul.mubr.msk.f32.gmra.mrb[122].mxu1 %vm552_vm5, %v2719_v3  ;;  %v3097_v3 = vmul.f32 %v14019_v27, %v14204_v63  ;;  %v3134_v20 = vmax.f32 %v3108_v56, %v3121_v19  ;;  %v3199_v36 = vpop.permute.xlu0 %3198  ;;  %v3127_v43 = vmul.f32 0.01, %v3114_v55 }
 0x323   :  { %11142 = vmatprep.mubr.msk.f32.mxu1 %vm12147_vm3, %v15607_v32 }
 0x324   :  { %v3110_v34 = vadd.f32 %v3097_v3, %v14207_v38 }
 0x326   :  { %11143 = vmatmul.mubr.msk.f32.vlgmr.msra.gmra.mrb[98].mxu1 %vm552_vm5, %v3221_v6  ;;  %v3184_v6 = vpop.permute.xlu1 %3183  ;;  %v3123_v10 = vmul.f32 0.01, %v3110_v34 }
 0x327   :  { %11225 = vmatpush3.msk.msra.mxu1 %vm1573_vm6, %v9873_v52  ;;  %11145 = vmatprep.mubr.msk.f32.mxu1 %vm12147_vm3, %v15607_v32  ;;  %v3226_v27 = vmul.f32 %v3184_v6, %v3134_v20  ;;  %v3099_v52 = vmul.f32 %v14050_v21, %v14204_v63  ;;  %v3140_v20 = vmax.f32 %v3114_v55, %v3127_v43 }
 0x328   :  { %11308 = vmatprep.subr.mxu1 %v15607_v32  ;;  %v3136_v0 = vmax.f32 %v3110_v34, %v3123_v10  ;;  %v3617_v34 = vadd.f32 %v3604_v4, %v14207_v38  ;;  %v3618_v10 = vadd.f32 %v3605_v15, %v14207_v38  ;;  %v3610_v43 = vmul.f32 %v14150_v16, %v14204_v63 }
 0x329   :  { %v3112_v25 = vadd.f32 %v3099_v52, %v14207_v38 }
 0x32a   :  { %11146 = vmatmul.mubr.msk.f32.gmra.mrb[100].mxu1 %vm552_vm5, %v3222_v23  ;;  %v3124_v23 = vmul.f32 0.01, %v3111_v8  ;;  %v3194_v26 = vpop.permute.xlu1 %3193  ;;  %v3630_v44 = vmul.f32 0.01, %v3617_v34  ;;  %v3623_v4 = vadd.f32 %v3610_v43, %v14207_v38 }
 0x32b   :  { %11148 = vmatprep.mubr.msk.f32.mxu1 %vm12147_vm3, %v15607_v32  ;;  %v3228_v21 = vmul.f32 %v3194_v26, %v3136_v0  ;;  %v3125_v60 = vmul.f32 0.01, %v3112_v25 }
 0x32c   :  { %v3137_v50 = vmax.f32 %v3111_v8, %v3124_v23  ;;  %v3606_v8 = vmul.f32 %v14125_v29, %v14204_v63  ;;  %v3643_v35 = vmax.f32 %v3617_v34, %v3630_v44  ;;  %v3607_v23 = vmul.f32 %v14135_v9, %v14204_v63 }
 0x32d   :  { %v3138_v56 = vmax.f32 %v3112_v25, %v3125_v60  ;;  %v15715_v60 = vld [vmem:[#allocation51_spill] sm:$0xff]  ;;  %v3636_v15 = vmul.f32 0.01, %v3623_v4 }
 0x32e   :  { %11149 = vmatmul.mubr.msk.f32.gmra.mrb[102].mxu1 %vm552_vm5, %v3223_v13  ;;  %v3113_v13 = vadd.f32 %v3100_v7, %v14207_v38  ;;  %v3229_v59 = vmul.f32 %v3199_v36, %v3137_v50  ;;  %v3204_v28 = vpop.permute.xlu1 %3203  ;;  %v3619_v0 = vadd.f32 %v3606_v8, %v14207_v38  ;;  %v9928_v50 = vld [vmem:[%s15580_s6 + $0xc] sm:$0x3] }
 0x32f   :  { %11151 = vmatprep.mubr.msk.f32.mxu1 %vm12147_vm3, %v15607_v32  ;;  %v3230_v54 = vmul.f32 %v3204_v28, %v3138_v56  ;;  %v3649_v8 = vmax.f32 %v3623_v4, %v3636_v15 }
 0x330   :  { %v3126_v17 = vmul.f32 0.01, %v3113_v13  ;;  %v3632_v26 = vmul.f32 0.01, %v3619_v0 }
 0x332   :  { %11152 = vmatmul.mubr.msk.f32.gmra.mrb[104].mxu1 %vm552_vm5, %v3224_v37  ;;  %v3102_v37 = vmul.f32 %v14095_v1, %v14204_v63  ;;  %v3139_v19 = vmax.f32 %v3113_v13, %v3126_v17  ;;  %v3214_v6 = vpop.permute.xlu1 %3213  ;;  %v3608_v13 = vmul.f32 %v15715_v60, %v14204_v63  ;;  %v3645_v36 = vmax.f32 %v3619_v0, %v3632_v26 }
 0x333   :  { %11154 = vmatprep.mubr.msk.f32.mxu1 %vm12147_vm3, %v15607_v32  ;;  %v3232_v30 = vmul.f32 %v3214_v6, %v3140_v20  ;;  %v3609_v17 = vmul.f32 %v14147_v47, %v14204_v63  ;;  %v15716_v20 = vld [vmem:[#allocation52_spill] sm:$0xff] }
 0x334   :  { %v3115_v3 = vadd.f32 %v3102_v37, %v14207_v38  ;;  %v3621_v56 = vadd.f32 %v3608_v13, %v14207_v38  ;;  %v15720_v13 = vld [vmem:[#allocation56_spill] sm:$0xff] }
 0x336   :  { %11155 = vmatmul.mubr.msk.f32.gmra.mrb[106].mxu1 %vm552_vm5, %v3225_v53  ;;  %v3209_v53 = vpop.permute.xlu0 %3208  ;;  %v3128_v24 = vmul.f32 0.01, %v3115_v3  ;;  %v3673_v25 = vpop.permute.xlu1 %3672 }
 0x337   :  { %11157 = vmatprep.mubr.msk.f32.mxu1 %vm12147_vm3, %v15607_v32  ;;  %v3231_v1 = vmul.f32 %v3209_v53, %v3139_v19  ;;  %v3735_v29 = vmul.f32 %v3673_v25, %v3643_v35  ;;  %v3622_v19 = vadd.f32 %v3609_v17, %v14207_v38 }
 0x33a   :  { %11158 = vmatmul.mubr.msk.f32.gmra.mrb[108].mxu1 %vm552_vm5, %v3226_v27  ;;  %v3141_v27 = vmax.f32 %v3115_v3, %v3128_v24  ;;  %v3219_v52 = vpop.permute.xlu0 %3218  ;;  %v3683_v55 = vpop.permute.xlu1 %3682  ;;  %v3611_v24 = vmul.f32 %v15716_v20, %v14204_v63  ;;  %v15722_v20 = vld [vmem:[#allocation58_spill] sm:$0xff] }
 0x33b   :  { %11160 = vmatprep.mubr.msk.f32.mxu1 %vm12147_vm3, %v15607_v32  ;;  %v3737_v37 = vmul.f32 %v3683_v55, %v3645_v36  ;;  %v15721_v55 = vld [vmem:[#allocation57_spill] sm:$0xff] }
 0x33c   :  { %v3233_v40 = vmul.f32 %v3219_v52, %v3141_v27  ;;  %v15717_v27 = vld [vmem:[#allocation53_spill] sm:$0xff] }
 0x33d   :  { %v3612_v44 = vmul.f32 %v15717_v27, %v14204_v63  ;;  %v15723_v27 = vld [vmem:[#allocation59_spill] sm:$0xff] }
 0x33e   :  { %11161 = vmatmul.mubr.msk.f32.gmra.mrb[110].mxu1 %vm552_vm5, %v3227_v58  ;;  %v3631_v58 = vmul.f32 0.01, %v3618_v10  ;;  %v3678_v9 = vpop.permute.xlu0 %3677  ;;  %v3693_v34 = vpop.permute.xlu1 %3692 }
 0x33f   :  { %11163 = vmatprep.mubr.msk.f32.mxu1 %vm12147_vm3, %v15607_v32  ;;  %v3625_v35 = vadd.f32 %v3612_v44, %v14207_v38  ;;  %v4119_v44 = vmul.f32 %v15723_v27, %v14204_v63 }
 0x340   :  { %v3644_v7 = vmax.f32 %v3618_v10, %v3631_v58  ;;  %v15718_v58 = vld [vmem:[#allocation54_spill] sm:$0xff] }
 0x341   :  { %v3613_v0 = vmul.f32 %v15718_v58, %v14204_v63  ;;  %v15724_v58 = vld [vmem:[#allocation60_spill] sm:$0xff] }
 0x342   :  { %11164 = vmatmul.mubr.msk.f32.gmra.mrb[112].mxu1 %vm552_vm5, %v3228_v21  ;;  %v3620_v21 = vadd.f32 %v3607_v23, %v14207_v38  ;;  %v3736_v42 = vmul.f32 %v3678_v9, %v3644_v7  ;;  %v3688_v3 = vpop.permute.xlu0 %3687  ;;  %v3703_v23 = vpop.permute.xlu1 %3702  ;;  %v3638_v7 = vmul.f32 0.01, %v3625_v35  ;;  %v3615_v9 = vmul.f32 %v15720_v13, %v14204_v63 }
 0x343   :  { %11166 = vmatprep.mubr.msk.f32.mxu1 %vm12147_vm3, %v15607_v32  ;;  %v3741_v25 = vmul.f32 %v3703_v23, %v3649_v8  ;;  %v3626_v26 = vadd.f32 %v3613_v0, %v14207_v38  ;;  %v4120_v0 = vmul.f32 %v15724_v58, %v14204_v63 }
 0x344   :  { %v3651_v36 = vmax.f32 %v3625_v35, %v3638_v7  ;;  %v3628_v43 = vadd.f32 %v3615_v9, %v14207_v38  ;;  %v4132_v35 = vadd.f32 %v4119_v44, %v14207_v38 }
 0x346   :  { %11167 = vmatmul.mubr.msk.f32.gmra.mrb[114].mxu1 %vm552_vm5, %v3229_v59  ;;  %v3633_v59 = vmul.f32 0.01, %v3620_v21  ;;  %v3698_v10 = vpop.permute.xlu0 %3697  ;;  %v3713_v17 = vpop.permute.xlu1 %3712 }
 0x347   :  { %11169 = vmatprep.mubr.msk.f32.mxu1 %vm12147_vm3, %v15607_v32 }
 0x348   :  { %v3646_v28 = vmax.f32 %v3620_v21, %v3633_v59  ;;  %v15719_v21 = vld [vmem:[#allocation55_spill] sm:$0xff]  ;;  %v3639_v59 = vmul.f32 0.01, %v3626_v26 }
 0x34a   :  { %11170 = vmatmul.mubr.msk.f32.gmra.mrb[116].mxu1 %vm552_vm5, %v3230_v54  ;;  %v3634_v54 = vmul.f32 0.01, %v3621_v56  ;;  %v3738_v47 = vmul.f32 %v3688_v3, %v3646_v28  ;;  %v3708_v60 = vpop.permute.xlu0 %3707  ;;  %v3743_v28 = vmul.f32 %v3713_v17, %v3651_v36  ;;  %v9983_v36 = vld [vmem:[%s15580_s6 + $0xe] sm:$0x3] }
 0x34b   :  { %11172 = vmatprep.mubr.msk.f32.mxu1 %vm12147_vm3, %v15607_v32 }
 0x34c   :  { %v3647_v53 = vmax.f32 %v3621_v56, %v3634_v54  ;;  %v3652_v54 = vmax.f32 %v3626_v26, %v3639_v59  ;;  %v4145_v26 = vmul.f32 0.01, %v4132_v35 }
 0x34e   :  { %11173 = vmatmul.mubr.msk.f32.gmra.mrb[118].mxu1 %vm552_vm5, %v3231_v1  ;;  %v3635_v1 = vmul.f32 0.01, %v3622_v19  ;;  %v3739_v16 = vmul.f32 %v3693_v34, %v3647_v53  ;;  %v3718_v3 = vpop.permute.xlu0 %3717  ;;  %v3723_v34 = vpop.permute.xlu1 %3722  ;;  %v4158_v9 = vmax.f32 %v4132_v35, %v4145_v26 }
 0x34f   :  { %11175 = vmatprep.mubr.msk.f32.mxu1 %vm12147_vm3, %v15607_v32 }
 0x350   :  { %v3648_v6 = vmax.f32 %v3622_v19, %v3635_v1  ;;  %v3641_v1 = vmul.f32 0.01, %v3628_v43 }
 0x352   :  { %11176 = vmatmul.mubr.msk.f32.gmra.mrb[120].mxu1 %vm552_vm5, %v3232_v30  ;;  %v3624_v30 = vadd.f32 %v3611_v24, %v14207_v38  ;;  %v3740_v52 = vmul.f32 %v3698_v10, %v3648_v6  ;;  %v4118_v24 = vmul.f32 %v15722_v20, %v14204_v63  ;;  %v3654_v6 = vmax.f32 %v3628_v43, %v3641_v1  ;;  %v3728_v10 = vpop.permute.xlu0 %3727  ;;  %v3733_v23 = vpop.permute.xlu1 %3732  ;;  %v15726_v1 = vld [vmem:[#allocation62_spill] sm:$0xff] }
 0x353   :  { %11178 = vmatprep.mubr.msk.f32.mxu1 %vm12147_vm3, %v15607_v32  ;;  %v4125_v20 = vmul.f32 %v15726_v1, %v14204_v63 }
 0x356   :  { %11179 = vmatmul.mubr.msk.f32.gmra.mrb[122].mxu1 %vm552_vm5, %v3233_v40  ;;  %v3637_v40 = vmul.f32 0.01, %v3624_v30  ;;  %v4192_v59 = vpop.permute.xlu1 %4191 }
 0x357   :  { %11226 = vmatprep.mubr.msk.f32.mxu1 %vm12147_vm3, %v15607_v32 }
 0x35a   :  { %11227 = vmatmul.mubr.msk.f32.vlgmr.msra.gmra.mrb[98].mxu1 %vm552_vm5, %v3735_v29  ;;  %v3650_v29 = vmax.f32 %v3624_v30, %v3637_v40  ;;  %v4131_v30 = vadd.f32 %v4118_v24, %v14207_v38 }
 0x35b   :  { %11309 = vmatpush3.msk.msra.mxu1 %vm1573_vm6, %v9928_v50  ;;  %11229 = vmatprep.mubr.msk.f32.mxu1 %vm12147_vm3, %v15607_v32  ;;  %v3614_v50 = vmul.f32 %v15719_v21, %v14204_v63  ;;  %v4133_v21 = vadd.f32 %v4120_v0, %v14207_v38 }
 0x35c   :  { %11392 = vmatprep.subr.mxu1 %v15607_v32  ;;  %v4144_v40 = vmul.f32 0.01, %v4131_v30 }
 0x35d   :  { %v3627_v56 = vadd.f32 %v3614_v50, %v14207_v38  ;;  %v4187_v50 = vpop.permute.xlu0 %4186 }
 0x35e   :  { %11230 = vmatmul.mubr.msk.f32.gmra.mrb[100].mxu1 %vm552_vm5, %v3736_v42  ;;  %v3742_v42 = vmul.f32 %v3708_v60, %v3650_v29  ;;  %v4157_v7 = vmax.f32 %v4131_v30, %v4144_v40 }
 0x35f   :  { %11232 = vmatprep.mubr.msk.f32.mxu1 %vm12147_vm3, %v15607_v32  ;;  %v3640_v19 = vmul.f32 0.01, %v3627_v56 }
 0x360   :  { %v4249_v13 = vmul.f32 %v4187_v50, %v4157_v7 }
 0x361   :  { %v3653_v53 = vmax.f32 %v3627_v56, %v3640_v19  ;;  %v15725_v56 = vld [vmem:[#allocation61_spill] sm:$0xff]  ;;  %v4124_v19 = vmul.f32 %v14176_v11, %v14204_v63 }
 0x362   :  { %11233 = vmatmul.mubr.msk.f32.gmra.mrb[102].mxu1 %vm552_vm5, %v3737_v37  ;;  %v3616_v37 = vmul.f32 %v15721_v55, %v14204_v63  ;;  %v4123_v17 = vmul.f32 %v15725_v56, %v14204_v63  ;;  %v4250_v55 = vmul.f32 %v4192_v59, %v4158_v9 }
 0x363   :  { %11235 = vmatprep.mubr.msk.f32.mxu1 %vm12147_vm3, %v15607_v32 }
 0x364   :  { %v3629_v4 = vadd.f32 %v3616_v37, %v14207_v38 }
 0x366   :  { %11236 = vmatmul.mubr.msk.f32.gmra.mrb[104].mxu1 %vm552_vm5, %v3738_v47  ;;  %v3744_v47 = vmul.f32 %v3718_v3, %v3652_v54  ;;  %v3642_v15 = vmul.f32 0.01, %v3629_v4  ;;  %v4197_v54 = vpop.permute.xlu0 %4196 }
 0x367   :  { %11238 = vmatprep.mubr.msk.f32.mxu1 %vm12147_vm3, %v15607_v32 }
 0x368   :  { %v3655_v8 = vmax.f32 %v3629_v4, %v3642_v15  ;;  %v4137_v15 = vadd.f32 %v4124_v19, %v14207_v38  ;;  %v4130_v19 = vmul.f32 %v14191_v22, %v14204_v63 }
 0x36a   :  { %11239 = vmatmul.mubr.msk.f32.gmra.mrb[106].mxu1 %vm552_vm5, %v3739_v16  ;;  %v3745_v16 = vmul.f32 %v3723_v34, %v3653_v53  ;;  %v3747_v29 = vmul.f32 %v3733_v23, %v3655_v8  ;;  %v4202_v53 = vpop.permute.xlu1 %4201  ;;  %v4150_v44 = vmul.f32 0.01, %v4137_v15  ;;  %v15728_v23 = vld [vmem:[#allocation64_spill] sm:$0xff]  ;;  %v4143_v1 = vadd.f32 %v4130_v19, %v14207_v38 }
 0x36b   :  { %11241 = vmatprep.mubr.msk.f32.mxu1 %vm12147_vm3, %v15607_v32 }
 0x36c   :  { %v4163_v58 = vmax.f32 %v4137_v15, %v4150_v44 }
 0x36e   :  { %11242 = vmatmul.mubr.msk.f32.gmra.mrb[108].mxu1 %vm552_vm5, %v3740_v52  ;;  %v3746_v52 = vmul.f32 %v3728_v10, %v3654_v6  ;;  %v4138_v6 = vadd.f32 %v4125_v20, %v14207_v38  ;;  %v15727_v10 = vld [vmem:[#allocation63_spill] sm:$0xff] }
 0x36f   :  { %11244 = vmatprep.mubr.msk.f32.mxu1 %vm12147_vm3, %v15607_v32  ;;  %v4126_v8 = vmul.f32 %v15727_v10, %v14204_v63 }
 0x370   :  { %v4151_v40 = vmul.f32 0.01, %v4138_v6 }
 0x371   :  { %v4139_v0 = vadd.f32 %v4126_v8, %v14207_v38 }
 0x372   :  { %11245 = vmatmul.mubr.msk.f32.gmra.mrb[110].mxu1 %vm552_vm5, %v3741_v25  ;;  %v4121_v25 = vmul.f32 %v14170_v51, %v14204_v63  ;;  %v4122_v51 = vmul.f32 %v14172_v39, %v14204_v63  ;;  %v4164_v7 = vmax.f32 %v4138_v6, %v4151_v40  ;;  %v15732_v6 = vld [vmem:[#allocation69_spill] sm:$0xff] }
 0x373   :  { %11247 = vmatprep.mubr.msk.f32.mxu1 %vm12147_vm3, %v15607_v32 }
 0x374   :  { %v4134_v60 = vadd.f32 %v4121_v25, %v14207_v38  ;;  %v4135_v39 = vadd.f32 %v4122_v51, %v14207_v38  ;;  %v4127_v25 = vmul.f32 %v15728_v23, %v14204_v63  ;;  %v15733_v23 = vld [vmem:[#allocation70_spill] sm:$0xff] }
 0x376   :  { %11248 = vmatmul.mubr.msk.f32.gmra.mrb[112].mxu1 %vm552_vm5, %v3742_v42  ;;  %v4146_v42 = vmul.f32 0.01, %v4133_v21  ;;  %v4148_v4 = vmul.f32 0.01, %v4135_v39  ;;  %v4140_v50 = vadd.f32 %v4127_v25, %v14207_v38  ;;  %v4635_v25 = vmul.f32 %v15733_v23, %v14204_v63 }
 0x377   :  { %11250 = vmatprep.mubr.msk.f32.mxu1 %vm12147_vm3, %v15607_v32 }
 0x378   :  { %v4159_v37 = vmax.f32 %v4133_v21, %v4146_v42  ;;  %v4161_v34 = vmax.f32 %v4135_v39, %v4148_v4  ;;  %v4152_v21 = vmul.f32 0.01, %v4139_v0  ;;  %v15730_v42 = vld [vmem:[#allocation66_spill] sm:$0xff]  ;;  %v4153_v56 = vmul.f32 0.01, %v4140_v50 }
 0x379   :  { %v4129_v51 = vmul.f32 %v15730_v42, %v14204_v63 }
 0x37a   :  { %11251 = vmatmul.mubr.msk.f32.gmra.mrb[114].mxu1 %vm552_vm5, %v3743_v28  ;;  %v4147_v28 = vmul.f32 0.01, %v4134_v60  ;;  %v4251_v43 = vmul.f32 %v4197_v54, %v4159_v37  ;;  %v4165_v59 = vmax.f32 %v4139_v0, %v4152_v21  ;;  %v4166_v39 = vmax.f32 %v4140_v50, %v4153_v56 }
 0x37b   :  { %11253 = vmatprep.mubr.msk.f32.mxu1 %vm12147_vm3, %v15607_v32  ;;  %v4142_v37 = vadd.f32 %v4129_v51, %v14207_v38  ;;  %v4648_v50 = vadd.f32 %v4635_v25, %v14207_v38 }
 0x37c   :  { %v4160_v3 = vmax.f32 %v4134_v60, %v4147_v28  ;;  %v15729_v60 = vld [vmem:[#allocation65_spill] sm:$0xff] }
 0x37e   :  { %11254 = vmatmul.mubr.msk.f32.gmra.mrb[116].mxu1 %vm552_vm5, %v3744_v47  ;;  %v4136_v47 = vadd.f32 %v4123_v17, %v14207_v38  ;;  %v4252_v24 = vmul.f32 %v4202_v53, %v4160_v3  ;;  %v4632_v3 = vmul.f32 %v14194_v48, %v14204_v63  ;;  %v4155_v53 = vmul.f32 0.01, %v4142_v37 }
 0x37f   :  { %11256 = vmatprep.mubr.msk.f32.mxu1 %vm12147_vm3, %v15607_v32  ;;  %v4156_v48 = vmul.f32 0.01, %v4143_v1 }
 0x380   :  { %v4149_v11 = vmul.f32 0.01, %v4136_v47  ;;  %v4645_v15 = vadd.f32 %v4632_v3, %v14207_v38 }
 0x381   :  { %v4169_v44 = vmax.f32 %v4143_v1, %v4156_v48 }
 0x382   :  { %11257 = vmatmul.mubr.msk.f32.gmra.mrb[118].mxu1 %vm552_vm5, %v3745_v16  ;;  %v4207_v16 = vpop.permute.xlu0 %4206  ;;  %v4162_v27 = vmax.f32 %v4136_v47, %v4149_v11  ;;  %v4168_v11 = vmax.f32 %v4142_v37, %v4155_v53  ;;  %v4658_v10 = vmul.f32 0.01, %v4645_v15 }
 0x383   :  { %11259 = vmatprep.mubr.msk.f32.mxu1 %vm12147_vm3, %v15607_v32  ;;  %v4253_v30 = vmul.f32 %v4207_v16, %v4161_v34 }
 0x386   :  { %11260 = vmatmul.mubr.msk.f32.gmra.mrb[120].mxu1 %vm552_vm5, %v3746_v52  ;;  %v4212_v52 = vpop.permute.xlu1 %4211 }
 0x387   :  { %11262 = vmatprep.mubr.msk.f32.mxu1 %vm12147_vm3, %v15607_v32  ;;  %v4254_v35 = vmul.f32 %v4212_v52, %v4162_v27 }
 0x38a   :  { %11263 = vmatmul.mubr.msk.f32.gmra.mrb[122].mxu1 %vm552_vm5, %v3747_v29  ;;  %v4217_v29 = vpop.permute.xlu0 %4216  ;;  %v4222_v9 = vpop.permute.xlu1 %4221 }
 0x38b   :  { %11310 = vmatprep.mubr.msk.f32.mxu1 %vm12147_vm3, %v15607_v32  ;;  %v4255_v26 = vmul.f32 %v4217_v29, %v4163_v58  ;;  %v4671_v58 = vmax.f32 %v4645_v15, %v4658_v10  ;;  %v4643_v10 = vmul.f32 %v14290_v46, %v14204_v63 }
 0x38e   :  { %11311 = vmatmul.mubr.msk.f32.vlgmr.msra.gmra.mrb[98].mxu1 %vm552_vm5, %v4249_v13  ;;  %v4128_v13 = vmul.f32 %v15729_v60, %v14204_v63  ;;  %v4636_v60 = vmul.f32 %v14222_v5, %v14204_v63  ;;  %v4637_v5 = vmul.f32 %v14234_v2, %v14204_v63 }
 0x38f   :  { %11393 = vmatpush3.msk.msra.mxu1 %vm1573_vm6, %v9983_v36  ;;  %11313 = vmatprep.mubr.msk.f32.mxu1 %vm12147_vm3, %v15607_v32  ;;  %v4256_v36 = vmul.f32 %v4222_v9, %v4164_v7 }
 0x390   :  { %11476 = vmatprep.subr.mxu1 %v15607_v32  ;;  %v4141_v17 = vadd.f32 %v4128_v13, %v14207_v38  ;;  %v10038_v13 = vld [vmem:[%s15580_s6 + $0x10] sm:$0x3] }
 0x392   :  { %11314 = vmatmul.mubr.msk.f32.gmra.mrb[100].mxu1 %vm552_vm5, %v4250_v55  ;;  %v4227_v55 = vpop.permute.xlu0 %4226  ;;  %v4154_v54 = vmul.f32 0.01, %v4141_v17 }
 0x393   :  { %11316 = vmatprep.mubr.msk.f32.mxu1 %vm12147_vm3, %v15607_v32  ;;  %v4257_v28 = vmul.f32 %v4227_v55, %v4165_v59  ;;  %v4649_v59 = vadd.f32 %v4636_v60, %v14207_v38 }
 0x394   :  { %v4167_v47 = vmax.f32 %v4141_v17, %v4154_v54  ;;  %v4638_v17 = vmul.f32 %v14245_v31, %v14204_v63  ;;  %v4639_v31 = vmul.f32 %v14254_v12, %v14204_v63  ;;  %v4641_v12 = vmul.f32 %v14272_v49, %v14204_v63 }
 0x395   :  { %v4642_v49 = vmul.f32 %v14281_v57, %v14204_v63 }
 0x396   :  { %11317 = vmatmul.mubr.msk.f32.gmra.mrb[102].mxu1 %vm552_vm5, %v4251_v43  ;;  %v4232_v43 = vpop.permute.xlu1 %4231  ;;  %v4237_v20 = vpop.permute.xlu0 %4236  ;;  %v4651_v19 = vadd.f32 %v4638_v17, %v14207_v38 }
 0x397   :  { %11319 = vmatprep.mubr.msk.f32.mxu1 %vm12147_vm3, %v15607_v32  ;;  %v4258_v4 = vmul.f32 %v4232_v43, %v4166_v39  ;;  %v4259_v34 = vmul.f32 %v4237_v20, %v4167_v47  ;;  %v4650_v39 = vadd.f32 %v4637_v5, %v14207_v38  ;;  %v4640_v47 = vmul.f32 %v14263_v33, %v14204_v63 }
 0x398   :  { %v4664_v20 = vmul.f32 0.01, %v4651_v19 }
 0x399   :  { %v4663_v3 = vmul.f32 0.01, %v4650_v39  ;;  %v4653_v48 = vadd.f32 %v4640_v47, %v14207_v38 }
 0x39a   :  { %11320 = vmatmul.mubr.msk.f32.gmra.mrb[104].mxu1 %vm552_vm5, %v4252_v24  ;;  %v15731_v24 = vld [vmem:[#allocation68_spill] sm:$0xff]  ;;  %v4242_v16 = vpop.permute.xlu1 %4241  ;;  %v4247_v52 = vpop.permute.xlu0 %4246 }
 0x39b   :  { %11322 = vmatprep.mubr.msk.f32.mxu1 %vm12147_vm3, %v15607_v32  ;;  %v4633_v22 = vmul.f32 %v15731_v24, %v14204_v63  ;;  %v4260_v27 = vmul.f32 %v4242_v16, %v4168_v11  ;;  %v4676_v1 = vmax.f32 %v4650_v39, %v4663_v3  ;;  %v4652_v24 = vadd.f32 %v4639_v31, %v14207_v38 }
 0x39c   :  { %v4677_v11 = vmax.f32 %v4651_v19, %v4664_v20  ;;  %v4654_v16 = vadd.f32 %v4641_v12, %v14207_v38  ;;  %v15737_v19 = vld [vmem:[#allocation10_spill] sm:$0xff]  ;;  %v5149_v3 = vmul.f32 %v14335_v18, %v14204_v63  ;;  %v15738_v20 = vld [vmem:[#allocation7_spill] sm:$0xff] }
 0x39d   :  { %v4646_v8 = vadd.f32 %v4633_v22, %v14207_v38  ;;  %v4665_v33 = vmul.f32 0.01, %v4652_v24 }
 0x39e   :  { %11323 = vmatmul.mubr.msk.f32.gmra.mrb[106].mxu1 %vm552_vm5, %v4253_v30  ;;  %v4634_v30 = vmul.f32 %v15732_v6, %v14204_v63  ;;  %v4701_v29 = vpop.permute.xlu1 %4700  ;;  %v4706_v9 = vpop.permute.xlu0 %4705 }
 0x39f   :  { %11325 = vmatprep.mubr.msk.f32.mxu1 %vm12147_vm3, %v15607_v32  ;;  %v4659_v0 = vmul.f32 0.01, %v4646_v8 }
 0x3a0   :  { %v4647_v40 = vadd.f32 %v4634_v30, %v14207_v38  ;;  %v4678_v30 = vmax.f32 %v4652_v24, %v4665_v33  ;;  %v5150_v24 = vmul.f32 %v15738_v20, %v14204_v63 }
 0x3a1   :  { %v4672_v21 = vmax.f32 %v4646_v8, %v4659_v0  ;;  %v15734_v0 = vld [vmem:[#allocation6_spill] sm:$0xff] }
 0x3a2   :  { %11326 = vmatmul.mubr.msk.f32.gmra.mrb[108].mxu1 %vm552_vm5, %v4254_v35  ;;  %v4261_v35 = vmul.f32 %v4247_v52, %v4169_v44  ;;  %v4660_v7 = vmul.f32 0.01, %v4647_v40  ;;  %v4711_v56 = vpop.permute.xlu1 %4710  ;;  %v4716_v54 = vpop.permute.xlu0 %4715  ;;  %v4644_v57 = vmul.f32 %v15734_v0, %v14204_v63  ;;  %v5163_v33 = vadd.f32 %v5150_v24, %v14207_v38 }
 0x3a3   :  { %11328 = vmatprep.mubr.msk.f32.mxu1 %vm12147_vm3, %v15607_v32  ;;  %v4764_v51 = vmul.f32 %v4706_v9, %v4672_v21 }
 0x3a4   :  { %v4673_v42 = vmax.f32 %v4647_v40, %v4660_v7  ;;  %v4667_v40 = vmul.f32 0.01, %v4654_v16 }
 0x3a6   :  { %11329 = vmatmul.mubr.msk.f32.gmra.mrb[110].mxu1 %vm552_vm5, %v4255_v26  ;;  %v4763_v26 = vmul.f32 %v4701_v29, %v4671_v58  ;;  %v4765_v55 = vmul.f32 %v4711_v56, %v4673_v42  ;;  %v4726_v22 = vpop.permute.xlu0 %4725  ;;  %v4680_v25 = vmax.f32 %v4654_v16, %v4667_v40  ;;  %v4656_v29 = vadd.f32 %v4643_v10, %v14207_v38 }
 0x3a7   :  { %11331 = vmatprep.mubr.msk.f32.mxu1 %vm12147_vm3, %v15607_v32 }
 0x3a8   :  { %v4669_v60 = vmul.f32 0.01, %v4656_v29 }
 0x3aa   :  { %11332 = vmatmul.mubr.msk.f32.gmra.mrb[112].mxu1 %vm552_vm5, %v4256_v36  ;;  %v4661_v36 = vmul.f32 0.01, %v4648_v50  ;;  %v4736_v44 = vpop.permute.xlu0 %4735  ;;  %v4682_v5 = vmax.f32 %v4656_v29, %v4669_v60  ;;  %v5155_v60 = vmul.f32 %v14394_v14, %v14204_v63  ;;  %v5156_v14 = vmul.f32 %v14403_v45, %v14204_v63 }
 0x3ab   :  { %11334 = vmatprep.mubr.msk.f32.mxu1 %vm12147_vm3, %v15607_v32  ;;  %v4770_v8 = vmul.f32 %v4736_v44, %v4678_v30 }
 0x3ac   :  { %v4674_v37 = vmax.f32 %v4648_v50, %v4661_v36 }
 0x3ae   :  { %11335 = vmatmul.mubr.msk.f32.gmra.mrb[114].mxu1 %vm552_vm5, %v4257_v28  ;;  %v4662_v28 = vmul.f32 0.01, %v4649_v59  ;;  %v4766_v2 = vmul.f32 %v4716_v54, %v4674_v37  ;;  %v4746_v7 = vpop.permute.xlu0 %4745 }
 0x3af   :  { %11337 = vmatprep.mubr.msk.f32.mxu1 %vm12147_vm3, %v15607_v32  ;;  %v4772_v21 = vmul.f32 %v4746_v7, %v4680_v25 }
 0x3b0   :  { %v4675_v43 = vmax.f32 %v4649_v59, %v4662_v28 }
 0x3b2   :  { %11338 = vmatmul.mubr.msk.f32.gmra.mrb[116].mxu1 %vm552_vm5, %v4258_v4  ;;  %v4721_v4 = vpop.permute.xlu1 %4720 }
 0x3b3   :  { %11340 = vmatprep.mubr.msk.f32.mxu1 %vm12147_vm3, %v15607_v32  ;;  %v4767_v53 = vmul.f32 %v4721_v4, %v4675_v43 }
 0x3b6   :  { %11341 = vmatmul.mubr.msk.f32.gmra.mrb[118].mxu1 %vm552_vm5, %v4259_v34  ;;  %v4768_v34 = vmul.f32 %v4726_v22, %v4676_v1  ;;  %v4731_v15 = vpop.permute.xlu1 %4730 }
 0x3b7   :  { %11343 = vmatprep.mubr.msk.f32.mxu1 %vm12147_vm3, %v15607_v32  ;;  %v4769_v6 = vmul.f32 %v4731_v15, %v4677_v11 }
 0x3ba   :  { %11344 = vmatmul.mubr.msk.f32.gmra.mrb[120].mxu1 %vm552_vm5, %v4260_v27  ;;  %v4666_v27 = vmul.f32 0.01, %v4653_v48  ;;  %v4741_v58 = vpop.permute.xlu1 %4740 }
 0x3bb   :  { %11346 = vmatprep.mubr.msk.f32.mxu1 %vm12147_vm3, %v15607_v32 }
 0x3bc   :  { %v4679_v52 = vmax.f32 %v4653_v48, %v4666_v27 }
 0x3be   :  { %11347 = vmatmul.mubr.msk.f32.gmra.mrb[122].mxu1 %vm552_vm5, %v4261_v35  ;;  %v4655_v35 = vadd.f32 %v4642_v49, %v14207_v38  ;;  %v4771_v23 = vmul.f32 %v4741_v58, %v4679_v52  ;;  %v4751_v42 = vpop.permute.xlu1 %4750  ;;  %v15740_v49 = vld [vmem:[#allocation9_spill] sm:$0xff]  ;;  %v5176_v52 = vmul.f32 0.01, %v5163_v33  ;;  %v5153_v58 = vmul.f32 %v14376_v61, %v14204_v63 }
 0x3bf   :  { %11394 = vmatprep.mubr.msk.f32.mxu1 %vm12147_vm3, %v15607_v32  ;;  %v5152_v44 = vmul.f32 %v15740_v49, %v14204_v63  ;;  %v5154_v61 = vmul.f32 %v14385_v41, %v14204_v63 }
 0x3c0   :  { %v4668_v46 = vmul.f32 0.01, %v4655_v35  ;;  %v5166_v29 = vadd.f32 %v5153_v58, %v14207_v38 }
 0x3c1   :  { %v5165_v25 = vadd.f32 %v5152_v44, %v14207_v38 }
 0x3c2   :  { %11395 = vmatmul.mubr.msk.f32.vlgmr.msra.gmra.mrb[98].mxu1 %vm552_vm5, %v4763_v26  ;;  %v4657_v26 = vadd.f32 %v4644_v57, %v14207_v38  ;;  %v4681_v50 = vmax.f32 %v4655_v35, %v4668_v46  ;;  %v4761_v43 = vpop.permute.xlu1 %4760  ;;  %v5189_v57 = vmax.f32 %v5163_v33, %v5176_v52 }
 0x3c3   :  { %11477 = vmatpush3.msk.msra.mxu1 %vm1573_vm6, %v10038_v13  ;;  %11397 = vmatprep.mubr.msk.f32.mxu1 %vm12147_vm3, %v15607_v32  ;;  %v15735_v13 = vld [vmem:[#allocation8_spill] sm:$0xff] }
 0x3c4   :  { %v5146_v9 = vmul.f32 %v15735_v13, %v14204_v63  ;;  %v4773_v59 = vmul.f32 %v4751_v42, %v4681_v50  ;;  %v4670_v56 = vmul.f32 0.01, %v4657_v26  ;;  %v5179_v42 = vmul.f32 0.01, %v5166_v29 }
 0x3c6   :  { %11398 = vmatmul.mubr.msk.f32.gmra.mrb[100].mxu1 %vm552_vm5, %v4764_v51  ;;  %v15736_v51 = vld [vmem:[#allocation5_spill] sm:$0xff]  ;;  %v5159_v17 = vadd.f32 %v5146_v9, %v14207_v38  ;;  %v4683_v39 = vmax.f32 %v4657_v26, %v4670_v56  ;;  %v5220_v11 = vpop.permute.xlu1 %5219 }
 0x3c7   :  { %11400 = vmatprep.mubr.msk.f32.mxu1 %vm12147_vm3, %v15607_v32  ;;  %v5147_v36 = vmul.f32 %v15736_v51, %v14204_v63  ;;  %v5167_v51 = vadd.f32 %v5154_v61, %v14207_v38 }
 0x3c8   :  { %v5172_v54 = vmul.f32 0.01, %v5159_v17  ;;  %v4775_v31 = vmul.f32 %v4761_v43, %v4683_v39  ;;  %v5169_v39 = vadd.f32 %v5156_v14, %v14207_v38 }
 0x3c9   :  { %v5160_v37 = vadd.f32 %v5147_v36, %v14207_v38  ;;  %v5180_v56 = vmul.f32 0.01, %v5167_v51 }
 0x3ca   :  { %11401 = vmatmul.mubr.msk.f32.gmra.mrb[102].mxu1 %vm552_vm5, %v4765_v55  ;;  %v4756_v55 = vpop.permute.xlu0 %4755  ;;  %v5185_v4 = vmax.f32 %v5159_v17, %v5172_v54  ;;  %v5230_v35 = vpop.permute.xlu1 %5229  ;;  %v5157_v54 = vmul.f32 %v14411_v62, %v14204_v63  ;;  %v5182_v43 = vmul.f32 0.01, %v5169_v39 }
 0x3cb   :  { %11403 = vmatprep.mubr.msk.f32.mxu1 %vm12147_vm3, %v15607_v32  ;;  %v4774_v28 = vmul.f32 %v4756_v55, %v4682_v5  ;;  %v5173_v47 = vmul.f32 0.01, %v5160_v37  ;;  %v5192_v5 = vmax.f32 %v5166_v29, %v5179_v42 }
 0x3cd   :  { %v5186_v12 = vmax.f32 %v5160_v37, %v5173_v47 }
 0x3ce   :  { %11404 = vmatmul.mubr.msk.f32.gmra.mrb[104].mxu1 %vm552_vm5, %v4766_v2  ;;  %v5148_v2 = vmul.f32 %v15737_v19, %v14204_v63  ;;  %v5215_v1 = vpop.permute.xlu0 %5214  ;;  %v5240_v50 = vpop.permute.xlu1 %5239 }
 0x3cf   :  { %11406 = vmatprep.mubr.msk.f32.mxu1 %vm12147_vm3, %v15607_v32  ;;  %v5277_v22 = vmul.f32 %v5215_v1, %v5185_v4  ;;  %v5278_v48 = vmul.f32 %v5220_v11, %v5186_v12 }
 0x3d2   :  { %11407 = vmatmul.mubr.msk.f32.gmra.mrb[106].mxu1 %vm552_vm5, %v4767_v53  ;;  %v5161_v53 = vadd.f32 %v5148_v2, %v14207_v38  ;;  %v5225_v27 = vpop.permute.xlu0 %5224  ;;  %v5250_v17 = vpop.permute.xlu1 %5249 }
 0x3d3   :  { %11409 = vmatprep.mubr.msk.f32.mxu1 %vm12147_vm3, %v15607_v32  ;;  %v5284_v37 = vmul.f32 %v5250_v17, %v5192_v5 }
 0x3d4   :  { %v5174_v18 = vmul.f32 0.01, %v5161_v53 }
 0x3d6   :  { %11410 = vmatmul.mubr.msk.f32.gmra.mrb[108].mxu1 %vm552_vm5, %v4768_v34  ;;  %v5162_v34 = vadd.f32 %v5149_v3, %v14207_v38  ;;  %v5187_v15 = vmax.f32 %v5161_v53, %v5174_v18  ;;  %v5235_v46 = vpop.permute.xlu0 %5234  ;;  %v5170_v3 = vadd.f32 %v5157_v54, %v14207_v38  ;;  %v5260_v47 = vpop.permute.xlu1 %5259  ;;  %v5195_v53 = vmax.f32 %v5169_v39, %v5182_v43 }
 0x3d7   :  { %11412 = vmatprep.mubr.msk.f32.mxu1 %vm12147_vm3, %v15607_v32  ;;  %v5281_v7 = vmul.f32 %v5235_v46, %v5189_v57 }
 0x3d8   :  { %v5175_v16 = vmul.f32 0.01, %v5162_v34  ;;  %v5279_v10 = vmul.f32 %v5225_v27, %v5187_v15  ;;  %v5183_v1 = vmul.f32 0.01, %v5170_v3 }
 0x3da   :  { %11413 = vmatmul.mubr.msk.f32.gmra.mrb[110].mxu1 %vm552_vm5, %v4769_v6  ;;  %v15739_v6 = vld [vmem:[#allocation12_spill] sm:$0xff]  ;;  %v5245_v36 = vpop.permute.xlu0 %5244  ;;  %v5196_v12 = vmax.f32 %v5170_v3, %v5183_v1  ;;  %v5270_v18 = vpop.permute.xlu1 %5269 }
 0x3db   :  { %11415 = vmatprep.mubr.msk.f32.mxu1 %vm12147_vm3, %v15607_v32  ;;  %v5151_v30 = vmul.f32 %v15739_v6, %v14204_v63 }
 0x3dd   :  { %v5164_v40 = vadd.f32 %v5151_v30, %v14207_v38 }
 0x3de   :  { %11416 = vmatmul.mubr.msk.f32.gmra.mrb[112].mxu1 %vm552_vm5, %v4770_v8  ;;  %v5188_v8 = vmax.f32 %v5162_v34, %v5175_v16  ;;  %v5255_v19 = vpop.permute.xlu0 %5254  ;;  %v5288_v34 = vmul.f32 %v5270_v18, %v5196_v12 }
 0x3df   :  { %11418 = vmatprep.mubr.msk.f32.mxu1 %vm12147_vm3, %v15607_v32 }
 0x3e0   :  { %v5280_v0 = vmul.f32 %v5230_v35, %v5188_v8 }
 0x3e2   :  { %11419 = vmatmul.mubr.msk.f32.gmra.mrb[114].mxu1 %vm552_vm5, %v4771_v23  ;;  %v5177_v23 = vmul.f32 0.01, %v5164_v40  ;;  %v5265_v24 = vpop.permute.xlu0 %5264 }
 0x3e3   :  { %11421 = vmatprep.mubr.msk.f32.mxu1 %vm12147_vm3, %v15607_v32 }
 0x3e4   :  { %v5190_v26 = vmax.f32 %v5164_v40, %v5177_v23 }
 0x3e6   :  { %11422 = vmatmul.mubr.msk.f32.gmra.mrb[116].mxu1 %vm552_vm5, %v4772_v21  ;;  %v5178_v21 = vmul.f32 0.01, %v5165_v25  ;;  %v5282_v13 = vmul.f32 %v5240_v50, %v5190_v26 }
 0x3e7   :  { %11424 = vmatprep.mubr.msk.f32.mxu1 %vm12147_vm3, %v15607_v32 }
 0x3e8   :  { %v5191_v9 = vmax.f32 %v5165_v25, %v5178_v21 }
 0x3ea   :  { %11425 = vmatmul.mubr.msk.f32.gmra.mrb[118].mxu1 %vm552_vm5, %v4773_v59  ;;  %v5168_v59 = vadd.f32 %v5155_v60, %v14207_v38  ;;  %v5283_v41 = vmul.f32 %v5245_v36, %v5191_v9 }
 0x3eb   :  { %11427 = vmatprep.mubr.msk.f32.mxu1 %vm12147_vm3, %v15607_v32 }
 0x3ec   :  { %v5181_v55 = vmul.f32 0.01, %v5168_v59 }
 0x3ee   :  { %11428 = vmatmul.mubr.msk.f32.gmra.mrb[120].mxu1 %vm552_vm5, %v4774_v28  ;;  %v5193_v28 = vmax.f32 %v5167_v51, %v5180_v56  ;;  %v5194_v2 = vmax.f32 %v5168_v59, %v5181_v55 }
 0x3ef   :  { %11430 = vmatprep.mubr.msk.f32.mxu1 %vm12147_vm3, %v15607_v32 }
 0x3f0   :  { %v5285_v45 = vmul.f32 %v5255_v19, %v5193_v28  ;;  %v5286_v62 = vmul.f32 %v5260_v47, %v5194_v2 }
 0x3f2   :  { %11431 = vmatmul.mubr.msk.f32.gmra.mrb[122].mxu1 %vm552_vm5, %v4775_v31  ;;  %v15741_v31 = vld [vmem:[#allocation14_spill] sm:$0xff] }
 0x3f3   :  { %11478 = vmatprep.mubr.msk.f32.mxu1 %vm12147_vm3, %v15607_v32  ;;  %v5158_v4 = vmul.f32 %v15741_v31, %v14204_v63 }
 0x3f5   :  { %v5171_v20 = vadd.f32 %v5158_v4, %v14207_v38  ;;  %v5275_v38 = vpop.permute.xlu0 %5274 }
 0x3f6   :  { %11479 = vmatmul.mubr.msk.f32.vlgmr.msra.gmra.mrb[98].mxu1 %vm552_vm5, %v5277_v22  ;;  %v5287_v22 = vmul.f32 %v5265_v24, %v5195_v53 }
 0x3f7   :  { %11481 = vmatprep.mubr.msk.f32.mxu1 %vm12147_vm3, %v15607_v32  ;;  %v5184_v63 = vmul.f32 0.01, %v5171_v20 }
 0x3f9   :  { %v5197_v11 = vmax.f32 %v5171_v20, %v5184_v63 }
 0x3fa   :  { %11482 = vmatmul.mubr.msk.f32.gmra.mrb[100].mxu1 %vm552_vm5, %v5278_v48 }
 0x3fb   :  { %11484 = vmatprep.mubr.msk.f32.mxu1 %vm12147_vm3, %v15607_v32  ;;  %v5289_v33 = vmul.f32 %v5275_v38, %v5197_v11 }
 0x3fe   :  { %11485 = vmatmul.mubr.msk.f32.gmra.mrb[102].mxu1 %vm552_vm5, %v5279_v10  ;;  %v5649_v10 = vld [vmem:[%s15583_s9] sm:$0xf] }
 0x3ff   :  { %11487 = vmatprep.mubr.msk.f32.mxu1 %vm12147_vm3, %v15607_v32  ;;  %11518 = vmatpush3.msk.msra.mxu0 %vm5653_vm8, %v5649_v10 }
 0x400   :  { %11522 = vmatprep.subr.mxu0 %v15607_v32 }
 0x402   :  { %11488 = vmatmul.mubr.msk.f32.gmra.mrb[104].mxu1 %vm552_vm5, %v5280_v0 }
 0x403   :  { %11490 = vmatprep.mubr.msk.f32.mxu1 %vm12147_vm3, %v15607_v32 }
 0x406   :  { %11491 = vmatmul.mubr.msk.f32.gmra.mrb[106].mxu1 %vm552_vm5, %v5281_v7 }
 0x407   :  { %11493 = vmatprep.mubr.msk.f32.mxu1 %vm12147_vm3, %v15607_v32 }
 0x40a   :  { %11494 = vmatmul.mubr.msk.f32.gmra.mrb[108].mxu1 %vm552_vm5, %v5282_v13 }
 0x40b   :  { %11496 = vmatprep.mubr.msk.f32.mxu1 %vm12147_vm3, %v15607_v32 }
 0x40e   :  { %11497 = vmatmul.mubr.msk.f32.gmra.mrb[110].mxu1 %vm552_vm5, %v5283_v41 }
 0x40f   :  { %11499 = vmatprep.mubr.msk.f32.mxu1 %vm12147_vm3, %v15607_v32 }
 0x412   :  { %11500 = vmatmul.mubr.msk.f32.gmra.mrb[112].mxu1 %vm552_vm5, %v5284_v37 }
 0x413   :  { %11502 = vmatprep.mubr.msk.f32.mxu1 %vm12147_vm3, %v15607_v32 }
 0x416   :  { %11503 = vmatmul.mubr.msk.f32.gmra.mrb[114].mxu1 %vm552_vm5, %v5285_v45 }
 0x417   :  { %11505 = vmatprep.mubr.msk.f32.mxu1 %vm12147_vm3, %v15607_v32 }
 0x41a   :  { %11506 = vmatmul.mubr.msk.f32.gmra.mrb[116].mxu1 %vm552_vm5, %v5286_v62 }
 0x41b   :  { %11508 = vmatprep.mubr.msk.f32.mxu1 %vm12147_vm3, %v15607_v32 }
 0x41e   :  { %11509 = vmatmul.mubr.msk.f32.gmra.mrb[118].mxu1 %vm552_vm5, %v5287_v22 }
 0x41f   :  { %11511 = vmatprep.mubr.msk.f32.mxu1 %vm12147_vm3, %v15607_v32 }
 0x422   :  { %11512 = vmatmul.mubr.msk.f32.gmra.mrb[120].mxu1 %vm552_vm5, %v5288_v34 }
 0x423   :  { %11514 = vmatprep.mubr.msk.f32.mxu1 %vm12147_vm3, %v15607_v32 }
 0x426   :  { %11515 = vmatmul.mubr.msk.f32.gmra.mrb[122].mxu1 %vm552_vm5, %v5289_v33 }
 0x4c9   :  { %v15015_v48 = vpop.f32.mrb[98].mxu1 }
 0x4ca   :  { %v11480_v15 = vpop.f32.mrb[99].mxu1  ;;  %v5478_v6 = vsel %vm5477_vm7, %v15015_v48, 0.0 }
 0x4cd   :  { %v15017_v16 = vpop.f32.mrb[100].mxu1 }
 0x4ce   :  { %v5479_v30 = vsel %vm5477_vm7, %v15017_v16, 0.0  ;;  %v11483_v27 = vpop.f32.mrb[101].mxu1 }
 0x4cf   :  { %v5480_v49 = vadd.f32 %v5479_v30, %v5478_v6 }
 0x4d1   :  { %v15023_v44 = vpop.f32.mrb[102].mxu1 }
 0x4d2   :  { %v5481_v8 = vsel %vm5477_vm7, %v15023_v44, 0.0  ;;  %v11486_v52 = vpop.f32.mrb[103].mxu1 }
 0x4d3   :  { %v5482_v40 = vadd.f32 %v5481_v8, %v5480_v49 }
 0x4d5   :  { %v15032_v35 = vpop.f32.mrb[104].mxu1 }
 0x4d6   :  { %v5483_v58 = vsel %vm5477_vm7, %v15032_v35, 0.0  ;;  %v11489_v0 = vpop.f32.mrb[105].mxu1 }
 0x4d7   :  { %v5484_v57 = vadd.f32 %v5483_v58, %v5482_v40 }
 0x4d9   :  { %v15036_v23 = vpop.f32.mrb[106].mxu1 }
 0x4da   :  { %v5485_v25 = vsel %vm5477_vm7, %v15036_v23, 0.0  ;;  %v11492_v46 = vpop.f32.mrb[107].mxu1 }
 0x4db   :  { %v5486_v29 = vadd.f32 %v5485_v25, %v5484_v57 }
 0x4dd   :  { %v15040_v7 = vpop.f32.mrb[108].mxu1 }
 0x4de   :  { %v5487_v26 = vsel %vm5477_vm7, %v15040_v7, 0.0  ;;  %v11495_v21 = vpop.f32.mrb[109].mxu1 }
 0x4df   :  { %v5488_v61 = vadd.f32 %v5487_v26, %v5486_v29 }
 0x4e1   :  { %v15044_v50 = vpop.f32.mrb[110].mxu1 }
 0x4e2   :  { %v5489_v60 = vsel %vm5477_vm7, %v15044_v50, 0.0  ;;  %v11498_v13 = vpop.f32.mrb[111].mxu1 }
 0x4e3   :  { %v5490_v9 = vadd.f32 %v5489_v60, %v5488_v61 }
 0x4e5   :  { %v15048_v42 = vpop.f32.mrb[112].mxu1 }
 0x4e6   :  { %v5491_v51 = vsel %vm5477_vm7, %v15048_v42, 0.0  ;;  %v11501_v36 = vpop.f32.mrb[113].mxu1 }
 0x4e7   :  { %v5492_v59 = vadd.f32 %v5491_v51, %v5490_v9 }
 0x4e9   :  { %v15052_v41 = vpop.f32.mrb[114].mxu1 }
 0x4ea   :  { %v5493_v5 = vsel %vm5477_vm7, %v15052_v41, 0.0  ;;  %v11504_v56 = vpop.f32.mrb[115].mxu1 }
 0x4eb   :  { %v5494_v14 = vadd.f32 %v5493_v5, %v5492_v59 }
 0x4ed   :  { %v15056_v17 = vpop.f32.mrb[116].mxu1 }
 0x4ee   :  { %v5495_v55 = vsel %vm5477_vm7, %v15056_v17, 0.0  ;;  %v11507_v37 = vpop.f32.mrb[117].mxu1 }
 0x4ef   :  { %v5496_v28 = vadd.f32 %v5495_v55, %v5494_v14 }
 0x4f1   :  { %v15060_v39 = vpop.f32.mrb[118].mxu1 }
 0x4f2   :  { %v5497_v54 = vsel %vm5477_vm7, %v15060_v39, 0.0  ;;  %v11510_v19 = vpop.f32.mrb[119].mxu1 }
 0x4f3   :  { %v5498_v2 = vadd.f32 %v5497_v54, %v5496_v28 }
 0x4f5   :  { %v15064_v45 = vpop.f32.mrb[120].mxu1 }
 0x4f6   :  { %v5499_v43 = vsel %vm5477_vm7, %v15064_v45, 0.0  ;;  %v11513_v3 = vpop.f32.mrb[121].mxu1 }
 0x4f7   :  { %v5500_v31 = vadd.f32 %v5499_v43, %v5498_v2 }
 0x4f9   :  { %v15068_v4 = vpop.f32.mrb[122].mxu1 }
 0x4fa   :  { %v5502_v47 = vsel %vm5501_vm9, %v15068_v4, 0.0  ;;  %v11516_v62 = vpop.f32.mrb[123].mxu1 }
 0x4fb   :  { %v5503_v53 = vadd.f32 %v5502_v47, %v5500_v31 }
 0x4fd   :  { %v5504_v1 = vrot.slane %v5503_v53, 4 }
 0x4ff   :  { %v5505_v20 = vadd.f32 %v5504_v1, %v5503_v53 }
 0x501   :  { %v5506_v24 = vrot.slane %v5505_v20, 2 }
 0x503   :  { %v5507_v22 = vadd.f32 %v5506_v24, %v5505_v20 }
 0x505   :  { %v5508_v12 = vrot.slane %v5507_v22, 1 }
 0x507   :  { %v5509_v63 = vadd.f32 %v5508_v12, %v5507_v22 }
 0x509   :  { %v15072_v18 = vmul.f32 0.010204081, %v5509_v63 }
 0x50b   :  { %v5512_v34 = vsub.f32 %v15015_v48, %v15072_v18  ;;  %v5513_v11 = vsub.f32 %v15017_v16, %v15072_v18  ;;  %v5514_v38 = vsub.f32 %v15023_v44, %v15072_v18  ;;  %v5515_v33 = vsub.f32 %v15032_v35, %v15072_v18 }
 0x50c   :  { %v5516_v15 = vsub.f32 %v15036_v23, %v15072_v18  ;;  %v5517_v6 = vsub.f32 %v15040_v7, %v15072_v18  ;;  %v5518_v30 = vsub.f32 %v15044_v50, %v15072_v18  ;;  %v5519_v27 = vsub.f32 %v15048_v42, %v15072_v18 }
 0x50d   :  { %v5520_v49 = vsub.f32 %v15052_v41, %v15072_v18  ;;  %v5521_v10 = vsub.f32 %v15056_v17, %v15072_v18  ;;  %v5522_v8 = vsub.f32 %v15060_v39, %v15072_v18  ;;  %v5523_v52 = vsub.f32 %v15064_v45, %v15072_v18 }
 0x50e   :  { %v5524_v40 = vsub.f32 %v15068_v4, %v15072_v18  ;;  %v5525_v58 = vmul.f32 %v5512_v34, %v5512_v34  ;;  %v5526_v0 = vmul.f32 %v5513_v11, %v5513_v11  ;;  %v5527_v57 = vmul.f32 %v5514_v38, %v5514_v38 }
 0x50f   :  { %v5528_v25 = vmul.f32 %v5515_v33, %v5515_v33  ;;  %v5529_v21 = vmul.f32 %v5516_v15, %v5516_v15  ;;  %v5530_v13 = vmul.f32 %v5517_v6, %v5517_v6  ;;  %v5531_v36 = vmul.f32 %v5518_v30, %v5518_v30 }
 0x510   :  { %v5538_v46 = vsel %vm5477_vm7, %v5525_v58, 0.0  ;;  %v5539_v29 = vsel %vm5477_vm7, %v5526_v0, 0.0  ;;  %v5541_v61 = vsel %vm5477_vm7, %v5527_v57, 0.0  ;;  %v5532_v56 = vmul.f32 %v5519_v27, %v5519_v27  ;;  %v5574_v58 = vld [vmem:[%s15582_s8] sm:$0x1]  ;;  %v15742_v57 = vld [vmem:[#allocation67_spill] sm:$0xff] }
 0x511   :  { %v5540_v26 = vadd.f32 %v5539_v29, %v5538_v46  ;;  %v5543_v9 = vsel %vm5477_vm7, %v5528_v25, 0.0  ;;  %v5545_v59 = vsel %vm5477_vm7, %v5529_v21, 0.0  ;;  %v5547_v14 = vsel %vm5477_vm7, %v5530_v13, 0.0 }
 0x512   :  { %v5533_v37 = vmul.f32 %v5520_v49, %v5520_v49  ;;  %v5549_v28 = vsel %vm5477_vm7, %v5531_v36, 0.0  ;;  %v5534_v19 = vmul.f32 %v5521_v10, %v5521_v10  ;;  %v5551_v2 = vsel %vm5477_vm7, %v5532_v56, 0.0 }
 0x513   :  { %v5542_v60 = vadd.f32 %v5541_v61, %v5540_v26  ;;  %v5535_v3 = vmul.f32 %v5522_v8, %v5522_v8  ;;  %v5536_v62 = vmul.f32 %v5523_v52, %v5523_v52  ;;  %v5537_v20 = vmul.f32 %v5524_v40, %v5524_v40  ;;  %v5570_v8 = vld [vmem:[%s15581_s7] sm:$0x1] }
 0x514   :  { %v5553_v31 = vsel %vm5477_vm7, %v5533_v37, 0.0  ;;  %v5555_v53 = vsel %vm5477_vm7, %v5534_v19, 0.0 }
 0x515   :  { %v5544_v51 = vadd.f32 %v5543_v9, %v5542_v60  ;;  %v5557_v24 = vsel %vm5477_vm7, %v5535_v3, 0.0  ;;  %v5559_v12 = vsel %vm5477_vm7, %v5536_v62, 0.0  ;;  %v5561_v34 = vsel %vm5501_vm9, %v5537_v20, 0.0  ;;  %v10071_v20 = vld [vmem:[%s15583_s9 + $0x18] sm:$0xf] }
 0x517   :  { %v5546_v5 = vadd.f32 %v5545_v59, %v5544_v51 }
 0x519   :  { %v5548_v55 = vadd.f32 %v5547_v14, %v5546_v5 }
 0x51b   :  { %v5550_v54 = vadd.f32 %v5549_v28, %v5548_v55 }
 0x51d   :  { %v5552_v43 = vadd.f32 %v5551_v2, %v5550_v54  ;;  %v10059_v54 = vld [vmem:[%s15583_s9 + $0x8] sm:$0xf] }
 0x51f   :  { %v5554_v47 = vadd.f32 %v5553_v31, %v5552_v43  ;;  %v10062_v43 = vld [vmem:[%s15583_s9 + $0xc] sm:$0xf]  ;;  %v10065_v31 = vld [vmem:[%s15583_s9 + $0x10] sm:$0xf] }
 0x521   :  { %v5556_v1 = vadd.f32 %v5555_v53, %v5554_v47  ;;  %v10068_v53 = vld [vmem:[%s15583_s9 + $0x14] sm:$0xf] }
 0x523   :  { %v5558_v22 = vadd.f32 %v5557_v24, %v5556_v1 }
 0x525   :  { %v5560_v63 = vadd.f32 %v5559_v12, %v5558_v22  ;;  %v10074_v22 = vld [vmem:[%s15583_s9 + $0x1c] sm:$0xf] }
 0x527   :  { %v5562_v11 = vadd.f32 %v5561_v34, %v5560_v63  ;;  %v10077_v63 = vld [vmem:[%s15583_s9 + $0x20] sm:$0xf] }
 0x529   :  { %v5563_v38 = vrot.slane %v5562_v11, 4 }
 0x52b   :  { %v5564_v33 = vadd.f32 %v5563_v38, %v5562_v11  ;;  %v10080_v38 = vld [vmem:[%s15583_s9 + $0x24] sm:$0xf] }
 0x52d   :  { %v5565_v15 = vrot.slane %v5564_v33, 2 }
 0x52f   :  { %v5566_v6 = vadd.f32 %v5565_v15, %v5564_v33  ;;  %v10083_v15 = vld [vmem:[%s15583_s9 + $0x28] sm:$0xf] }
 0x531   :  { %v5567_v30 = vrot.slane %v5566_v6, 1 }
 0x533   :  { %v5568_v27 = vadd.f32 %v5567_v30, %v5566_v6  ;;  %v10086_v30 = vld [vmem:[%s15583_s9 + $0x2c] sm:$0xf] }
 0x535   :  { %v5569_v49 = vmul.f32 0.010204081, %v5568_v27 }
 0x537   :  { %v5571_v10 = vadd.f32 1e-05, %v5569_v49  ;;  %v10089_v49 = vld [vmem:[%s15583_s9 + $0x30] sm:$0xf] }
 0x539   :  { %12119 = vrsqrt.f32 %v5571_v10 }
 0x543   :  { %v12120_v52 = vpop.eup %12119 }
 0x544   :  { %v5573_v40 = vmul.f32 %v12120_v52, %v5570_v8  ;;  %v10092_v52 = vld [vmem:[%s15583_s9 + $0x34] sm:$0xf] }
 0x546   :  { %v5575_v0 = vmul.f32 %v5573_v40, %v15072_v18  ;;  %v5581_v25 = vrot.slane %v5573_v40, %v15742_v57 }
 0x548   :  { %v5576_v46 = vsub.f32 %v5574_v58, %v5575_v0  ;;  %v5595_v29 = vmul.f32 %v5581_v25, %v15068_v4  ;;  %v5583_v26 = vmul.f32 %v5581_v25, %v15015_v48  ;;  %v5584_v21 = vmul.f32 %v5581_v25, %v15017_v16  ;;  %v10095_v58 = vld [vmem:[%s15583_s9 + $0x38] sm:$0xf] }
 0x549   :  { %v5585_v61 = vmul.f32 %v5581_v25, %v15023_v44  ;;  %v5586_v60 = vmul.f32 %v5581_v25, %v15032_v35  ;;  %v5587_v13 = vmul.f32 %v5581_v25, %v15036_v23  ;;  %v5588_v9 = vmul.f32 %v5581_v25, %v15040_v7 }
 0x54a   :  { %v5600_v51 = vrot.slane %v5576_v46, %v15742_v57  ;;  %v5589_v18 = vmul.f32 %v5581_v25, %v15044_v50  ;;  %v5590_v36 = vmul.f32 %v5581_v25, %v15048_v42  ;;  %v5591_v4 = vmul.f32 %v5581_v25, %v15052_v41  ;;  %v10098_v57 = vld [vmem:[%s15583_s9 + $0x3c] sm:$0xf]  ;;  %v10101_v46 = vld [vmem:[%s15583_s9 + $0x40] sm:$0xf] }
 0x54b   :  { %v5592_v48 = vmul.f32 %v5581_v25, %v15056_v17  ;;  %v5593_v16 = vmul.f32 %v5581_v25, %v15060_v39  ;;  %v5594_v44 = vmul.f32 %v5581_v25, %v15064_v45  ;;  %v10056_v45 = vld [vmem:[%s15583_s9 + $0x4] sm:$0xf] }
 0x54c   :  { %v15135_v59 = vadd.f32 %v5600_v51, %v5595_v29  ;;  %v5602_v35 = vadd.f32 %v5600_v51, %v5583_v26  ;;  %v5603_v23 = vadd.f32 %v5600_v51, %v5584_v21  ;;  %v5604_v5 = vadd.f32 %v5600_v51, %v5585_v61  ;;  %v10104_v21 = vld [vmem:[%s15583_s9 + $0x44] sm:$0xf] }
 0x54d   :  { %v15137_v7 = vadd.f32 %v5600_v51, %v5586_v60  ;;  %v15139_v56 = vadd.f32 %v5600_v51, %v5587_v13  ;;  %v15141_v50 = vadd.f32 %v5600_v51, %v5588_v9  ;;  %v15143_v42 = vadd.f32 %v5600_v51, %v5589_v18  ;;  %v10107_v60 = vld [vmem:[%s15583_s9 + $0x48] sm:$0xf]  ;;  %v10110_v9 = vld [vmem:[%s15583_s9 + $0x4c] sm:$0xf]  ;;  %v10113_v18 = vld [vmem:[%s15583_s9 + $0x50] sm:$0xf] }
 0x54e   :  { %v5615_v41 = vmul.f32 0.01, %v5602_v35  ;;  %v15145_v14 = vadd.f32 %v5600_v51, %v5590_v36  ;;  %v15147_v17 = vadd.f32 %v5600_v51, %v5591_v4  ;;  %v15157_v55 = vadd.f32 %v5600_v51, %v5592_v48  ;;  %v10116_v48 = vld [vmem:[%s15583_s9 + $0x54] sm:$0xf] }
 0x54f   :  { %v15159_v37 = vadd.f32 %v5600_v51, %v5593_v16  ;;  %v15164_v19 = vadd.f32 %v5600_v51, %v5594_v44  ;;  %v5616_v47 = vmul.f32 0.01, %v5603_v23  ;;  %v5617_v34 = vmul.f32 0.01, %v5604_v5  ;;  %v10119_v44 = vld [vmem:[%s15583_s9 + $0x58] sm:$0xf] }
 0x550   :  { %v5628_v39 = vmax.f32 %v5602_v35, %v5615_v41  ;;  %v5618_v10 = vmul.f32 0.01, %v15137_v7  ;;  %v5619_v29 = vmul.f32 0.01, %v15139_v56  ;;  %v5620_v36 = vmul.f32 0.01, %v15141_v50 }
 0x551   :  { %v5629_v62 = vmax.f32 %v5603_v23, %v5616_v47  ;;  %v5630_v11 = vmax.f32 %v5604_v5, %v5617_v34  ;;  %v10122_v23 = vld [vmem:[%s15583_s9 + $0x5c] sm:$0xf]  ;;  %v10128_v41 = vld [vmem:[%s15583_s9 + $0x64] sm:$0xf]  ;;  %v10155_v34 = vld [vmem:[%s15583_s9 + $0x88] sm:$0xf] }
 0x552   :  { %11520 = vmatmul.mubr.msk.f32.vlgmr.msra.gmra.mrb[234].mxu0 %vm5477_vm7, %v5628_v39  ;;  %v5730_v28 = vrot.slane %v5628_v39, 2  ;;  %v5809_v2 = vrot.slane %v5628_v39, 4  ;;  %v5888_v3 = vrot.slane %v5628_v39, 6  ;;  %v5631_v8 = vmax.f32 %v15137_v7, %v5618_v10  ;;  %v10125_v7 = vld [vmem:[%s15583_s9 + $0x60] sm:$0xf] }
 0x553   :  { %11523 = vmatpush3.msk.msra.mxu0 %vm5653_vm8, %v10056_v45  ;;  %11524 = vmatprep.mubr.msk.f32.mxu0 %vm12147_vm3, %v15607_v32  ;;  %v6046_v1 = vrot.slane %v5629_v62, 2  ;;  %v6125_v24 = vrot.slane %v5629_v62, 4  ;;  %v6204_v12 = vrot.slane %v5629_v62, 6  ;;  %v6362_v33 = vrot.slane %v5630_v11, 2  ;;  %v10131_v45 = vld [vmem:[%s15583_s9 + $0x68] sm:$0xf] }
 0x554   :  { %11527 = vmatprep.subr.mxu0 %v15607_v32  ;;  %v6441_v6 = vrot.slane %v5630_v11, 4  ;;  %v6520_v27 = vrot.slane %v5630_v11, 6  ;;  %v6678_v40 = vrot.slane %v5631_v8, 2  ;;  %v6757_v0 = vrot.slane %v5631_v8, 4  ;;  %v10170_v10 = vld [vmem:[%s15583_s9 + $0x9c] sm:$0xf] }
 0x555   :  { %v6836_v25 = vrot.slane %v5631_v8, 6  ;;  %v5632_v26 = vmax.f32 %v15139_v56, %v5619_v29  ;;  %v5633_v4 = vmax.f32 %v15141_v50, %v5620_v36  ;;  %v5621_v56 = vmul.f32 0.01, %v15143_v42  ;;  %v10197_v36 = vld [vmem:[%s15583_s9 + $0xc0] sm:$0xf] }
 0x557   :  { %v6994_v61 = vrot.slane %v5632_v26, 2  ;;  %v7073_v13 = vrot.slane %v5632_v26, 4  ;;  %v7152_v51 = vrot.slane %v5632_v26, 6  ;;  %v7310_v16 = vrot.slane %v5633_v4, 2 }
 0x558   :  { %v7389_v35 = vrot.slane %v5633_v4, 4  ;;  %v7468_v5 = vrot.slane %v5633_v4, 6  ;;  %v5634_v50 = vmax.f32 %v15143_v42, %v5621_v56 }
 0x55a   :  { %11525 = vmatmul.mubr.msk.f32.vlgmr.msra.gmra.mrb[234].mxu0 %vm5477_vm7, %v5730_v28  ;;  %v7626_v39 = vrot.slane %v5634_v50, 2  ;;  %v7705_v42 = vrot.slane %v5634_v50, 4  ;;  %v10134_v28 = vld [vmem:[%s15583_s9 + $0x6c] sm:$0xf] }
 0x55b   :  { %11528 = vmatpush3.msk.msra.mxu0 %vm5653_vm8, %v10059_v54  ;;  %11529 = vmatprep.mubr.msk.f32.mxu0 %vm12147_vm3, %v15607_v32  ;;  %v7784_v54 = vrot.slane %v5634_v50, 6 }
 0x55c   :  { %11532 = vmatprep.subr.mxu0 %v15607_v32 }
 0x562   :  { %11530 = vmatmul.mubr.msk.f32.vlgmr.msra.gmra.mrb[234].mxu0 %vm5477_vm7, %v5809_v2  ;;  %v10137_v2 = vld [vmem:[%s15583_s9 + $0x70] sm:$0xf] }
 0x563   :  { %11533 = vmatpush3.msk.msra.mxu0 %vm5653_vm8, %v10062_v43  ;;  %11534 = vmatprep.mubr.msk.f32.mxu0 %vm12147_vm3, %v15607_v32  ;;  %v5622_v43 = vmul.f32 0.01, %v15145_v14 }
 0x564   :  { %11537 = vmatprep.subr.mxu0 %v15607_v32 }
 0x56a   :  { %11535 = vmatmul.mubr.msk.f32.vlgmr.msra.gmra.mrb[234].mxu0 %vm5477_vm7, %v5888_v3  ;;  %v5635_v3 = vmax.f32 %v15145_v14, %v5622_v43 }
 0x56b   :  { %11538 = vmatpush3.msk.msra.mxu0 %vm5653_vm8, %v10065_v31  ;;  %11539 = vmatprep.mubr.msk.f32.mxu0 %vm12147_vm3, %v15607_v32  ;;  %v10140_v31 = vld [vmem:[%s15583_s9 + $0x74] sm:$0xf] }
 0x56c   :  { %11542 = vmatprep.subr.mxu0 %v15607_v32  ;;  %v7942_v47 = vrot.slane %v5635_v3, 2  ;;  %v8021_v14 = vrot.slane %v5635_v3, 4 }
 0x572   :  { %11540 = vmatmul.mubr.msk.f32.vlgmr.msra.gmra.mrb[234].mxu0 %vm5477_vm7, %v5629_v62  ;;  %v10143_v62 = vld [vmem:[%s15583_s9 + $0x78] sm:$0xf] }
 0x573   :  { %11543 = vmatpush3.msk.msra.mxu0 %vm5653_vm8, %v10068_v53  ;;  %11544 = vmatprep.mubr.msk.f32.mxu0 %vm12147_vm3, %v15607_v32  ;;  %v10146_v53 = vld [vmem:[%s15583_s9 + $0x7c] sm:$0xf] }
 0x574   :  { %11547 = vmatprep.subr.mxu0 %v15607_v32 }
 0x57a   :  { %11545 = vmatmul.mubr.msk.f32.vlgmr.msra.gmra.mrb[234].mxu0 %vm5477_vm7, %v6046_v1  ;;  %v8100_v1 = vrot.slane %v5635_v3, 6 }
 0x57b   :  { %11548 = vmatpush3.msk.msra.mxu0 %vm5653_vm8, %v10071_v20  ;;  %11549 = vmatprep.mubr.msk.f32.mxu0 %vm12147_vm3, %v15607_v32  ;;  %v10149_v20 = vld [vmem:[%s15583_s9 + $0x80] sm:$0xf] }
 0x57c   :  { %11552 = vmatprep.subr.mxu0 %v15607_v32 }
 0x582   :  { %11550 = vmatmul.mubr.msk.f32.vlgmr.msra.gmra.mrb[234].mxu0 %vm5477_vm7, %v6125_v24  ;;  %v5623_v24 = vmul.f32 0.01, %v15147_v17 }
 0x583   :  { %11553 = vmatpush3.msk.msra.mxu0 %vm5653_vm8, %v10074_v22  ;;  %11554 = vmatprep.mubr.msk.f32.mxu0 %vm12147_vm3, %v15607_v32 }
 0x584   :  { %11557 = vmatprep.subr.mxu0 %v15607_v32  ;;  %v5636_v22 = vmax.f32 %v15147_v17, %v5623_v24 }
 0x586   :  { %v8337_v17 = vrot.slane %v5636_v22, 4 }
 0x58a   :  { %11555 = vmatmul.mubr.msk.f32.vlgmr.msra.gmra.mrb[234].mxu0 %vm5477_vm7, %v6204_v12  ;;  %v10152_v12 = vld [vmem:[%s15583_s9 + $0x84] sm:$0xf] }
 0x58b   :  { %11558 = vmatpush3.msk.msra.mxu0 %vm5653_vm8, %v10077_v63  ;;  %11559 = vmatprep.mubr.msk.f32.mxu0 %vm12147_vm3, %v15607_v32  ;;  %v8258_v63 = vrot.slane %v5636_v22, 2 }
 0x58c   :  { %11562 = vmatprep.subr.mxu0 %v15607_v32 }
 0x592   :  { %11560 = vmatmul.mubr.msk.f32.vlgmr.msra.gmra.mrb[234].mxu0 %vm5477_vm7, %v5630_v11  ;;  %v10158_v11 = vld [vmem:[%s15583_s9 + $0x8c] sm:$0xf] }
 0x593   :  { %11563 = vmatpush3.msk.msra.mxu0 %vm5653_vm8, %v10080_v38  ;;  %11564 = vmatprep.mubr.msk.f32.mxu0 %vm12147_vm3, %v15607_v32  ;;  %v8416_v38 = vrot.slane %v5636_v22, 6 }
 0x594   :  { %11567 = vmatprep.subr.mxu0 %v15607_v32 }
 0x59a   :  { %11565 = vmatmul.mubr.msk.f32.vlgmr.msra.gmra.mrb[234].mxu0 %vm5477_vm7, %v6362_v33  ;;  %v10161_v33 = vld [vmem:[%s15583_s9 + $0x90] sm:$0xf] }
 0x59b   :  { %11568 = vmatpush3.msk.msra.mxu0 %vm5653_vm8, %v10083_v15  ;;  %11569 = vmatprep.mubr.msk.f32.mxu0 %vm12147_vm3, %v15607_v32  ;;  %v5624_v15 = vmul.f32 0.01, %v15157_v55 }
 0x59c   :  { %11572 = vmatprep.subr.mxu0 %v15607_v32 }
 0x5a2   :  { %11570 = vmatmul.mubr.msk.f32.vlgmr.msra.gmra.mrb[234].mxu0 %vm5477_vm7, %v6441_v6  ;;  %v5637_v6 = vmax.f32 %v15157_v55, %v5624_v15 }
 0x5a3   :  { %11573 = vmatpush3.msk.msra.mxu0 %vm5653_vm8, %v10086_v30  ;;  %11574 = vmatprep.mubr.msk.f32.mxu0 %vm12147_vm3, %v15607_v32  ;;  %v10164_v30 = vld [vmem:[%s15583_s9 + $0x94] sm:$0xf] }
 0x5a4   :  { %11577 = vmatprep.subr.mxu0 %v15607_v32  ;;  %v8653_v55 = vrot.slane %v5637_v6, 4 }
 0x5aa   :  { %11575 = vmatmul.mubr.msk.f32.vlgmr.msra.gmra.mrb[234].mxu0 %vm5477_vm7, %v6520_v27  ;;  %v8574_v27 = vrot.slane %v5637_v6, 2 }
 0x5ab   :  { %11578 = vmatpush3.msk.msra.mxu0 %vm5653_vm8, %v10089_v49  ;;  %11579 = vmatprep.mubr.msk.f32.mxu0 %vm12147_vm3, %v15607_v32  ;;  %v10167_v49 = vld [vmem:[%s15583_s9 + $0x98] sm:$0xf] }
 0x5ac   :  { %11582 = vmatprep.subr.mxu0 %v15607_v32 }
 0x5b2   :  { %11580 = vmatmul.mubr.msk.f32.vlgmr.msra.gmra.mrb[234].mxu0 %vm5477_vm7, %v5631_v8  ;;  %v8732_v8 = vrot.slane %v5637_v6, 6 }
 0x5b3   :  { %11583 = vmatpush3.msk.msra.mxu0 %vm5653_vm8, %v10092_v52  ;;  %11584 = vmatprep.mubr.msk.f32.mxu0 %vm12147_vm3, %v15607_v32  ;;  %v10173_v52 = vld [vmem:[%s15583_s9 + $0xa0] sm:$0xf] }
 0x5b4   :  { %11587 = vmatprep.subr.mxu0 %v15607_v32 }
 0x5ba   :  { %11585 = vmatmul.mubr.msk.f32.vlgmr.msra.gmra.mrb[234].mxu0 %vm5477_vm7, %v6678_v40  ;;  %v5625_v40 = vmul.f32 0.01, %v15159_v37 }
 0x5bb   :  { %11588 = vmatpush3.msk.msra.mxu0 %vm5653_vm8, %v10095_v58  ;;  %11589 = vmatprep.mubr.msk.f32.mxu0 %vm12147_vm3, %v15607_v32 }
 0x5bc   :  { %11592 = vmatprep.subr.mxu0 %v15607_v32  ;;  %v5638_v58 = vmax.f32 %v15159_v37, %v5625_v40 }
 0x5be   :  { %v8969_v37 = vrot.slane %v5638_v58, 4  ;;  %v9048_v29 = vrot.slane %v5638_v58, 6 }
 0x5c2   :  { %11590 = vmatmul.mubr.msk.f32.vlgmr.msra.gmra.mrb[234].mxu0 %vm5477_vm7, %v6757_v0  ;;  %v10176_v0 = vld [vmem:[%s15583_s9 + $0xa4] sm:$0xf] }
 0x5c3   :  { %11593 = vmatpush3.msk.msra.mxu0 %vm5653_vm8, %v10098_v57  ;;  %11594 = vmatprep.mubr.msk.f32.mxu0 %vm12147_vm3, %v15607_v32  ;;  %v8890_v57 = vrot.slane %v5638_v58, 2 }
 0x5c4   :  { %11597 = vmatprep.subr.mxu0 %v15607_v32 }
 0x5ca   :  { %11595 = vmatmul.mubr.msk.f32.vlgmr.msra.gmra.mrb[234].mxu0 %vm5477_vm7, %v6836_v25  ;;  %v10179_v25 = vld [vmem:[%s15583_s9 + $0xa8] sm:$0xf] }
 0x5cb   :  { %11598 = vmatpush3.msk.msra.mxu0 %vm5653_vm8, %v10101_v46  ;;  %11599 = vmatprep.mubr.msk.f32.mxu0 %vm12147_vm3, %v15607_v32  ;;  %v10182_v46 = vld [vmem:[%s15583_s9 + $0xac] sm:$0xf] }
 0x5cc   :  { %11602 = vmatprep.subr.mxu0 %v15607_v32 }
 0x5d2   :  { %11600 = vmatmul.mubr.msk.f32.vlgmr.msra.gmra.mrb[234].mxu0 %vm5477_vm7, %v5632_v26  ;;  %v10185_v26 = vld [vmem:[%s15583_s9 + $0xb0] sm:$0xf] }
 0x5d3   :  { %11603 = vmatpush3.msk.msra.mxu0 %vm5653_vm8, %v10104_v21  ;;  %11604 = vmatprep.mubr.msk.f32.mxu0 %vm12147_vm3, %v15607_v32  ;;  %v5626_v21 = vmul.f32 0.01, %v15164_v19 }
 0x5d4   :  { %11607 = vmatprep.subr.mxu0 %v15607_v32 }
 0x5da   :  { %11605 = vmatmul.mubr.msk.f32.vlgmr.msra.gmra.mrb[234].mxu0 %vm5477_vm7, %v6994_v61  ;;  %v5639_v61 = vmax.f32 %v15164_v19, %v5626_v21 }
 0x5db   :  { %11608 = vmatpush3.msk.msra.mxu0 %vm5653_vm8, %v10107_v60  ;;  %11609 = vmatprep.mubr.msk.f32.mxu0 %vm12147_vm3, %v15607_v32  ;;  %v10188_v60 = vld [vmem:[%s15583_s9 + $0xb4] sm:$0xf] }
 0x5dc   :  { %11612 = vmatprep.subr.mxu0 %v15607_v32  ;;  %v9285_v19 = vrot.slane %v5639_v61, 4 }
 0x5e2   :  { %11610 = vmatmul.mubr.msk.f32.vlgmr.msra.gmra.mrb[234].mxu0 %vm5477_vm7, %v7073_v13  ;;  %v9206_v13 = vrot.slane %v5639_v61, 2 }
 0x5e3   :  { %11613 = vmatpush3.msk.msra.mxu0 %vm5653_vm8, %v10110_v9  ;;  %11614 = vmatprep.mubr.msk.f32.mxu0 %vm12147_vm3, %v15607_v32  ;;  %v10191_v9 = vld [vmem:[%s15583_s9 + $0xb8] sm:$0xf] }
 0x5e4   :  { %11617 = vmatprep.subr.mxu0 %v15607_v32 }
 0x5ea   :  { %11615 = vmatmul.mubr.msk.f32.vlgmr.msra.gmra.mrb[234].mxu0 %vm5477_vm7, %v7152_v51  ;;  %v10194_v51 = vld [vmem:[%s15583_s9 + $0xbc] sm:$0xf]  ;;  %s12121_s9 = scalar_lea.vmem %s9528_s0, 32 }
 0x5eb   :  { %11618 = vmatpush3.msk.msra.mxu0 %vm5653_vm8, %v10113_v18  ;;  %11619 = vmatprep.mubr.msk.f32.mxu0 %vm12147_vm3, %v15607_v32  ;;  %v9364_v18 = vrot.slane %v5639_v61, 6  ;;  %p12122_p0 = scmp.ne.s32.totalorder %s9528_s0, %s12121_s9  ;;  %p12127_p2 = scmp.lt.s32.totalorder %s12121_s9, %s12121_s9 }
 0x5ec   :  { %11622 = vmatprep.subr.mxu0 %v15607_v32 }
 0x5ed   :  { %p12128_p3 = por %p12127_p2, %p12126_p1 }
 0x5ef   :  { %p12129_p4 = pnand %p12128_p3, %p12122_p0 }
 0x5f2   :  { %11620 = vmatmul.mubr.msk.f32.vlgmr.msra.gmra.mrb[234].mxu0 %vm5477_vm7, %v5633_v4  ;;  %v5627_v4 = vmul.f32 0.01, %v15135_v59 }
 0x5f3   :  { %11623 = vmatpush3.msk.msra.mxu0 %vm5653_vm8, %v10116_v48  ;;  %11624 = vmatprep.mubr.msk.f32.mxu0 %vm12147_vm3, %v15607_v32 }
 0x5f4   :  { %11627 = vmatprep.subr.mxu0 %v15607_v32  ;;  %v5640_v48 = vmax.f32 %v15135_v59, %v5627_v4 }
 0x5fa   :  { %11625 = vmatmul.mubr.msk.f32.vlgmr.msra.gmra.mrb[234].mxu0 %vm5477_vm7, %v7310_v16  ;;  %v10053_v16 = vld [vmem:[%s15584_s10] ss:$0 sm:$0xff] }
 0x5fb   :  { %11628 = vmatpush3.msk.msra.mxu0 %vm5653_vm8, %v10119_v44  ;;  %11629 = vmatprep.mubr.msk.f32.mxu0 %vm12147_vm3, %v15607_v32 }
 0x5fc   :  { %11632 = vmatprep.subr.mxu0 %v15607_v32 }
 0x602   :  { %11630 = vmatmul.mubr.msk.f32.vlgmr.msra.gmra.mrb[234].mxu0 %vm5477_vm7, %v7389_v35 }
 0x603   :  { %11633 = vmatpush3.msk.msra.mxu0 %vm5653_vm8, %v10122_v23  ;;  %11634 = vmatprep.mubr.msk.f32.mxu0 %vm12147_vm3, %v15607_v32 }
 0x604   :  { %11637 = vmatprep.subr.mxu0 %v15607_v32 }
 0x60a   :  { %11635 = vmatmul.mubr.msk.f32.vlgmr.msra.gmra.mrb[234].mxu0 %vm5477_vm7, %v7468_v5 }
 0x60b   :  { %11638 = vmatpush3.msk.msra.mxu0 %vm5653_vm8, %v10125_v7  ;;  %11639 = vmatprep.mubr.msk.f32.mxu0 %vm12147_vm3, %v15607_v32 }
 0x60c   :  { %11642 = vmatprep.subr.mxu0 %v15607_v32 }
 0x612   :  { %11640 = vmatmul.mubr.msk.f32.vlgmr.msra.gmra.mrb[234].mxu0 %vm5477_vm7, %v5634_v50 }
 0x613   :  { %11643 = vmatpush3.msk.msra.mxu0 %vm5653_vm8, %v10128_v41  ;;  %11644 = vmatprep.mubr.msk.f32.mxu0 %vm12147_vm3, %v15607_v32 }
 0x614   :  { %11647 = vmatprep.subr.mxu0 %v15607_v32 }
 0x61a   :  { %11645 = vmatmul.mubr.msk.f32.vlgmr.msra.gmra.mrb[234].mxu0 %vm5477_vm7, %v7626_v39 }
 0x61b   :  { %11648 = vmatpush3.msk.msra.mxu0 %vm5653_vm8, %v10131_v45  ;;  %11649 = vmatprep.mubr.msk.f32.mxu0 %vm12147_vm3, %v15607_v32 }
 0x61c   :  { %11652 = vmatprep.subr.mxu0 %v15607_v32 }
 0x622   :  { %11650 = vmatmul.mubr.msk.f32.vlgmr.msra.gmra.mrb[234].mxu0 %vm5477_vm7, %v7705_v42 }
 0x623   :  { %11653 = vmatpush3.msk.msra.mxu0 %vm5653_vm8, %v10134_v28  ;;  %11654 = vmatprep.mubr.msk.f32.mxu0 %vm12147_vm3, %v15607_v32 }
 0x624   :  { %11657 = vmatprep.subr.mxu0 %v15607_v32 }
 0x62a   :  { %11655 = vmatmul.mubr.msk.f32.vlgmr.msra.gmra.mrb[234].mxu0 %vm5477_vm7, %v7784_v54 }
 0x62b   :  { %11658 = vmatpush3.msk.msra.mxu0 %vm5653_vm8, %v10137_v2  ;;  %11659 = vmatprep.mubr.msk.f32.mxu0 %vm12147_vm3, %v15607_v32 }
 0x62c   :  { %11662 = vmatprep.subr.mxu0 %v15607_v32 }
 0x632   :  { %11660 = vmatmul.mubr.msk.f32.vlgmr.msra.gmra.mrb[234].mxu0 %vm5477_vm7, %v5635_v3 }
 0x633   :  { %11663 = vmatpush3.msk.msra.mxu0 %vm5653_vm8, %v10140_v31  ;;  %11664 = vmatprep.mubr.msk.f32.mxu0 %vm12147_vm3, %v15607_v32 }
 0x634   :  { %11667 = vmatprep.subr.mxu0 %v15607_v32 }
 0x63a   :  { %11665 = vmatmul.mubr.msk.f32.vlgmr.msra.gmra.mrb[234].mxu0 %vm5477_vm7, %v7942_v47 }
 0x63b   :  { %11668 = vmatpush3.msk.msra.mxu0 %vm5653_vm8, %v10143_v62  ;;  %11669 = vmatprep.mubr.msk.f32.mxu0 %vm12147_vm3, %v15607_v32 }
 0x63c   :  { %11672 = vmatprep.subr.mxu0 %v15607_v32 }
 0x642   :  { %11670 = vmatmul.mubr.msk.f32.vlgmr.msra.gmra.mrb[234].mxu0 %vm5477_vm7, %v8021_v14 }
 0x643   :  { %11673 = vmatpush3.msk.msra.mxu0 %vm5653_vm8, %v10146_v53  ;;  %11674 = vmatprep.mubr.msk.f32.mxu0 %vm12147_vm3, %v15607_v32 }
 0x644   :  { %11677 = vmatprep.subr.mxu0 %v15607_v32 }
 0x64a   :  { %11675 = vmatmul.mubr.msk.f32.vlgmr.msra.gmra.mrb[234].mxu0 %vm5477_vm7, %v8100_v1 }
 0x64b   :  { %11678 = vmatpush3.msk.msra.mxu0 %vm5653_vm8, %v10149_v20  ;;  %11679 = vmatprep.mubr.msk.f32.mxu0 %vm12147_vm3, %v15607_v32 }
 0x64c   :  { %11682 = vmatprep.subr.mxu0 %v15607_v32 }
 0x652   :  { %11680 = vmatmul.mubr.msk.f32.vlgmr.msra.gmra.mrb[234].mxu0 %vm5477_vm7, %v5636_v22 }
 0x653   :  { %11683 = vmatpush3.msk.msra.mxu0 %vm5653_vm8, %v10152_v12  ;;  %11684 = vmatprep.mubr.msk.f32.mxu0 %vm12147_vm3, %v15607_v32 }
 0x654   :  { %11687 = vmatprep.subr.mxu0 %v15607_v32 }
 0x65a   :  { %11685 = vmatmul.mubr.msk.f32.vlgmr.msra.gmra.mrb[234].mxu0 %vm5477_vm7, %v8258_v63 }
 0x65b   :  { %11688 = vmatpush3.msk.msra.mxu0 %vm5653_vm8, %v10155_v34  ;;  %11689 = vmatprep.mubr.msk.f32.mxu0 %vm12147_vm3, %v15607_v32 }
 0x65c   :  { %11692 = vmatprep.subr.mxu0 %v15607_v32 }
 0x662   :  { %11690 = vmatmul.mubr.msk.f32.vlgmr.msra.gmra.mrb[234].mxu0 %vm5477_vm7, %v8337_v17 }
 0x663   :  { %11693 = vmatpush3.msk.msra.mxu0 %vm5653_vm8, %v10158_v11  ;;  %11694 = vmatprep.mubr.msk.f32.mxu0 %vm12147_vm3, %v15607_v32 }
 0x664   :  { %11697 = vmatprep.subr.mxu0 %v15607_v32 }
 0x66a   :  { %11695 = vmatmul.mubr.msk.f32.vlgmr.msra.gmra.mrb[234].mxu0 %vm5477_vm7, %v8416_v38 }
 0x66b   :  { %11698 = vmatpush3.msk.msra.mxu0 %vm5653_vm8, %v10161_v33  ;;  %11699 = vmatprep.mubr.msk.f32.mxu0 %vm12147_vm3, %v15607_v32 }
 0x66c   :  { %11702 = vmatprep.subr.mxu0 %v15607_v32 }
 0x672   :  { %11700 = vmatmul.mubr.msk.f32.vlgmr.msra.gmra.mrb[234].mxu0 %vm5477_vm7, %v5637_v6 }
 0x673   :  { %11703 = vmatpush3.msk.msra.mxu0 %vm5653_vm8, %v10164_v30  ;;  %11704 = vmatprep.mubr.msk.f32.mxu0 %vm12147_vm3, %v15607_v32 }
 0x674   :  { %11707 = vmatprep.subr.mxu0 %v15607_v32 }
 0x67a   :  { %11705 = vmatmul.mubr.msk.f32.vlgmr.msra.gmra.mrb[234].mxu0 %vm5477_vm7, %v8574_v27 }
 0x67b   :  { %11708 = vmatpush3.msk.msra.mxu0 %vm5653_vm8, %v10167_v49  ;;  %11709 = vmatprep.mubr.msk.f32.mxu0 %vm12147_vm3, %v15607_v32 }
 0x67c   :  { %11712 = vmatprep.subr.mxu0 %v15607_v32 }
 0x682   :  { %11710 = vmatmul.mubr.msk.f32.vlgmr.msra.gmra.mrb[234].mxu0 %vm5477_vm7, %v8653_v55 }
 0x683   :  { %11713 = vmatpush3.msk.msra.mxu0 %vm5653_vm8, %v10170_v10  ;;  %11714 = vmatprep.mubr.msk.f32.mxu0 %vm12147_vm3, %v15607_v32 }
 0x684   :  { %11717 = vmatprep.subr.mxu0 %v15607_v32 }
 0x68a   :  { %11715 = vmatmul.mubr.msk.f32.vlgmr.msra.gmra.mrb[234].mxu0 %vm5477_vm7, %v8732_v8 }
 0x68b   :  { %11718 = vmatpush3.msk.msra.mxu0 %vm5653_vm8, %v10173_v52  ;;  %11719 = vmatprep.mubr.msk.f32.mxu0 %vm12147_vm3, %v15607_v32 }
 0x68c   :  { %11722 = vmatprep.subr.mxu0 %v15607_v32 }
 0x692   :  { %11720 = vmatmul.mubr.msk.f32.vlgmr.msra.gmra.mrb[234].mxu0 %vm5477_vm7, %v5638_v58 }
 0x693   :  { %11723 = vmatpush3.msk.msra.mxu0 %vm5653_vm8, %v10176_v0  ;;  %11724 = vmatprep.mubr.msk.f32.mxu0 %vm12147_vm3, %v15607_v32 }
 0x694   :  { %11727 = vmatprep.subr.mxu0 %v15607_v32 }
 0x69a   :  { %11725 = vmatmul.mubr.msk.f32.vlgmr.msra.gmra.mrb[234].mxu0 %vm5477_vm7, %v8890_v57 }
 0x69b   :  { %11728 = vmatpush3.msk.msra.mxu0 %vm5653_vm8, %v10179_v25  ;;  %11729 = vmatprep.mubr.msk.f32.mxu0 %vm12147_vm3, %v15607_v32 }
 0x69c   :  { %11732 = vmatprep.subr.mxu0 %v15607_v32 }
 0x6a2   :  { %11730 = vmatmul.mubr.msk.f32.vlgmr.msra.gmra.mrb[234].mxu0 %vm5477_vm7, %v8969_v37 }
 0x6a3   :  { %11733 = vmatpush3.msk.msra.mxu0 %vm5653_vm8, %v10182_v46  ;;  %11734 = vmatprep.mubr.msk.f32.mxu0 %vm12147_vm3, %v15607_v32 }
 0x6a4   :  { %11737 = vmatprep.subr.mxu0 %v15607_v32 }
 0x6aa   :  { %11735 = vmatmul.mubr.msk.f32.vlgmr.msra.gmra.mrb[234].mxu0 %vm5477_vm7, %v9048_v29 }
 0x6ab   :  { %11738 = vmatpush3.msk.msra.mxu0 %vm5653_vm8, %v10185_v26  ;;  %11739 = vmatprep.mubr.msk.f32.mxu0 %vm12147_vm3, %v15607_v32 }
 0x6ac   :  { %11742 = vmatprep.subr.mxu0 %v15607_v32 }
 0x6b2   :  { %11740 = vmatmul.mubr.msk.f32.vlgmr.msra.gmra.mrb[234].mxu0 %vm5477_vm7, %v5639_v61 }
 0x6b3   :  { %11743 = vmatpush3.msk.msra.mxu0 %vm5653_vm8, %v10188_v60  ;;  %11744 = vmatprep.mubr.msk.f32.mxu0 %vm12147_vm3, %v15607_v32 }
 0x6b4   :  { %11747 = vmatprep.subr.mxu0 %v15607_v32 }
 0x6ba   :  { %11745 = vmatmul.mubr.msk.f32.vlgmr.msra.gmra.mrb[234].mxu0 %vm5477_vm7, %v9206_v13 }
 0x6bb   :  { %11748 = vmatpush3.msk.msra.mxu0 %vm5653_vm8, %v10191_v9  ;;  %11749 = vmatprep.mubr.msk.f32.mxu0 %vm12147_vm3, %v15607_v32 }
 0x6bc   :  { %11752 = vmatprep.subr.mxu0 %v15607_v32 }
 0x6c2   :  { %11750 = vmatmul.mubr.msk.f32.vlgmr.msra.gmra.mrb[234].mxu0 %vm5477_vm7, %v9285_v19 }
 0x6c3   :  { %11753 = vmatpush3.msk.msra.mxu0 %vm5653_vm8, %v10194_v51  ;;  %11754 = vmatprep.mubr.msk.f32.mxu0 %vm12147_vm3, %v15607_v32 }
 0x6c4   :  { %11757 = vmatprep.subr.mxu0 %v15607_v32 }
 0x6ca   :  { %11755 = vmatmul.mubr.msk.f32.vlgmr.msra.gmra.mrb[234].mxu0 %vm5477_vm7, %v9364_v18 }
 0x6cb   :  { %11758 = vmatpush3.msk.msra.mxu0 %vm5653_vm8, %v10197_v36  ;;  %11759 = vmatprep.mubr.msk.f32.mxu0 %vm12147_vm3, %v15607_v32 }
 0x6d2   :  { %11760 = vmatmul.mubr.msk.f32.vlgmr.msra.gmra.mrb[234].mxu0 %vm5477_vm7, %v5640_v48 }
 0x7a5   :  { %v9515_v44 = vpop.f32.mrb[234].mxu0 }
 0x7a6   :  { %v11804_v35 = vadd.f32 %v10053_v16, %v9515_v44  ;;  %v11761_v23 = vpop.f32.mrb[235].mxu0 }
 0x7a8   :  { %9520 = vst [vmem:[#allocation2] sm:$0x3] %v11804_v35 }
 0x7a9   :  { %12132 = shalt.err (!%p12129_p4)
}
 0x7aa   :  { %s12133_s17 = scalar_lea.hbm %s15585_s11, 32 }
 0x7ab   :  { %p12134_p5 = scmp.ne.s32.totalorder %s15585_s11, %s12133_s17  ;;  %p12137_p6 = scmp.lt.u32.totalorder %s12133_s17, %s15585_s11 }
 0x7ad   :  { %p12139_p7 = pnand %p12137_p6, %p12134_p5 }
 0x7af   :  { %12142 = shalt.err (!%p12139_p7)
}
 0x7b0   :  { %9530 = dma.vmem_to_hbm [thread:$0]  %s9528_s0, 32, %s15585_s11, [#allocation3]  }
 0x7b1   :  { %12143 = dma.done.wait [#allocation3], 32  }
 0x7b2   :  { %12144 = vsyncadd [#allocation3], 4294967264 }
 0x7b3   :  { %9534 = vsyncpa [#allocation3], 1 }

</bundles_post_ra>
